<compile_context>
chip_gen: v5e
topology: v5e:2x2
jax: 0.10.0
libtpu: 0.0.40
codegen_flags: <defaults>
</compile_context>

<pallas_src>
import jax
import jax.numpy as jnp
from jax.experimental import pallas as pl
from jax.experimental.pallas import tpu as pltpu

# Fixed geometry implied by the module: encoder output is (B, 64, 12, 12).
GRID = 12                    # spatial side after the encoder
ROWS = GRID * GRID           # 144 rows per image in the flattened row space
EXT = 16                     # zero-extension rows for shifted-slab convs (>=13)
PATCH = 4                    # stand-in encoder patch size (48 / 4 = 12)


def _vmem():
    return pl.BlockSpec(memory_space=pltpu.MemorySpace.VMEM)


# ----------------------------------------------------------------------------
# Kernel A: encoder (stand-in) + map_conv_net + maxpool, fully fused in VMEM
# ----------------------------------------------------------------------------
def _map_feature_kernel(x_ref,
                        we0_ref, be0_ref, we1_ref, be1_ref,
                        w0_ref, b0_ref, w1_ref, b1_ref, w2_ref, b2_ref,
                        w3_ref, b3_ref, w4_ref, b4_ref,
                        o_ref):
    f32 = jnp.float32
    bf16 = jnp.bfloat16

    def dense(h, w_r, b_r, relu=True):
        # (M, Cin) @ (Cin, Cout) on the MXU, f32 accumulate, f32 epilogue.
        y = jnp.dot(h.astype(bf16), w_r[...], preferred_element_type=f32)
        y = y + b_r[...]
        return jnp.maximum(y, 0.0) if relu else y

    def conv2x2(h, w_r, b_r):
        # 2x2 / stride-1 conv on the (B*144, Cin) slab in 12x12 row space.
        # out[r] = sum_{ki,kj} in[r + ki*12 + kj] @ W[ki,kj]; rows on the
        # right/bottom edge of the grid become junk and are never consumed.
        m, cin = h.shape
        ext = jnp.concatenate([h, jnp.zeros((EXT, cin), f32)], axis=0)
        acc = None
        for k, s in enumerate((0, 1, GRID, GRID + 1)):
            part = jnp.dot(ext[s:s + m].astype(bf16), w_r[k],
                           preferred_element_type=f32)
            acc = part if acc is None else acc + part
        return jnp.maximum(acc + b_r[...], 0.0)

    def maxpool2x2(h):
        # Elementwise max of the 4 shifted slabs; valid pooled values land at
        # rows (b, 2*py, 2*px) of the 12x12 row space.
        m, c = h.shape
        ext = jnp.concatenate([h, jnp.zeros((EXT, c), f32)], axis=0)
        return jnp.maximum(
            jnp.maximum(ext[0:m], ext[1:1 + m]),
            jnp.maximum(ext[GRID:GRID + m], ext[GRID + 1:GRID + 1 + m]))

    h = x_ref[...]                            # (B*144, 16) bf16 patch pixels
    h = dense(h, we0_ref, be0_ref)            # encoder patch-embed  -> 32
    h = dense(h, we1_ref, be1_ref)            # encoder 1x1 conv     -> 64
    h = dense(h, w0_ref, b0_ref)              # mc0 1x1 (+BN folded) -> 32
    h = conv2x2(h, w1_ref, b1_ref)            # mc1 2x2 (+BN folded) -> 16
    h = conv2x2(h, w2_ref, b2_ref)            # mc2 2x2 (+BN folded) -> 8
    h = maxpool2x2(h)                         # MaxPool2d(2, 2)
    h = dense(h, w3_ref, b3_ref)              # mc3 1x1 (+BN folded) -> 8
    h = dense(h, w4_ref, b4_ref)              # mc4 1x1 (+BN folded) -> 4
    o_ref[...] = h.astype(o_ref.dtype)


def map_feature_net(x_patches, weights):
    """weights: (we0,be0,we1,be1, w0,b0, w1,b1, w2,b2, w3,b3, w4,b4), BN-folded."""
    M = x_patches.shape[0]
    args = (x_patches,) + tuple(weights)
    flops = 2 * M * (16 * 32 + 32 * 64 + 64 * 32
                     + 4 * 32 * 16 + 4 * 16 * 8 + 8 * 8 + 8 * 4)
    bytes_accessed = sum(a.size * a.dtype.itemsize for a in args) + M * 4 * 4
    return pl.pallas_call(
        _map_feature_kernel,
        out_shape=jax.ShapeDtypeStruct((M, 4), jnp.float32),
        in_specs=[_vmem() for _ in args],
        out_specs=_vmem(),
        cost_estimate=pl.CostEstimate(flops=flops, transcendentals=0,
                                      bytes_accessed=bytes_accessed),
    )(*args)


# ----------------------------------------------------------------------------
# Kernel B: fused 6-layer predictor_net MLP (Linear + ReLU, last layer linear)
# ----------------------------------------------------------------------------
def _mlp_kernel(x_ref,
                w0_ref, b0_ref, w1_ref, b1_ref, w2_ref, b2_ref,
                w3_ref, b3_ref, w4_ref, b4_ref, w5_ref, b5_ref,
                o_ref):
    def layer(h, w_r, b_r, relu):
        y = jnp.dot(h.astype(jnp.bfloat16), w_r[...],
                    preferred_element_type=jnp.float32) + b_r[...]
        return jnp.maximum(y, 0.0) if relu else y

    h = x_ref[...]
    h = layer(h, w0_ref, b0_ref, True)
    h = layer(h, w1_ref, b1_ref, True)
    h = layer(h, w2_ref, b2_ref, True)
    h = layer(h, w3_ref, b3_ref, True)
    h = layer(h, w4_ref, b4_ref, True)
    h = layer(h, w5_ref, b5_ref, False)
    o_ref[...] = h.astype(o_ref.dtype)


def predictor_net(feats, fc_params):
    M = feats.shape[0]
    args = [feats]
    flops = 0
    for w, b in fc_params:
        args.append(w.astype(jnp.bfloat16))
        args.append(b.reshape(1, -1).astype(jnp.float32))
        flops += 2 * M * w.shape[0] * w.shape[1]
    out_dim = fc_params[-1][0].shape[1]
    bytes_accessed = sum(a.size * a.dtype.itemsize for a in args) + M * out_dim * 4
    return pl.pallas_call(
        _mlp_kernel,
        out_shape=jax.ShapeDtypeStruct((M, out_dim), jnp.float32),
        in_specs=[_vmem() for _ in args],
        out_specs=_vmem(),
        cost_estimate=pl.CostEstimate(flops=flops, transcendentals=0,
                                      bytes_accessed=bytes_accessed),
    )(*args)


# ----------------------------------------------------------------------------
# Trace-time glue: BN folding, space-to-depth, parameter packing
# ----------------------------------------------------------------------------
def _fold_bn(w, conv_bias, bn):
    gamma, beta, mean, var, eps = bn
    scale = gamma * jax.lax.rsqrt(var + eps)           # (Cout,)
    return w * scale, beta + scale * (conv_bias - mean)


def _prep_map_weights(params):
    we0, be0 = params["enc0"]
    we1, be1 = params["enc1"]
    w0, b0 = _fold_bn(*params["mc0"], params["mb0"])
    w1, b1 = _fold_bn(*params["mc1"], params["mb1"])
    w2, b2 = _fold_bn(*params["mc2"], params["mb2"])
    w3, b3 = _fold_bn(*params["mc3"], params["mb3"])
    w4, b4 = _fold_bn(*params["mc4"], params["mb4"])

    def W(w):
        return w.astype(jnp.bfloat16)

    def Bv(b):
        return b.reshape(1, -1).astype(jnp.float32)

    return (W(we0), Bv(be0), W(we1), Bv(be1),
            W(w0), Bv(b0), W(w1), Bv(b1), W(w2), Bv(b2),
            W(w3), Bv(b3), W(w4), Bv(b4))


def _space_to_depth_patches(local_map):
    # (B, 1, 48, 48) NCHW -> non-overlapping 4x4 patches -> (B*144, 16) bf16
    B, C, H, W = local_map.shape
    assert C == 1 and H == GRID * PATCH and W == GRID * PATCH
    x = local_map.reshape(B, GRID, PATCH, GRID, PATCH)
    x = jnp.transpose(x, (0, 1, 3, 2, 4)).reshape(B * ROWS, PATCH * PATCH)
    return x.astype(jnp.bfloat16)


# ----------------------------------------------------------------------------
# Deterministic parameter initialization
# ----------------------------------------------------------------------------
def _init_linear(key, din, dout):
    kw, kb = jax.random.split(key)
    w = jax.random.normal(kw, (din, dout), jnp.float32) / jnp.sqrt(din)
    b = 0.01 * jax.random.normal(kb, (dout,), jnp.float32)
    return w, b


def _init_conv2x2(key, cin, cout):
    kw, kb = jax.random.split(key)
    w = jax.random.normal(kw, (4, cin, cout), jnp.float32) / jnp.sqrt(4 * cin)
    b = 0.01 * jax.random.normal(kb, (cout,), jnp.float32)
    return w, b


def _init_bn(key, c):
    k1, k2, k3 = jax.random.split(key, 3)
    gamma = 1.0 + 0.1 * jax.random.normal(k1, (c,), jnp.float32)
    beta = 0.1 * jax.random.normal(k2, (c,), jnp.float32)
    mean = 0.05 * jax.random.normal(k3, (c,), jnp.float32)
    var = jnp.ones((c,), jnp.float32)
    return gamma, beta, mean, var, 1e-5


def init_params(key, hidden_dims=32, output_dims=2, traj_dims=24):
    keys = jax.random.split(key, 18)
    p = {}
    # Stand-in encoder (see TODO): (B,1,48,48) -> (B,12,12,32) -> (B,12,12,64)
    p["enc0"] = _init_linear(keys[0], PATCH * PATCH, 32)   # 4x4/stride-4 patch embed
    p["enc1"] = _init_linear(keys[1], 32, 64)              # 1x1 conv
    # map_conv_net (weights as matmul layouts: (Cin,Cout) or (4,Cin,Cout))
    p["mc0"] = _init_linear(keys[2], 64, 32);  p["mb0"] = _init_bn(keys[3], 32)
    p["mc1"] = _init_conv2x2(keys[4], 32, 16); p["mb1"] = _init_bn(keys[5], 16)
    p["mc2"] = _init_conv2x2(keys[6], 16, 8);  p["mb2"] = _init_bn(keys[7], 8)
    p["mc3"] = _init_linear(keys[8], 8, 8);    p["mb3"] = _init_bn(keys[9], 8)
    p["mc4"] = _init_linear(keys[10], 8, 4);   p["mb4"] = _init_bn(keys[11], 4)
    # predictor_net: 124 -> 256 -> 128 -> 128 -> 64 -> 32 -> 2
    input_dims = 4 * 5 * 5 + traj_dims
    dims = [input_dims, hidden_dims * 8, hidden_dims * 4, hidden_dims * 4,
            hidden_dims * 2, hidden_dims, output_dims]
    p["fc"] = [_init_linear(keys[12 + i], dims[i], dims[i + 1]) for i in range(6)]
    return p


# ----------------------------------------------------------------------------
# Forward pass (mirrors state_predictor.forward)
# ----------------------------------------------------------------------------
def state_predictor_forward(params, local_map, trajectory):
    B = local_map.shape[0]

    # Fused kernel A: encoder + map_conv_net + maxpool -> (B*144, 4) slab
    x_patches = _space_to_depth_patches(local_map.astype(jnp.float32))
    z = map_feature_net(x_patches, _prep_map_weights(params))

    # Valid pooled positions live at even (y, x) of the 12x12 row space;
    # select them and flatten in PyTorch NCHW order, then append trajectory.
    z = z.reshape(B, GRID, GRID, 4)
    sel = z[:, 0:10:2, 0:10:2, :]                                # (B, 5, 5, 4)
    map_vec = jnp.transpose(sel, (0, 3, 1, 2)).reshape(B, -1)    # (B, 100)
    feats = jnp.concatenate([map_vec, trajectory.astype(jnp.float32)], axis=1)

    # Fused kernel B: full 6-layer MLP
    return predictor_net(feats.astype(jnp.bfloat16), params["fc"])   # (B, 2)


# ----------------------------------------------------------------------------
if __name__ == "__main__":
    key = jax.random.PRNGKey(0)
    k_params, k_map, k_traj = jax.random.split(key, 3)

    params = init_params(k_params)
    local_map = jax.random.normal(k_map, (2, 1, 48, 48), jnp.float32)   # NCHW
    trajectory = jax.random.normal(k_traj, (2, 24), jnp.float32)

    fwd = jax.jit(state_predictor_forward)
    out = jax.block_until_ready(fwd(params, local_map, trajectory))
    assert out.shape == (2, 2) and out.dtype == jnp.float32
    print("KERNEL_OK")
</pallas_src>

<mosaic_0001>
module attributes {stable_mosaic.version = 11 : i64} {
  func.func @_map_feature_kernel(%arg0: memref<288x16xbf16, #tpu.memory_space<vmem>>, %arg1: memref<16x32xbf16, #tpu.memory_space<vmem>>, %arg2: memref<1x32xf32, #tpu.memory_space<vmem>>, %arg3: memref<32x64xbf16, #tpu.memory_space<vmem>>, %arg4: memref<1x64xf32, #tpu.memory_space<vmem>>, %arg5: memref<64x32xbf16, #tpu.memory_space<vmem>>, %arg6: memref<1x32xf32, #tpu.memory_space<vmem>>, %arg7: memref<4x32x16xbf16, #tpu.memory_space<vmem>>, %arg8: memref<1x16xf32, #tpu.memory_space<vmem>>, %arg9: memref<4x16x8xbf16, #tpu.memory_space<vmem>>, %arg10: memref<1x8xf32, #tpu.memory_space<vmem>>, %arg11: memref<8x8xbf16, #tpu.memory_space<vmem>>, %arg12: memref<1x8xf32, #tpu.memory_space<vmem>>, %arg13: memref<8x4xbf16, #tpu.memory_space<vmem>>, %arg14: memref<1x4xf32, #tpu.memory_space<vmem>>, %arg15: memref<288x4xf32, #tpu.memory_space<vmem>>) attributes {dimension_semantics = [], scalar_prefetch = 0 : i64, scratch_operands = 0 : i64, tpu.core_type = #tpu.core_type<tc>} {
    %c0 = arith.constant 0 : index
    %c0_0 = arith.constant 0 : index
    %0 = vector.load %arg0[%c0, %c0_0] : memref<288x16xbf16, #tpu.memory_space<vmem>>, vector<288x16xbf16>
    %c0_1 = arith.constant 0 : index
    %c0_2 = arith.constant 0 : index
    %1 = vector.load %arg1[%c0_1, %c0_2] : memref<16x32xbf16, #tpu.memory_space<vmem>>, vector<16x32xbf16>
    %cst = arith.constant dense<0.000000e+00> : vector<288x32xf32>
    %2 = tpu.matmul %0, %1, %cst {dimension_numbers = #tpu.dot_dimension_numbers<[1], [0], [0], [1], [0, 0, 1, 1], [], []>} : vector<288x16xbf16>, vector<16x32xbf16>, vector<288x32xf32> -> vector<288x32xf32>
    %c0_3 = arith.constant 0 : index
    %c0_4 = arith.constant 0 : index
    %3 = vector.load %arg2[%c0_3, %c0_4] : memref<1x32xf32, #tpu.memory_space<vmem>>, vector<1x32xf32>
    %4 = vector.broadcast %3 : vector<1x32xf32> to vector<288x32xf32>
    %5 = arith.addf %2, %4 : vector<288x32xf32>
    %cst_5 = arith.constant 0.000000e+00 : f32
    %6 = vector.broadcast %cst_5 : f32 to vector<288x32xf32>
    %7 = arith.maximumf %5, %6 : vector<288x32xf32>
    %8 = arith.truncf %7 : vector<288x32xf32> to vector<288x32xbf16>
    %c0_6 = arith.constant 0 : index
    %c0_7 = arith.constant 0 : index
    %9 = vector.load %arg3[%c0_6, %c0_7] : memref<32x64xbf16, #tpu.memory_space<vmem>>, vector<32x64xbf16>
    %cst_8 = arith.constant dense<0.000000e+00> : vector<288x64xf32>
    %10 = tpu.matmul %8, %9, %cst_8 {dimension_numbers = #tpu.dot_dimension_numbers<[1], [0], [0], [1], [0, 0, 1, 1], [], []>} : vector<288x32xbf16>, vector<32x64xbf16>, vector<288x64xf32> -> vector<288x64xf32>
    %c0_9 = arith.constant 0 : index
    %c0_10 = arith.constant 0 : index
    %11 = vector.load %arg4[%c0_9, %c0_10] : memref<1x64xf32, #tpu.memory_space<vmem>>, vector<1x64xf32>
    %12 = vector.broadcast %11 : vector<1x64xf32> to vector<288x64xf32>
    %13 = arith.addf %10, %12 : vector<288x64xf32>
    %cst_11 = arith.constant 0.000000e+00 : f32
    %14 = vector.broadcast %cst_11 : f32 to vector<288x64xf32>
    %15 = arith.maximumf %13, %14 : vector<288x64xf32>
    %16 = arith.truncf %15 : vector<288x64xf32> to vector<288x64xbf16>
    %c0_12 = arith.constant 0 : index
    %c0_13 = arith.constant 0 : index
    %17 = vector.load %arg5[%c0_12, %c0_13] : memref<64x32xbf16, #tpu.memory_space<vmem>>, vector<64x32xbf16>
    %cst_14 = arith.constant dense<0.000000e+00> : vector<288x32xf32>
    %18 = tpu.matmul %16, %17, %cst_14 {dimension_numbers = #tpu.dot_dimension_numbers<[1], [0], [0], [1], [0, 0, 1, 1], [], []>} : vector<288x64xbf16>, vector<64x32xbf16>, vector<288x32xf32> -> vector<288x32xf32>
    %c0_15 = arith.constant 0 : index
    %c0_16 = arith.constant 0 : index
    %19 = vector.load %arg6[%c0_15, %c0_16] : memref<1x32xf32, #tpu.memory_space<vmem>>, vector<1x32xf32>
    %20 = vector.broadcast %19 : vector<1x32xf32> to vector<288x32xf32>
    %21 = arith.addf %18, %20 : vector<288x32xf32>
    %cst_17 = arith.constant 0.000000e+00 : f32
    %22 = vector.broadcast %cst_17 : f32 to vector<288x32xf32>
    %23 = arith.maximumf %21, %22 : vector<288x32xf32>
    %cst_18 = arith.constant 0.000000e+00 : f32
    %24 = vector.broadcast %cst_18 : f32 to vector<16x32xf32>
    %25 = tpu.concatenate %23, %24 in 0 : vector<288x32xf32>, vector<16x32xf32> -> vector<304x32xf32>
    %26 = vector.extract_strided_slice %25 {offsets = [0, 0], sizes = [288, 32], strides = [1, 1]} : vector<304x32xf32> to vector<288x32xf32>
    %27 = arith.truncf %26 : vector<288x32xf32> to vector<288x32xbf16>
    %c0_19 = arith.constant 0 : index
    %c0_20 = arith.constant 0 : index
    %c0_21 = arith.constant 0 : index
    %28 = vector.load %arg7[%c0_19, %c0_20, %c0_21] : memref<4x32x16xbf16, #tpu.memory_space<vmem>>, vector<1x32x16xbf16>
    %29 = vector.shape_cast %28 : vector<1x32x16xbf16> to vector<32x16xbf16>
    %cst_22 = arith.constant dense<0.000000e+00> : vector<288x16xf32>
    %30 = tpu.matmul %27, %29, %cst_22 {dimension_numbers = #tpu.dot_dimension_numbers<[1], [0], [0], [1], [0, 0, 1, 1], [], []>} : vector<288x32xbf16>, vector<32x16xbf16>, vector<288x16xf32> -> vector<288x16xf32>
    %31 = vector.extract_strided_slice %25 {offsets = [1, 0], sizes = [288, 32], strides = [1, 1]} : vector<304x32xf32> to vector<288x32xf32>
    %32 = arith.truncf %31 : vector<288x32xf32> to vector<288x32xbf16>
    %c1 = arith.constant 1 : index
    %c0_23 = arith.constant 0 : index
    %c0_24 = arith.constant 0 : index
    %33 = vector.load %arg7[%c1, %c0_23, %c0_24] : memref<4x32x16xbf16, #tpu.memory_space<vmem>>, vector<1x32x16xbf16>
    %34 = vector.shape_cast %33 : vector<1x32x16xbf16> to vector<32x16xbf16>
    %cst_25 = arith.constant dense<0.000000e+00> : vector<288x16xf32>
    %35 = tpu.matmul %32, %34, %cst_25 {dimension_numbers = #tpu.dot_dimension_numbers<[1], [0], [0], [1], [0, 0, 1, 1], [], []>} : vector<288x32xbf16>, vector<32x16xbf16>, vector<288x16xf32> -> vector<288x16xf32>
    %36 = arith.addf %30, %35 : vector<288x16xf32>
    %37 = vector.extract_strided_slice %25 {offsets = [12, 0], sizes = [288, 32], strides = [1, 1]} : vector<304x32xf32> to vector<288x32xf32>
    %38 = arith.truncf %37 : vector<288x32xf32> to vector<288x32xbf16>
    %c2 = arith.constant 2 : index
    %c0_26 = arith.constant 0 : index
    %c0_27 = arith.constant 0 : index
    %39 = vector.load %arg7[%c2, %c0_26, %c0_27] : memref<4x32x16xbf16, #tpu.memory_space<vmem>>, vector<1x32x16xbf16>
    %40 = vector.shape_cast %39 : vector<1x32x16xbf16> to vector<32x16xbf16>
    %cst_28 = arith.constant dense<0.000000e+00> : vector<288x16xf32>
    %41 = tpu.matmul %38, %40, %cst_28 {dimension_numbers = #tpu.dot_dimension_numbers<[1], [0], [0], [1], [0, 0, 1, 1], [], []>} : vector<288x32xbf16>, vector<32x16xbf16>, vector<288x16xf32> -> vector<288x16xf32>
    %42 = arith.addf %36, %41 : vector<288x16xf32>
    %43 = vector.extract_strided_slice %25 {offsets = [13, 0], sizes = [288, 32], strides = [1, 1]} : vector<304x32xf32> to vector<288x32xf32>
    %44 = arith.truncf %43 : vector<288x32xf32> to vector<288x32xbf16>
    %c3 = arith.constant 3 : index
    %c0_29 = arith.constant 0 : index
    %c0_30 = arith.constant 0 : index
    %45 = vector.load %arg7[%c3, %c0_29, %c0_30] : memref<4x32x16xbf16, #tpu.memory_space<vmem>>, vector<1x32x16xbf16>
    %46 = vector.shape_cast %45 : vector<1x32x16xbf16> to vector<32x16xbf16>
    %cst_31 = arith.constant dense<0.000000e+00> : vector<288x16xf32>
    %47 = tpu.matmul %44, %46, %cst_31 {dimension_numbers = #tpu.dot_dimension_numbers<[1], [0], [0], [1], [0, 0, 1, 1], [], []>} : vector<288x32xbf16>, vector<32x16xbf16>, vector<288x16xf32> -> vector<288x16xf32>
    %48 = arith.addf %42, %47 : vector<288x16xf32>
    %c0_32 = arith.constant 0 : index
    %c0_33 = arith.constant 0 : index
    %49 = vector.load %arg8[%c0_32, %c0_33] : memref<1x16xf32, #tpu.memory_space<vmem>>, vector<1x16xf32>
    %50 = vector.broadcast %49 : vector<1x16xf32> to vector<288x16xf32>
    %51 = arith.addf %48, %50 : vector<288x16xf32>
    %cst_34 = arith.constant 0.000000e+00 : f32
    %52 = vector.broadcast %cst_34 : f32 to vector<288x16xf32>
    %53 = arith.maximumf %51, %52 : vector<288x16xf32>
    %cst_35 = arith.constant 0.000000e+00 : f32
    %54 = vector.broadcast %cst_35 : f32 to vector<16x16xf32>
    %55 = tpu.concatenate %53, %54 in 0 : vector<288x16xf32>, vector<16x16xf32> -> vector<304x16xf32>
    %56 = vector.extract_strided_slice %55 {offsets = [0, 0], sizes = [288, 16], strides = [1, 1]} : vector<304x16xf32> to vector<288x16xf32>
    %57 = arith.truncf %56 : vector<288x16xf32> to vector<288x16xbf16>
    %c0_36 = arith.constant 0 : index
    %c0_37 = arith.constant 0 : index
    %c0_38 = arith.constant 0 : index
    %58 = vector.load %arg9[%c0_36, %c0_37, %c0_38] : memref<4x16x8xbf16, #tpu.memory_space<vmem>>, vector<1x16x8xbf16>
    %59 = vector.shape_cast %58 : vector<1x16x8xbf16> to vector<16x8xbf16>
    %cst_39 = arith.constant dense<0.000000e+00> : vector<288x8xf32>
    %60 = tpu.matmul %57, %59, %cst_39 {dimension_numbers = #tpu.dot_dimension_numbers<[1], [0], [0], [1], [0, 0, 1, 1], [], []>} : vector<288x16xbf16>, vector<16x8xbf16>, vector<288x8xf32> -> vector<288x8xf32>
    %61 = vector.extract_strided_slice %55 {offsets = [1, 0], sizes = [288, 16], strides = [1, 1]} : vector<304x16xf32> to vector<288x16xf32>
    %62 = arith.truncf %61 : vector<288x16xf32> to vector<288x16xbf16>
    %c1_40 = arith.constant 1 : index
    %c0_41 = arith.constant 0 : index
    %c0_42 = arith.constant 0 : index
    %63 = vector.load %arg9[%c1_40, %c0_41, %c0_42] : memref<4x16x8xbf16, #tpu.memory_space<vmem>>, vector<1x16x8xbf16>
    %64 = vector.shape_cast %63 : vector<1x16x8xbf16> to vector<16x8xbf16>
    %cst_43 = arith.constant dense<0.000000e+00> : vector<288x8xf32>
    %65 = tpu.matmul %62, %64, %cst_43 {dimension_numbers = #tpu.dot_dimension_numbers<[1], [0], [0], [1], [0, 0, 1, 1], [], []>} : vector<288x16xbf16>, vector<16x8xbf16>, vector<288x8xf32> -> vector<288x8xf32>
    %66 = arith.addf %60, %65 : vector<288x8xf32>
    %67 = vector.extract_strided_slice %55 {offsets = [12, 0], sizes = [288, 16], strides = [1, 1]} : vector<304x16xf32> to vector<288x16xf32>
    %68 = arith.truncf %67 : vector<288x16xf32> to vector<288x16xbf16>
    %c2_44 = arith.constant 2 : index
    %c0_45 = arith.constant 0 : index
    %c0_46 = arith.constant 0 : index
    %69 = vector.load %arg9[%c2_44, %c0_45, %c0_46] : memref<4x16x8xbf16, #tpu.memory_space<vmem>>, vector<1x16x8xbf16>
    %70 = vector.shape_cast %69 : vector<1x16x8xbf16> to vector<16x8xbf16>
    %cst_47 = arith.constant dense<0.000000e+00> : vector<288x8xf32>
    %71 = tpu.matmul %68, %70, %cst_47 {dimension_numbers = #tpu.dot_dimension_numbers<[1], [0], [0], [1], [0, 0, 1, 1], [], []>} : vector<288x16xbf16>, vector<16x8xbf16>, vector<288x8xf32> -> vector<288x8xf32>
    %72 = arith.addf %66, %71 : vector<288x8xf32>
    %73 = vector.extract_strided_slice %55 {offsets = [13, 0], sizes = [288, 16], strides = [1, 1]} : vector<304x16xf32> to vector<288x16xf32>
    %74 = arith.truncf %73 : vector<288x16xf32> to vector<288x16xbf16>
    %c3_48 = arith.constant 3 : index
    %c0_49 = arith.constant 0 : index
    %c0_50 = arith.constant 0 : index
    %75 = vector.load %arg9[%c3_48, %c0_49, %c0_50] : memref<4x16x8xbf16, #tpu.memory_space<vmem>>, vector<1x16x8xbf16>
    %76 = vector.shape_cast %75 : vector<1x16x8xbf16> to vector<16x8xbf16>
    %cst_51 = arith.constant dense<0.000000e+00> : vector<288x8xf32>
    %77 = tpu.matmul %74, %76, %cst_51 {dimension_numbers = #tpu.dot_dimension_numbers<[1], [0], [0], [1], [0, 0, 1, 1], [], []>} : vector<288x16xbf16>, vector<16x8xbf16>, vector<288x8xf32> -> vector<288x8xf32>
    %78 = arith.addf %72, %77 : vector<288x8xf32>
    %c0_52 = arith.constant 0 : index
    %c0_53 = arith.constant 0 : index
    %79 = vector.load %arg10[%c0_52, %c0_53] : memref<1x8xf32, #tpu.memory_space<vmem>>, vector<1x8xf32>
    %80 = vector.broadcast %79 : vector<1x8xf32> to vector<288x8xf32>
    %81 = arith.addf %78, %80 : vector<288x8xf32>
    %cst_54 = arith.constant 0.000000e+00 : f32
    %82 = vector.broadcast %cst_54 : f32 to vector<288x8xf32>
    %83 = arith.maximumf %81, %82 : vector<288x8xf32>
    %cst_55 = arith.constant 0.000000e+00 : f32
    %84 = vector.broadcast %cst_55 : f32 to vector<16x8xf32>
    %85 = tpu.concatenate %83, %84 in 0 : vector<288x8xf32>, vector<16x8xf32> -> vector<304x8xf32>
    %86 = vector.extract_strided_slice %85 {offsets = [0, 0], sizes = [288, 8], strides = [1, 1]} : vector<304x8xf32> to vector<288x8xf32>
    %87 = vector.extract_strided_slice %85 {offsets = [1, 0], sizes = [288, 8], strides = [1, 1]} : vector<304x8xf32> to vector<288x8xf32>
    %88 = arith.maximumf %86, %87 : vector<288x8xf32>
    %89 = vector.extract_strided_slice %85 {offsets = [12, 0], sizes = [288, 8], strides = [1, 1]} : vector<304x8xf32> to vector<288x8xf32>
    %90 = vector.extract_strided_slice %85 {offsets = [13, 0], sizes = [288, 8], strides = [1, 1]} : vector<304x8xf32> to vector<288x8xf32>
    %91 = arith.maximumf %89, %90 : vector<288x8xf32>
    %92 = arith.maximumf %88, %91 : vector<288x8xf32>
    %93 = arith.truncf %92 : vector<288x8xf32> to vector<288x8xbf16>
    %c0_56 = arith.constant 0 : index
    %c0_57 = arith.constant 0 : index
    %94 = vector.load %arg11[%c0_56, %c0_57] : memref<8x8xbf16, #tpu.memory_space<vmem>>, vector<8x8xbf16>
    %cst_58 = arith.constant dense<0.000000e+00> : vector<288x8xf32>
    %95 = tpu.matmul %93, %94, %cst_58 {dimension_numbers = #tpu.dot_dimension_numbers<[1], [0], [0], [1], [0, 0, 1, 1], [], []>} : vector<288x8xbf16>, vector<8x8xbf16>, vector<288x8xf32> -> vector<288x8xf32>
    %c0_59 = arith.constant 0 : index
    %c0_60 = arith.constant 0 : index
    %96 = vector.load %arg12[%c0_59, %c0_60] : memref<1x8xf32, #tpu.memory_space<vmem>>, vector<1x8xf32>
    %97 = vector.broadcast %96 : vector<1x8xf32> to vector<288x8xf32>
    %98 = arith.addf %95, %97 : vector<288x8xf32>
    %cst_61 = arith.constant 0.000000e+00 : f32
    %99 = vector.broadcast %cst_61 : f32 to vector<288x8xf32>
    %100 = arith.maximumf %98, %99 : vector<288x8xf32>
    %101 = arith.truncf %100 : vector<288x8xf32> to vector<288x8xbf16>
    %c0_62 = arith.constant 0 : index
    %c0_63 = arith.constant 0 : index
    %102 = vector.load %arg13[%c0_62, %c0_63] : memref<8x4xbf16, #tpu.memory_space<vmem>>, vector<8x4xbf16>
    %cst_64 = arith.constant dense<0.000000e+00> : vector<288x4xf32>
    %103 = tpu.matmul %101, %102, %cst_64 {dimension_numbers = #tpu.dot_dimension_numbers<[1], [0], [0], [1], [0, 0, 1, 1], [], []>} : vector<288x8xbf16>, vector<8x4xbf16>, vector<288x4xf32> -> vector<288x4xf32>
    %c0_65 = arith.constant 0 : index
    %c0_66 = arith.constant 0 : index
    %104 = vector.load %arg14[%c0_65, %c0_66] : memref<1x4xf32, #tpu.memory_space<vmem>>, vector<1x4xf32>
    %105 = vector.broadcast %104 : vector<1x4xf32> to vector<288x4xf32>
    %106 = arith.addf %103, %105 : vector<288x4xf32>
    %cst_67 = arith.constant 0.000000e+00 : f32
    %107 = vector.broadcast %cst_67 : f32 to vector<288x4xf32>
    %108 = arith.maximumf %106, %107 : vector<288x4xf32>
    %c0_68 = arith.constant 0 : index
    %c0_69 = arith.constant 0 : index
    %109 = vector.load %arg15[%c0_68, %c0_69] : memref<288x4xf32, #tpu.memory_space<vmem>>, vector<288x4xf32>
    tpu.vector_store %arg15[%c0_68, %c0_69], %108 {strides = array<i32>} : memref<288x4xf32, #tpu.memory_space<vmem>>, vector<288x4xf32>,
    return
  }
}

module attributes {stable_mosaic.version = 11 : i64} {
  func.func @_mlp_kernel(%arg0: memref<2x124xbf16, #tpu.memory_space<vmem>>, %arg1: memref<124x256xbf16, #tpu.memory_space<vmem>>, %arg2: memref<1x256xf32, #tpu.memory_space<vmem>>, %arg3: memref<256x128xbf16, #tpu.memory_space<vmem>>, %arg4: memref<1x128xf32, #tpu.memory_space<vmem>>, %arg5: memref<128x128xbf16, #tpu.memory_space<vmem>>, %arg6: memref<1x128xf32, #tpu.memory_space<vmem>>, %arg7: memref<128x64xbf16, #tpu.memory_space<vmem>>, %arg8: memref<1x64xf32, #tpu.memory_space<vmem>>, %arg9: memref<64x32xbf16, #tpu.memory_space<vmem>>, %arg10: memref<1x32xf32, #tpu.memory_space<vmem>>, %arg11: memref<32x2xbf16, #tpu.memory_space<vmem>>, %arg12: memref<1x2xf32, #tpu.memory_space<vmem>>, %arg13: memref<2x2xf32, #tpu.memory_space<vmem>>) attributes {dimension_semantics = [], scalar_prefetch = 0 : i64, scratch_operands = 0 : i64, tpu.core_type = #tpu.core_type<tc>} {
    %c0 = arith.constant 0 : index
    %c0_0 = arith.constant 0 : index
    %0 = vector.load %arg0[%c0, %c0_0] : memref<2x124xbf16, #tpu.memory_space<vmem>>, vector<2x124xbf16>
    %c0_1 = arith.constant 0 : index
    %c0_2 = arith.constant 0 : index
    %1 = vector.load %arg1[%c0_1, %c0_2] : memref<124x256xbf16, #tpu.memory_space<vmem>>, vector<124x256xbf16>
    %cst = arith.constant dense<0.000000e+00> : vector<2x256xf32>
    %2 = tpu.matmul %0, %1, %cst {dimension_numbers = #tpu.dot_dimension_numbers<[1], [0], [0], [1], [0, 0, 1, 1], [], []>} : vector<2x124xbf16>, vector<124x256xbf16>, vector<2x256xf32> -> vector<2x256xf32>
    %c0_3 = arith.constant 0 : index
    %c0_4 = arith.constant 0 : index
    %3 = vector.load %arg2[%c0_3, %c0_4] : memref<1x256xf32, #tpu.memory_space<vmem>>, vector<1x256xf32>
    %4 = vector.broadcast %3 : vector<1x256xf32> to vector<2x256xf32>
    %5 = arith.addf %2, %4 : vector<2x256xf32>
    %cst_5 = arith.constant 0.000000e+00 : f32
    %6 = vector.broadcast %cst_5 : f32 to vector<2x256xf32>
    %7 = arith.maximumf %5, %6 : vector<2x256xf32>
    %8 = arith.truncf %7 : vector<2x256xf32> to vector<2x256xbf16>
    %c0_6 = arith.constant 0 : index
    %c0_7 = arith.constant 0 : index
    %9 = vector.load %arg3[%c0_6, %c0_7] : memref<256x128xbf16, #tpu.memory_space<vmem>>, vector<256x128xbf16>
    %cst_8 = arith.constant dense<0.000000e+00> : vector<2x128xf32>
    %10 = tpu.matmul %8, %9, %cst_8 {dimension_numbers = #tpu.dot_dimension_numbers<[1], [0], [0], [1], [0, 0, 1, 1], [], []>} : vector<2x256xbf16>, vector<256x128xbf16>, vector<2x128xf32> -> vector<2x128xf32>
    %c0_9 = arith.constant 0 : index
    %c0_10 = arith.constant 0 : index
    %11 = vector.load %arg4[%c0_9, %c0_10] : memref<1x128xf32, #tpu.memory_space<vmem>>, vector<1x128xf32>
    %12 = vector.broadcast %11 : vector<1x128xf32> to vector<2x128xf32>
    %13 = arith.addf %10, %12 : vector<2x128xf32>
    %cst_11 = arith.constant 0.000000e+00 : f32
    %14 = vector.broadcast %cst_11 : f32 to vector<2x128xf32>
    %15 = arith.maximumf %13, %14 : vector<2x128xf32>
    %16 = arith.truncf %15 : vector<2x128xf32> to vector<2x128xbf16>
    %c0_12 = arith.constant 0 : index
    %c0_13 = arith.constant 0 : index
    %17 = vector.load %arg5[%c0_12, %c0_13] : memref<128x128xbf16, #tpu.memory_space<vmem>>, vector<128x128xbf16>
    %cst_14 = arith.constant dense<0.000000e+00> : vector<2x128xf32>
    %18 = tpu.matmul %16, %17, %cst_14 {dimension_numbers = #tpu.dot_dimension_numbers<[1], [0], [0], [1], [0, 0, 1, 1], [], []>} : vector<2x128xbf16>, vector<128x128xbf16>, vector<2x128xf32> -> vector<2x128xf32>
    %c0_15 = arith.constant 0 : index
    %c0_16 = arith.constant 0 : index
    %19 = vector.load %arg6[%c0_15, %c0_16] : memref<1x128xf32, #tpu.memory_space<vmem>>, vector<1x128xf32>
    %20 = vector.broadcast %19 : vector<1x128xf32> to vector<2x128xf32>
    %21 = arith.addf %18, %20 : vector<2x128xf32>
    %cst_17 = arith.constant 0.000000e+00 : f32
    %22 = vector.broadcast %cst_17 : f32 to vector<2x128xf32>
    %23 = arith.maximumf %21, %22 : vector<2x128xf32>
    %24 = arith.truncf %23 : vector<2x128xf32> to vector<2x128xbf16>
    %c0_18 = arith.constant 0 : index
    %c0_19 = arith.constant 0 : index
    %25 = vector.load %arg7[%c0_18, %c0_19] : memref<128x64xbf16, #tpu.memory_space<vmem>>, vector<128x64xbf16>
    %cst_20 = arith.constant dense<0.000000e+00> : vector<2x64xf32>
    %26 = tpu.matmul %24, %25, %cst_20 {dimension_numbers = #tpu.dot_dimension_numbers<[1], [0], [0], [1], [0, 0, 1, 1], [], []>} : vector<2x128xbf16>, vector<128x64xbf16>, vector<2x64xf32> -> vector<2x64xf32>
    %c0_21 = arith.constant 0 : index
    %c0_22 = arith.constant 0 : index
    %27 = vector.load %arg8[%c0_21, %c0_22] : memref<1x64xf32, #tpu.memory_space<vmem>>, vector<1x64xf32>
    %28 = vector.broadcast %27 : vector<1x64xf32> to vector<2x64xf32>
    %29 = arith.addf %26, %28 : vector<2x64xf32>
    %cst_23 = arith.constant 0.000000e+00 : f32
    %30 = vector.broadcast %cst_23 : f32 to vector<2x64xf32>
    %31 = arith.maximumf %29, %30 : vector<2x64xf32>
    %32 = arith.truncf %31 : vector<2x64xf32> to vector<2x64xbf16>
    %c0_24 = arith.constant 0 : index
    %c0_25 = arith.constant 0 : index
    %33 = vector.load %arg9[%c0_24, %c0_25] : memref<64x32xbf16, #tpu.memory_space<vmem>>, vector<64x32xbf16>
    %cst_26 = arith.constant dense<0.000000e+00> : vector<2x32xf32>
    %34 = tpu.matmul %32, %33, %cst_26 {dimension_numbers = #tpu.dot_dimension_numbers<[1], [0], [0], [1], [0, 0, 1, 1], [], []>} : vector<2x64xbf16>, vector<64x32xbf16>, vector<2x32xf32> -> vector<2x32xf32>
    %c0_27 = arith.constant 0 : index
    %c0_28 = arith.constant 0 : index
    %35 = vector.load %arg10[%c0_27, %c0_28] : memref<1x32xf32, #tpu.memory_space<vmem>>, vector<1x32xf32>
    %36 = vector.broadcast %35 : vector<1x32xf32> to vector<2x32xf32>
    %37 = arith.addf %34, %36 : vector<2x32xf32>
    %cst_29 = arith.constant 0.000000e+00 : f32
    %38 = vector.broadcast %cst_29 : f32 to vector<2x32xf32>
    %39 = arith.maximumf %37, %38 : vector<2x32xf32>
    %40 = arith.truncf %39 : vector<2x32xf32> to vector<2x32xbf16>
    %c0_30 = arith.constant 0 : index
    %c0_31 = arith.constant 0 : index
    %41 = vector.load %arg11[%c0_30, %c0_31] : memref<32x2xbf16, #tpu.memory_space<vmem>>, vector<32x2xbf16>
    %cst_32 = arith.constant dense<0.000000e+00> : vector<2x2xf32>
    %42 = tpu.matmul %40, %41, %cst_32 {dimension_numbers = #tpu.dot_dimension_numbers<[1], [0], [0], [1], [0, 0, 1, 1], [], []>} : vector<2x32xbf16>, vector<32x2xbf16>, vector<2x2xf32> -> vector<2x2xf32>
    %c0_33 = arith.constant 0 : index
    %c0_34 = arith.constant 0 : index
    %43 = vector.load %arg12[%c0_33, %c0_34] : memref<1x2xf32, #tpu.memory_space<vmem>>, vector<1x2xf32>
    %44 = vector.broadcast %43 : vector<1x2xf32> to vector<2x2xf32>
    %45 = arith.addf %42, %44 : vector<2x2xf32>
    %c0_35 = arith.constant 0 : index
    %c0_36 = arith.constant 0 : index
    %46 = vector.load %arg13[%c0_35, %c0_36] : memref<2x2xf32, #tpu.memory_space<vmem>>, vector<2x2xf32>
    tpu.vector_store %arg13[%c0_35, %c0_36], %45 {strides = array<i32>} : memref<2x2xf32, #tpu.memory_space<vmem>>, vector<2x2xf32>,
    return
  }
}

</mosaic_0001>

<bundles_post_ra>
// kernel: state_predictor_forward.3
= control target key start
LH: loop header
LB: loop body
LE: loop exit
PB: predicated region body
PF: predicated region fallthrough
CT: control target
= control target key end

     0   :  { %vm151_vm0 = vcmask 1045504   ;;  %s1235_s0 = inlined_call_operand.vmem [shape: bf16[2,124], index: 0, kind: input, shape index: {}]   ;;  %s1236_s1 = inlined_call_operand.vmem [shape: bf16[124,256], index: 1, kind: input, shape index: {}]   ;;  %s1237_s2 = inlined_call_operand.vmem [shape: f32[1,256], index: 2, kind: input, shape index: {}]   ;;  %s1238_s3 = inlined_call_operand.vmem [shape: bf16[256,128], index: 3, kind: input, shape index: {}]   ;;  %s1239_s4 = inlined_call_operand.vmem [shape: f32[1,128], index: 4, kind: input, shape index: {}]   ;;  %s1240_s5 = inlined_call_operand.vmem [shape: bf16[128,128], index: 5, kind: input, shape index: {}]   ;;  %s1241_s6 = inlined_call_operand.vmem [shape: f32[1,128], index: 6, kind: input, shape index: {}]   ;;  %s1242_s7 = inlined_call_operand.vmem [shape: bf16[128,64], index: 7, kind: input, shape index: {}]   ;;  %s1243_s8 = inlined_call_operand.vmem [shape: f32[1,64], index: 8, kind: input, shape index: {}]   ;;  %s1244_s9 = inlined_call_operand.vmem [shape: bf16[64,32], index: 9, kind: input, shape index: {}]   ;;  %s1245_s10 = inlined_call_operand.vmem [shape: f32[1,32], index: 10, kind: input, shape index: {}]   ;;  %s1246_s11 = inlined_call_operand.vmem [shape: bf16[32,2], index: 11, kind: input, shape index: {}]   ;;  %s1247_s12 = inlined_call_operand.vmem [shape: f32[1,2], index: 12, kind: input, shape index: {}]   ;;  %s1248_s13 = inlined_call_operand.hbm [shape: f32[2,2], index: 13, kind: output, shape index: {}]  }
   0x1   :  { %v682_v0 = vld [vmem:[%s1236_s1 + $0x70] sm:$0xf]  ;;  %v859_v1 = vld [vmem:[%s1236_s1 + $0x74] sm:$0x30]  ;;  %v858_v3 = vld [vmem:[%s1236_s1 + $0x74] sm:$0xf] }
   0x2   :  { %v683_v2 = vor.u32 %v859_v1, %v682_v0  ;;  %v684_v4 = vld [vmem:[%s1236_s1 + $0x78] sm:$0x30]  ;;  %v674_v5 = vld [vmem:[%s1236_s1 + $0x60] sm:$0xf]  ;;  %v857_v7 = vld [vmem:[%s1236_s1 + $0x64] sm:$0xf0] }
   0x3   :  { %v687_v6 = vor.u32 %v858_v3, %v684_v4  ;;  %v856_v8 = vld [vmem:[%s1236_s1 + $0x64] sm:$0xf]  ;;  %v676_v9 = vld [vmem:[%s1236_s1 + $0x68] sm:$0xf0]  ;;  %v675_v12 = vor.u32 %v857_v7, %v674_v5  ;;  %v867_v13 = vld [vmem:[%s1238_s3 + $0x38] sm:$0xff] }
   0x4   :  { %v153_v10 = vsel %vm151_vm0, %v683_v2, 0  ;;  %v679_v14 = vor.u32 %v856_v8, %v676_v9  ;;  %v666_v15 = vld [vmem:[%s1236_s1 + $0x50] sm:$0xf]  ;;  %v855_v16 = vld [vmem:[%s1236_s1 + $0x54] sm:$0xf0]  ;;  %320 = vmatpush.bf16.msra.mxu2 %v867_v13  ;;  %v865_v34 = vld [vmem:[%s1238_s3 + $0x28] sm:$0xff] }
   0x5   :  { %158 = vmatpush.bf16.msra.mxu0 %v153_v10  ;;  %v156_v11 = vsel %vm151_vm0, %v687_v6, 0  ;;  %v854_v17 = vld [vmem:[%s1236_s1 + $0x54] sm:$0xf]  ;;  %v668_v18 = vld [vmem:[%s1236_s1 + $0x58] sm:$0xf0]  ;;  %v667_v19 = vor.u32 %v855_v16, %v666_v15  ;;  %v873_v41 = vld [vmem:[%s1238_s3 + $0x68] sm:$0xff] }
   0x6   :  { %171 = vmatpush.bf16.msra.mxu1 %v156_v11  ;;  %v671_v20 = vor.u32 %v854_v17, %v668_v18  ;;  %v658_v21 = vld [vmem:[%s1236_s1 + $0x40] sm:$0xf]  ;;  %v853_v22 = vld [vmem:[%s1236_s1 + $0x44] sm:$0xf0]  ;;  %v852_v23 = vld [vmem:[%s1236_s1 + $0x44] sm:$0xf] }
   0x7   :  { %v660_v24 = vld [vmem:[%s1236_s1 + $0x48] sm:$0xf0]  ;;  %v659_v25 = vor.u32 %v853_v22, %v658_v21  ;;  %v875_v26 = vld [vmem:[%s1238_s3 + $0x78] sm:$0xff]  ;;  %v866_v27 = vld [vmem:[%s1238_s3 + $0x30] sm:$0xff] }
   0x8   :  { %v663_v28 = vor.u32 %v852_v23, %v660_v24  ;;  %v650_v29 = vld [vmem:[%s1236_s1 + $0x30] sm:$0xf]  ;;  %v851_v30 = vld [vmem:[%s1236_s1 + $0x34] sm:$0xf0]  ;;  %v850_v31 = vld [vmem:[%s1236_s1 + $0x34] sm:$0xf]  ;;  %333 = vmatpush.bf16.msra.mxu3 %v875_v26  ;;  %321 = vmatpush.bf16.msra.mxu2 %v866_v27 }
   0x9   :  { %159 = vmatpush.bf16.msra.mxu0 %v675_v12  ;;  %v652_v32 = vld [vmem:[%s1236_s1 + $0x38] sm:$0xf0]  ;;  %v874_v33 = vld [vmem:[%s1238_s3 + $0x70] sm:$0xff]  ;;  %v642_v35 = vld [vmem:[%s1236_s1 + $0x20] sm:$0xf]  ;;  %v651_v37 = vor.u32 %v851_v30, %v650_v29 }
   0xa   :  { %172 = vmatpush.bf16.msra.mxu1 %v679_v14  ;;  %v849_v36 = vld [vmem:[%s1236_s1 + $0x24] sm:$0xf0]  ;;  %v848_v38 = vld [vmem:[%s1236_s1 + $0x24] sm:$0xf]  ;;  %v644_v39 = vld [vmem:[%s1236_s1 + $0x28] sm:$0xf0]  ;;  %v655_v40 = vor.u32 %v850_v31, %v652_v32 }
   0xb   :  { %v864_v42 = vld [vmem:[%s1238_s3 + $0x20] sm:$0xff] }
   0xc   :  { %334 = vmatpush.bf16.msra.mxu3 %v874_v33  ;;  %322 = vmatpush.bf16.msra.mxu2 %v865_v34 }
   0xd   :  { %160 = vmatpush.bf16.msra.mxu0 %v667_v19 }
   0xe   :  { %173 = vmatpush.bf16.msra.mxu1 %v671_v20 }
  0x11   :  { %161 = vmatpush.bf16.msra.mxu0 %v659_v25 }
  0x12   :  { %174 = vmatpush.bf16.msra.mxu1 %v663_v28 }
  0x13   :  { %18 = vsyncpa [#allocation3], 0  ;;  %v643_v43 = vor.u32 %v849_v36, %v642_v35  ;;  %v647_v44 = vor.u32 %v848_v38, %v644_v39  ;;  %v634_v45 = vld [vmem:[%s1236_s1 + $0x10] sm:$0xf]  ;;  %v847_v46 = vld [vmem:[%s1236_s1 + $0x14] sm:$0xf0]  ;;  %335 = vmatpush.bf16.msra.mxu3 %v873_v41  ;;  %323 = vmatpush.bf16.msra.mxu2 %v864_v42 }
  0x14   :  { %v846_v47 = vld [vmem:[%s1236_s1 + $0x14] sm:$0xf]  ;;  %v636_v48 = vld [vmem:[%s1236_s1 + $0x18] sm:$0xf0]  ;;  %v872_v49 = vld [vmem:[%s1238_s3 + $0x60] sm:$0xff]  ;;  %v635_v51 = vor.u32 %v847_v46, %v634_v45  ;;  %vm147_vm1 = vcmask 1014784  }
  0x15   :  { %162 = vmatpush.bf16.msra.mxu0 %v651_v37  ;;  %v863_v50 = vld [vmem:[%s1238_s3 + $0x18] sm:$0xff]  ;;  %v639_v52 = vor.u32 %v846_v47, %v636_v48  ;;  %v626_v53 = vld [vmem:[%s1236_s1] sm:$0xf]  ;;  %v845_v54 = vld [vmem:[%s1236_s1 + $0x4] sm:$0xf0]  ;;  %vm550_vm2 = vcmask 523264  }
  0x16   :  { %175 = vmatpush.bf16.msra.mxu1 %v655_v40  ;;  %v844_v55 = vld [vmem:[%s1236_s1 + $0x4] sm:$0xf]  ;;  %v628_v56 = vld [vmem:[%s1236_s1 + $0x8] sm:$0xf0]  ;;  %v871_v57 = vld [vmem:[%s1238_s3 + $0x58] sm:$0xff]  ;;  %v627_v59 = vor.u32 %v845_v54, %v626_v53  ;;  %vm589_vm3 = vcmask 261120  }
  0x17   :  { %336 = vmatpush.bf16.msra.mxu3 %v872_v49  ;;  %324 = vmatpush.bf16.msra.mxu2 %v863_v50  ;;  %v862_v58 = vld [vmem:[%s1238_s3 + $0x10] sm:$0xff]  ;;  %v631_v60 = vor.u32 %v844_v55, %v628_v56  ;;  %v46_v62 = vld [vmem:[%s1235_s0] sm:$0x1]  ;;  %v861_v63 = vld [vmem:[%s1238_s3 + $0x8] sm:$0xff]  ;;  %s930_s25 = smov [#allocation2]   ;;  %s615_s1 = sshll.u32 %s1248_s13, 4  ;;  %s616_s1 = int_to_ptr.hbm [resolvable:$true] %s615_s1 }
  0x18   :  { %v870_v61 = vld [vmem:[%s1238_s3 + $0x50] sm:$0xff]  ;;  %v869_v0 = vld [vmem:[%s1238_s3 + $0x48] sm:$0xff]  ;;  %v860_v1 = vld [vmem:[%s1238_s3] sm:$0xff]  ;;  %s613_s26 = sshll.u32 %s930_s25, 4  ;;  %vm606_vm4 = vcmask 9216   ;;  %s614_s26 = int_to_ptr.vmem [resolvable:$true] %s613_s26 }
  0x19   :  { %163 = vmatpush.bf16.msra.mxu0 %v643_v43  ;;  %v868_v2 = vld [vmem:[%s1238_s3 + $0x40] sm:$0xff]  ;;  %v883_v3 = vld [vmem:[%s1240_s5 + $0x38] sm:$0xff]  ;;  %v882_v4 = vld [vmem:[%s1240_s5 + $0x30] sm:$0xff] }
  0x1a   :  { %176 = vmatpush.bf16.msra.mxu1 %v647_v44  ;;  %v881_v5 = vld [vmem:[%s1240_s5 + $0x28] sm:$0xff]  ;;  %v880_v6 = vld [vmem:[%s1240_s5 + $0x20] sm:$0xff]  ;;  %v879_v7 = vld [vmem:[%s1240_s5 + $0x18] sm:$0xff] }
  0x1b   :  { %337 = vmatpush.bf16.msra.mxu3 %v871_v57  ;;  %325 = vmatpush.bf16.msra.mxu2 %v862_v58  ;;  %v63_v8 = vld [vmem:[%s1237_s2] sm:$0x3]  ;;  %v878_v9 = vld [vmem:[%s1240_s5 + $0x10] sm:$0xff]  ;;  %v877_v22 = vld [vmem:[%s1240_s5 + $0x8] sm:$0xff] }
  0x1c   :  { %v65_v10 = vperm.slane %v63_v8, 0  ;;  %v66_v11 = vperm.slane %v63_v8, 1  ;;  %v876_v23 = vld [vmem:[%s1240_s5] sm:$0xff]  ;;  %v891_v24 = vld [vmem:[%s1242_s7 + $0x38] sm:$0xff]  ;;  %v890_v25 = vld [vmem:[%s1242_s7 + $0x30] sm:$0xff] }
  0x1d   :  { %164 = vmatpush.bf16.msra.mxu0 %v635_v51  ;;  %v889_v26 = vld [vmem:[%s1242_s7 + $0x28] sm:$0xff]  ;;  %v888_v27 = vld [vmem:[%s1242_s7 + $0x20] sm:$0xff]  ;;  %v887_v28 = vld [vmem:[%s1242_s7 + $0x18] sm:$0xff] }
  0x1e   :  { %177 = vmatpush.bf16.msra.mxu1 %v639_v52  ;;  %v886_v29 = vld [vmem:[%s1242_s7 + $0x10] sm:$0xff]  ;;  %v899_v30 = vld [vmem:[%s1239_s4] ss:$0 sm:$0xff]  ;;  %v885_v39 = vld [vmem:[%s1242_s7 + $0x8] sm:$0xff] }
  0x1f   :  { %338 = vmatpush.bf16.msra.mxu3 %v870_v61  ;;  %326 = vmatpush.bf16.msra.mxu2 %v861_v63  ;;  %v884_v40 = vld [vmem:[%s1242_s7] sm:$0xff]  ;;  %v895_v41 = vld [vmem:[%s1244_s9 + $0x18] sm:$0xff]  ;;  %v894_v42 = vld [vmem:[%s1244_s9 + $0x10] sm:$0xff] }
  0x20   :  { %v893_v43 = vld [vmem:[%s1244_s9 + $0x8] sm:$0xff]  ;;  %v900_v44 = vld [vmem:[%s1241_s6] ss:$0 sm:$0xff] }
  0x21   :  { %165 = vmatpush.bf16.msra.mxu0 %v627_v59  ;;  %v892_v50 = vld [vmem:[%s1244_s9] sm:$0xff]  ;;  %v897_v51 = vld [vmem:[%s1246_s11 + $0x8] sm:$0xff] }
  0x22   :  { %178 = vmatpush.bf16.msra.mxu1 %v631_v60  ;;  %v896_v52 = vld [vmem:[%s1246_s11] sm:$0xff] }
  0x23   :  { %339 = vmatpush.bf16.msra.mxu3 %v869_v0  ;;  %327 = vmatpush.bf16.msra.mxu2 %v860_v1  ;;  %v901_v53 = vld [vmem:[%s1243_s8] ss:$0 sm:$0xff] }
  0x24   :  { %688 = vmatmul.msk.bf16.vlgmr.msra.gmra.mxu0 %vm147_vm1, %v46_v62  ;;  %v902_v59 = vld [vmem:[%s1245_s10] ss:$0 sm:$0xff] }
  0x25   :  { %689 = vmatmul.msk.bf16.vlgmr.msra.gmra.mxu1 %vm147_vm1, %v46_v62  ;;  %416 = vmatpush.bf16.msrb.mxu0 %v883_v3  ;;  %v903_v1 = vld [vmem:[%s1247_s12] ss:$0 sm:$0xff] }
  0x26   :  { %499 = vmatpush.bf16.msrb.mxu1 %v891_v24 }
  0x27   :  { %340 = vmatpush.bf16.msra.mxu3 %v868_v2  ;;  %558 = vmatpush.bf16.msrb.mxu2 %v895_v41 }
  0x29   :  { %417 = vmatpush.bf16.msrb.mxu0 %v882_v4 }
  0x2a   :  { %500 = vmatpush.bf16.msrb.mxu1 %v890_v25 }
  0x2b   :  { %559 = vmatpush.bf16.msrb.mxu2 %v894_v42  ;;  %599 = vmatpush.bf16.msrb.mxu3 %v897_v51 }
  0x2d   :  { %418 = vmatpush.bf16.msrb.mxu0 %v881_v5 }
  0x2e   :  { %501 = vmatpush.bf16.msrb.mxu1 %v889_v26 }
  0x2f   :  { %560 = vmatpush.bf16.msrb.mxu2 %v893_v43  ;;  %600 = vmatpush.bf16.msrb.mxu3 %v896_v52 }
  0x31   :  { %419 = vmatpush.bf16.msrb.mxu0 %v880_v6 }
  0x32   :  { %502 = vmatpush.bf16.msrb.mxu1 %v888_v27 }
  0x33   :  { %561 = vmatpush.bf16.msrb.mxu2 %v892_v50 }
  0x35   :  { %420 = vmatpush.bf16.msrb.mxu0 %v879_v7 }
  0x36   :  { %503 = vmatpush.bf16.msrb.mxu1 %v887_v28 }
  0x39   :  { %421 = vmatpush.bf16.msrb.mxu0 %v878_v9 }
  0x3a   :  { %504 = vmatpush.bf16.msrb.mxu1 %v886_v29 }
  0x3d   :  { %422 = vmatpush.bf16.msrb.mxu0 %v877_v22 }
  0x3e   :  { %505 = vmatpush.bf16.msrb.mxu1 %v885_v39 }
  0x41   :  { %423 = vmatpush.bf16.msrb.mxu0 %v876_v23 }
  0x42   :  { %506 = vmatpush.bf16.msrb.mxu1 %v884_v40 }
  0xa1   :  { %v167_v12 = vpop.f32.mrf.mxu0 }
  0xa2   :  { %v168_v13 = vadd.f32 %v167_v12, %v65_v10  ;;  %v180_v14 = vpop.f32.mrf.mxu1 }
  0xa3   :  { %v181_v15 = vadd.f32 %v180_v14, %v66_v11 }
  0xa4   :  { %v184_v16 = vmax.f32 %v168_v13, 0.0 }
  0xa5   :  { %v185_v17 = vmax.f32 %v181_v15, 0.0 }
  0xa6   :  { %v186_v18 = vpack.c.bf16 %v184_v16, %v184_v16 }
  0xa7   :  { %v187_v19 = vpack.c.bf16 %v185_v17, %v185_v17 }
  0xa8   :  { %328 = vmatmul.bf16.vlgmr.msra.gmra.mxu2 %v186_v18 }
  0xa9   :  { %341 = vmatmul.bf16.vlgmr.msra.gmra.mxu3 %v187_v19  ;;  %v169_v20 = vpop.f32.mrf.mxu0 }
  0xaa   :  { %v182_v21 = vpop.f32.mrf.mxu1 }
 0x12b   :  { %v329_v31 = vpop.f32.mrf.mxu2 }
 0x12c   :  { %v330_v32 = vadd.f32 %v899_v30, %v329_v31  ;;  %v342_v33 = vpop.f32.mrf.mxu3 }
 0x12e   :  { %v343_v34 = vadd.f32 %v342_v33, %v330_v32 }
 0x130   :  { %v346_v35 = vmax.f32 %v343_v34, 0.0 }
 0x132   :  { %v347_v36 = vpack.c.bf16 %v346_v35, %v346_v35 }
 0x133   :  { %v331_v37 = vpop.f32.mrf.mxu2 }
 0x134   :  { %v344_v38 = vpop.f32.mrf.mxu3  ;;  %424 = vmatmul.bf16.vlgmr.msrb.gmra.mxu0 %v347_v36 }
 0x1b1   :  { %v425_v45 = vpop.f32.mrf.mxu0 }
 0x1b2   :  { %v426_v46 = vadd.f32 %v900_v44, %v425_v45 }
 0x1b4   :  { %v429_v47 = vmax.f32 %v426_v46, 0.0 }
 0x1b6   :  { %v430_v48 = vpack.c.bf16 %v429_v47, %v429_v47 }
 0x1b8   :  { %507 = vmatmul.bf16.vlgmr.msrb.gmra.mxu1 %v430_v48 }
 0x1b9   :  { %v427_v49 = vpop.f32.mrf.mxu0 }
 0x235   :  { %v508_v54 = vpop.f32.mrf.mxu1 }
 0x236   :  { %v509_v55 = vadd.f32 %v901_v53, %v508_v54 }
 0x238   :  { %v512_v56 = vmax.f32 %v509_v55, 0.0 }
 0x23a   :  { %v513_v57 = vpack.c.bf16 %v512_v56, %v512_v56 }
 0x23c   :  { %834 = vmatmul.msk.bf16.vlgmr.msrb.gmra.mxu2 %vm550_vm2, %v513_v57 }
 0x23d   :  { %v510_v58 = vpop.f32.mrf.mxu1 }
 0x2bf   :  { %v563_v60 = vpop.f32.mrf.mxu2 }
 0x2c0   :  { %v564_v61 = vadd.f32 %v902_v59, %v563_v60 }
 0x2c2   :  { %v567_v62 = vmax.f32 %v564_v61, 0.0 }
 0x2c4   :  { %v568_v63 = vpack.c.bf16 %v567_v62, %v567_v62 }
 0x2c6   :  { %843 = vmatmul.msk.bf16.vlgmr.msrb.gmra.mxu3 %vm589_vm3, %v568_v63 }
 0x2c7   :  { %v565_v0 = vpop.f32.mrf.mxu2 }
 0x349   :  { %v602_v2 = vpop.f32.mrf.mxu3 }
 0x34a   :  { %v603_v3 = vadd.f32 %v903_v1, %v602_v2 }
 0x34c   :  { %607 = vst.msk [vmem:[#allocation2] sm:$0x3] %vm606_vm4, %v603_v3 }
 0x34d   :  { %618 = dma.vmem_to_hbm [thread:$0]  %s614_s26, 32, %s616_s1, [#allocation3]  }
 0x351   :  { %v604_v4 = vpop.f32.mrf.mxu3 }
 0x352   :  { %928 = dma.done.wait [#allocation3], 32  }
 0x353   :  { %929 = vsyncadd [#allocation3], 4294967264 }
 0x354   :  { %623 = vsyncpa [#allocation3], 1 }

// kernel: state_predictor_forward.2
= control target key start
LH: loop header
LB: loop body
LE: loop exit
PB: predicated region body
PF: predicated region fallthrough
CT: control target
= control target key end

     0   :  { %vm189_vm0 = vcmask 130048   ;;  %vm417_vm1 = vcmask 261120   ;;  %vm661_vm2 = vcmask 523264   ;;  %vm879_vm3 = vsmask.f32 7424  ;;  %s6136_s1 = inlined_call_operand.vmem [shape: bf16[16,32], index: 1, kind: input, shape index: {}]   ;;  %s6137_s0 = inlined_call_operand.vmem [shape: bf16[288,16], index: 0, kind: input, shape index: {}]   ;;  %s6138_s2 = inlined_call_operand.vmem [shape: f32[1,32], index: 2, kind: input, shape index: {}]   ;;  %s6139_s3 = inlined_call_operand.vmem [shape: bf16[32,64], index: 3, kind: input, shape index: {}]   ;;  %s6140_s4 = inlined_call_operand.vmem [shape: f32[1,64], index: 4, kind: input, shape index: {}]   ;;  %s6141_s5 = inlined_call_operand.vmem [shape: bf16[64,32], index: 5, kind: input, shape index: {}]   ;;  %s6142_s6 = inlined_call_operand.vmem [shape: f32[1,32], index: 6, kind: input, shape index: {}]   ;;  %s6143_s7 = inlined_call_operand.vmem [shape: bf16[4,32,16], index: 7, kind: input, shape index: {}]   ;;  %s6144_s9 = inlined_call_operand.vmem [shape: bf16[4,16,8], index: 9, kind: input, shape index: {}]   ;;  %s6145_s8 = inlined_call_operand.vmem [shape: f32[1,16], index: 8, kind: input, shape index: {}]   ;;  %s6146_s11 = inlined_call_operand.vmem [shape: bf16[8,8], index: 11, kind: input, shape index: {}]   ;;  %s6147_s10 = inlined_call_operand.vmem [shape: f32[1,8], index: 10, kind: input, shape index: {}]   ;;  %s6148_s13 = inlined_call_operand.vmem [shape: bf16[8,4], index: 13, kind: input, shape index: {}]   ;;  %s6149_s12 = inlined_call_operand.vmem [shape: f32[1,8], index: 12, kind: input, shape index: {}]   ;;  %s6150_s14 = inlined_call_operand.vmem [shape: f32[1,4], index: 14, kind: input, shape index: {}]   ;;  %s6151_s15 = inlined_call_operand.vmem [shape: f32[288,4], index: 15, kind: output, shape index: {}]  }
   0x1   :  { %v4505_v0 = vld [vmem:[%s6136_s1] sm:$0xff]  ;;  %v4488_v2 = vld [vmem:[%s6137_s0 + $0x8] sm:$0xff]  ;;  %v4489_v5 = vld [vmem:[%s6137_s0 + $0x10] sm:$0xff]  ;;  %vm1382_vm4 = vcmask 1045504   ;;  %vm1626_vm5 = vsmask.f32 5376 }
   0x2   :  { %v4487_v1 = vld [vmem:[%s6137_s0] sm:$0xff]  ;;  %251 = vmatpush.bf16.msra.mxu0 %v4505_v0  ;;  %4524 = vmatpush.bf16.msra.mxu1 %v4505_v0  ;;  %v4492_v3 = vld [vmem:[%s6137_s0 + $0x28] sm:$0xff]  ;;  %v4493_v6 = vld [vmem:[%s6137_s0 + $0x30] sm:$0xff]  ;;  %vm3469_vm6 = vcmask 1043456   ;;  %vm3281_vm7 = vcmask 1046528   ;;  %vm3638_vm8 = vcmask 64512  }
   0x3   :  { %4525 = vmatpush.bf16.msra.mxu2 %v4505_v0  ;;  %4526 = vmatpush.bf16.msra.mxu3 %v4505_v0  ;;  %v4507_v4 = vld [vmem:[%s6139_s3 + $0x8] sm:$0xff]  ;;  %v4506_v7 = vld [vmem:[%s6139_s3] sm:$0xff]  ;;  %v4490_v8 = vld [vmem:[%s6137_s0 + $0x18] sm:$0xff]  ;;  %vm4046_vm9 = vcmask 31744  }
   0x4   :  { %v4494_v9 = vld [vmem:[%s6137_s0 + $0x38] sm:$0xff]  ;;  %v4491_v10 = vld [vmem:[%s6137_s0 + $0x20] sm:$0xff]  ;;  %v4496_v12 = vld [vmem:[%s6137_s0 + $0x48] sm:$0xff] }
   0x5   :  { %4163 = vmatmul.msk.bf16.vlgmr.msra.gmra.mxu0 %vm189_vm0, %v4487_v1  ;;  %4168 = vmatmul.msk.bf16.vlgmr.msra.gmra.mxu1 %vm189_vm0, %v4492_v3  ;;  %v4495_v11 = vld [vmem:[%s6137_s0 + $0x40] sm:$0xff]  ;;  %v4497_v13 = vld [vmem:[%s6137_s0 + $0x50] sm:$0xff]  ;;  %v4498_v16 = vld [vmem:[%s6137_s0 + $0x58] sm:$0xff] }
   0x6   :  { %478 = vmatpush.bf16.msrb.mxu1 %v4507_v4  ;;  %4173 = vmatmul.msk.bf16.vlgmr.msra.gmra.mxu2 %vm189_vm0, %v4497_v13  ;;  %v4679_v15 = vld [vmem:[%s6138_s2] ss:$0 sm:$0xff]  ;;  %v4500_v32 = vld [vmem:[%s6137_s0 + $0x68] sm:$0xff]  ;;  %v4501_v41 = vld [vmem:[%s6137_s0 + $0x70] sm:$0xff] }
   0x7   :  { %v4499_v24 = vld [vmem:[%s6137_s0 + $0x60] sm:$0xff]  ;;  %4176 = vmatmul.msk.bf16.vlgmr.msra.gmra.mxu3 %vm189_vm0, %v4500_v32  ;;  %v4511_v50 = vld [vmem:[%s6141_s5 + $0x18] sm:$0xff]  ;;  %v4510_v60 = vld [vmem:[%s6141_s5 + $0x10] sm:$0xff] }
   0x8   :  { %v4502_v52 = vld [vmem:[%s6137_s0 + $0x78] sm:$0xff]  ;;  %720 = vmatpush.bf16.msrb.mxu2 %v4511_v50  ;;  %v4503_v61 = vld [vmem:[%s6137_s0 + $0x80] sm:$0xff] }
   0x9   :  { %v4508_v13 = vld [vmem:[%s6141_s5] sm:$0xff] }
   0xa   :  { %479 = vmatpush.bf16.msrb.mxu1 %v4506_v7 }
   0xc   :  { %721 = vmatpush.bf16.msrb.mxu2 %v4510_v60 }
  0x15   :  { %4164 = vmatmul.msk.bf16.gmra.mxu0 %vm189_vm0, %v4488_v2  ;;  %4169 = vmatmul.msk.bf16.gmra.mxu1 %vm189_vm0, %v4493_v6  ;;  %v4504_v6 = vld [vmem:[%s6137_s0 + $0x88] sm:$0xff] }
  0x16   :  { %4174 = vmatmul.msk.bf16.gmra.mxu2 %vm189_vm0, %v4498_v16 }
  0x17   :  { %4177 = vmatmul.msk.bf16.gmra.mxu3 %vm189_vm0, %v4501_v41 }
  0x25   :  { %4165 = vmatmul.msk.bf16.gmra.mxu0 %vm189_vm0, %v4489_v5  ;;  %4170 = vmatmul.msk.bf16.gmra.mxu1 %vm189_vm0, %v4494_v9  ;;  %v4509_v5 = vld [vmem:[%s6141_s5 + $0x8] sm:$0xff] }
  0x26   :  { %4175 = vmatmul.msk.bf16.gmra.mxu2 %vm189_vm0, %v4499_v24 }
  0x27   :  { %4178 = vmatmul.msk.bf16.gmra.mxu3 %vm189_vm0, %v4502_v52  ;;  %722 = vmatpush.bf16.msrb.mxu2 %v4509_v5 }
  0x2b   :  { %723 = vmatpush.bf16.msrb.mxu2 %v4508_v13 }
  0x35   :  { %4166 = vmatmul.msk.bf16.gmra.mxu0 %vm189_vm0, %v4490_v8  ;;  %4171 = vmatmul.msk.bf16.gmra.mxu1 %vm189_vm0, %v4495_v11 }
  0x37   :  { %4179 = vmatmul.msk.bf16.gmra.mxu3 %vm189_vm0, %v4503_v61 }
  0x45   :  { %4167 = vmatmul.msk.bf16.gmra.mxu0 %vm189_vm0, %v4491_v10  ;;  %4172 = vmatmul.msk.bf16.gmra.mxu1 %vm189_vm0, %v4496_v12 }
  0x47   :  { %4180 = vmatmul.msk.bf16.gmra.mxu3 %vm189_vm0, %v4504_v6 }
  0x82   :  { %v253_v14 = vpop.f32.mrf.mxu0  ;;  %v278_v36 = vpop.f32.mrf.mxu1 }
  0x83   :  { %v254_v17 = vadd.f32 %v4679_v15, %v253_v14  ;;  %v279_v63 = vadd.f32 %v4679_v15, %v278_v36 }
  0x85   :  { %v343_v20 = vmax.f32 %v254_v17, 0.0  ;;  %v353_v1 = vmax.f32 %v279_v63, 0.0 }
  0x8a   :  { %v255_v18 = vpop.f32.mrf.mxu0  ;;  %v280_v42 = vpop.f32.mrf.mxu1 }
  0x8b   :  { %v256_v19 = vadd.f32 %v4679_v15, %v255_v18  ;;  %v281_v0 = vadd.f32 %v4679_v15, %v280_v42 }
  0x8d   :  { %v344_v21 = vmax.f32 %v256_v19, 0.0  ;;  %v354_v2 = vmax.f32 %v281_v0, 0.0 }
  0x8f   :  { %v379_v22 = vpack.c.bf16 %v344_v21, %v343_v20  ;;  %v384_v4 = vpack.c.bf16 %v354_v2, %v353_v1  ;;  %v318_v2 = vpop.f32.mrf.mxu3 }
  0x91   :  { %4189 = vmatmul.msk.bf16.vlgmr.msrb.gmra.mxu1 %vm417_vm1, %v379_v22 }
  0x92   :  { %v258_v23 = vpop.f32.mrf.mxu0  ;;  %v283_v49 = vpop.f32.mrf.mxu1 }
  0x93   :  { %v259_v25 = vadd.f32 %v4679_v15, %v258_v23  ;;  %v284_v7 = vadd.f32 %v4679_v15, %v283_v49 }
  0x95   :  { %v345_v28 = vmax.f32 %v259_v25, 0.0  ;;  %v355_v10 = vmax.f32 %v284_v7, 0.0 }
  0x9a   :  { %v260_v26 = vpop.f32.mrf.mxu0  ;;  %v285_v55 = vpop.f32.mrf.mxu1 }
  0x9b   :  { %v261_v27 = vadd.f32 %v4679_v15, %v260_v26  ;;  %v286_v8 = vadd.f32 %v4679_v15, %v285_v55 }
  0x9d   :  { %v346_v29 = vmax.f32 %v261_v27, 0.0  ;;  %v356_v11 = vmax.f32 %v286_v8, 0.0 }
  0x9f   :  { %v380_v30 = vpack.c.bf16 %v346_v29, %v345_v28  ;;  %v385_v12 = vpack.c.bf16 %v356_v11, %v355_v10  ;;  %v4750_v29 = vld [vmem:[%s6140_s4] ss:$0 sm:$0xff] }
  0xa1   :  { %4190 = vmatmul.msk.bf16.gmra.mxu1 %vm417_vm1, %v380_v30  ;;  %v303_v30 = vpop.f32.mrf.mxu2 }
  0xa2   :  { %v263_v31 = vpop.f32.mrf.mxu0  ;;  %v288_v62 = vpop.f32.mrf.mxu1 }
  0xa3   :  { %v264_v33 = vadd.f32 %v4679_v15, %v263_v31  ;;  %v289_v16 = vadd.f32 %v4679_v15, %v288_v62 }
  0xa5   :  { %v347_v37 = vmax.f32 %v264_v33, 0.0  ;;  %v357_v18 = vmax.f32 %v289_v16, 0.0 }
  0xa9   :  { %v305_v41 = vpop.f32.mrf.mxu2 }
  0xaa   :  { %v265_v34 = vpop.f32.mrf.mxu0  ;;  %v290_v3 = vpop.f32.mrf.mxu1 }
  0xab   :  { %v266_v35 = vadd.f32 %v4679_v15, %v265_v34  ;;  %v291_v17 = vadd.f32 %v4679_v15, %v290_v3 }
  0xad   :  { %v348_v38 = vmax.f32 %v266_v35, 0.0  ;;  %v358_v19 = vmax.f32 %v291_v17, 0.0 }
  0xaf   :  { %v381_v39 = vpack.c.bf16 %v348_v38, %v347_v37  ;;  %v386_v21 = vpack.c.bf16 %v358_v19, %v357_v18 }
  0xb1   :  { %4191 = vmatmul.msk.bf16.gmra.mxu1 %vm417_vm1, %v381_v39 }
  0xb2   :  { %v268_v40 = vpop.f32.mrf.mxu0  ;;  %v293_v9 = vpop.f32.mrf.mxu1 }
  0xb3   :  { %v269_v43 = vadd.f32 %v4679_v15, %v268_v40  ;;  %v294_v23 = vadd.f32 %v4679_v15, %v293_v9  ;;  %v320_v9 = vpop.f32.mrf.mxu3 }
  0xb5   :  { %v349_v46 = vmax.f32 %v269_v43, 0.0  ;;  %v359_v25 = vmax.f32 %v294_v23, 0.0 }
  0xba   :  { %v270_v44 = vpop.f32.mrf.mxu0  ;;  %v295_v14 = vpop.f32.mrf.mxu1 }
  0xbb   :  { %v271_v45 = vadd.f32 %v4679_v15, %v270_v44  ;;  %v296_v24 = vadd.f32 %v4679_v15, %v295_v14 }
  0xbd   :  { %v350_v47 = vmax.f32 %v271_v45, 0.0  ;;  %v360_v26 = vmax.f32 %v296_v24, 0.0  ;;  %v4515_v24 = vld [vmem:[%s6143_s7 + $0x18] sm:$0xff] }
  0xbe   :  { %1100 = vmatpush.bf16.msrb.mxu3 %v4515_v24 }
  0xbf   :  { %v382_v48 = vpack.c.bf16 %v350_v47, %v349_v46  ;;  %v387_v28 = vpack.c.bf16 %v360_v26, %v359_v25  ;;  %v308_v46 = vpop.f32.mrf.mxu2  ;;  %v304_v47 = vadd.f32 %v4679_v15, %v303_v30 }
  0xc0   :  { %v309_v60 = vadd.f32 %v4679_v15, %v308_v46 }
  0xc1   :  { %4192 = vmatmul.msk.bf16.gmra.mxu1 %vm417_vm1, %v382_v48  ;;  %v306_v48 = vadd.f32 %v4679_v15, %v305_v41  ;;  %v363_v52 = vmax.f32 %v304_v47, 0.0 }
  0xc2   :  { %v273_v51 = vpop.f32.mrf.mxu0  ;;  %v298_v20 = vpop.f32.mrf.mxu1  ;;  %v365_v3 = vmax.f32 %v309_v60, 0.0 }
  0xc3   :  { %v274_v53 = vadd.f32 %v4679_v15, %v273_v51  ;;  %v299_v33 = vadd.f32 %v4679_v15, %v298_v20 }
  0xc5   :  { %v351_v57 = vmax.f32 %v274_v53, 0.0  ;;  %v361_v38 = vmax.f32 %v299_v33, 0.0  ;;  %v364_v53 = vmax.f32 %v306_v48, 0.0 }
  0xca   :  { %v275_v54 = vpop.f32.mrf.mxu0  ;;  %v300_v22 = vpop.f32.mrf.mxu1 }
  0xcb   :  { %v276_v56 = vadd.f32 %v4679_v15, %v275_v54  ;;  %v301_v34 = vadd.f32 %v4679_v15, %v300_v22  ;;  %v323_v22 = vpop.f32.mrf.mxu3 }
  0xcd   :  { %v352_v58 = vmax.f32 %v276_v56, 0.0  ;;  %v362_v39 = vmax.f32 %v301_v34, 0.0  ;;  %v389_v56 = vpack.c.bf16 %v364_v53, %v363_v52 }
  0xcf   :  { %v383_v59 = vpack.c.bf16 %v352_v58, %v351_v57  ;;  %v388_v43 = vpack.c.bf16 %v362_v39, %v361_v38  ;;  %v310_v57 = vpop.f32.mrf.mxu2 }
  0xd0   :  { %v311_v61 = vadd.f32 %v4679_v15, %v310_v57 }
  0xd1   :  { %4193 = vmatmul.msk.bf16.gmra.mxu1 %vm417_vm1, %v383_v59 }
  0xd7   :  { %v313_v1 = vpop.f32.mrf.mxu2 }
  0xdf   :  { %v315_v8 = vpop.f32.mrf.mxu2 }
  0xe0   :  { %v316_v13 = vadd.f32 %v4679_v15, %v315_v8 }
  0xe1   :  { %4194 = vmatmul.msk.bf16.gmra.mxu1 %vm417_vm1, %v384_v4  ;;  %v366_v4 = vmax.f32 %v311_v61, 0.0  ;;  %v4514_v61 = vld [vmem:[%s6143_s7 + $0x10] sm:$0xff] }
  0xe2   :  { %v368_v19 = vmax.f32 %v316_v13, 0.0  ;;  %1101 = vmatpush.bf16.msrb.mxu3 %v4514_v61  ;;  %v4512_v13 = vld [vmem:[%s6143_s7] sm:$0xff] }
  0xe3   :  { %v390_v7 = vpack.c.bf16 %v366_v4, %v365_v3 }
  0xf1   :  { %4195 = vmatmul.msk.bf16.gmra.mxu1 %vm417_vm1, %v385_v12  ;;  %v314_v12 = vadd.f32 %v4679_v15, %v313_v1 }
  0xf3   :  { %v367_v18 = vmax.f32 %v314_v12, 0.0 }
  0xf5   :  { %v391_v23 = vpack.c.bf16 %v368_v19, %v367_v18 }
 0x101   :  { %4196 = vmatmul.msk.bf16.gmra.mxu1 %vm417_vm1, %v386_v21 }
 0x10e   :  { %v481_v27 = vpop.f32.mrf.mxu1 }
 0x10f   :  { %v482_v31 = vadd.f32 %v4750_v29, %v481_v27  ;;  %v319_v27 = vadd.f32 %v4679_v15, %v318_v2 }
 0x111   :  { %4197 = vmatmul.msk.bf16.gmra.mxu1 %vm417_vm1, %v387_v28  ;;  %v571_v36 = vmax.f32 %v482_v31, 0.0  ;;  %v321_v28 = vadd.f32 %v4679_v15, %v320_v9  ;;  %v325_v31 = vpop.f32.mrf.mxu3  ;;  %v369_v34 = vmax.f32 %v319_v27, 0.0 }
 0x116   :  { %v483_v32 = vpop.f32.mrf.mxu1 }
 0x117   :  { %v484_v35 = vadd.f32 %v4750_v29, %v483_v32 }
 0x119   :  { %v572_v37 = vmax.f32 %v484_v35, 0.0  ;;  %v370_v35 = vmax.f32 %v321_v28, 0.0  ;;  %v328_v39 = vpop.f32.mrf.mxu3 }
 0x11b   :  { %v607_v40 = vpack.c.bf16 %v572_v37, %v571_v36  ;;  %v392_v38 = vpack.c.bf16 %v370_v35, %v369_v34  ;;  %v4517_v35 = vld [vmem:[%s6143_s7 + $0x28] sm:$0xff] }
 0x11c   :  { %1492 = vmatpush.bf16.msra.mxu1 %v4517_v35 }
 0x11d   :  { %4223 = vmatmul.msk.bf16.vlgmr.msrb.gmra.mxu2 %vm661_vm2, %v607_v40 }
 0x11e   :  { %v486_v42 = vpop.f32.mrf.mxu1 }
 0x11f   :  { %v487_v44 = vadd.f32 %v4750_v29, %v486_v42  ;;  %v324_v42 = vadd.f32 %v4679_v15, %v323_v22 }
 0x121   :  { %4198 = vmatmul.msk.bf16.gmra.mxu1 %vm417_vm1, %v388_v43  ;;  %v573_v50 = vmax.f32 %v487_v44, 0.0  ;;  %v326_v43 = vadd.f32 %v4679_v15, %v325_v31  ;;  %v371_v47 = vmax.f32 %v324_v42, 0.0 }
 0x123   :  { %v372_v48 = vmax.f32 %v326_v43, 0.0 }
 0x125   :  { %v393_v52 = vpack.c.bf16 %v372_v48, %v371_v47  ;;  %v4519_v48 = vld [vmem:[%s6143_s7 + $0x38] sm:$0xff] }
 0x126   :  { %v488_v45 = vpop.f32.mrf.mxu1  ;;  %1866 = vmatpush.bf16.msra.mxu3 %v4519_v48 }
 0x127   :  { %v489_v49 = vadd.f32 %v4750_v29, %v488_v45 }
 0x129   :  { %v574_v51 = vmax.f32 %v489_v49, 0.0 }
 0x12b   :  { %v608_v54 = vpack.c.bf16 %v574_v51, %v573_v50  ;;  %v330_v50 = vpop.f32.mrf.mxu3 }
 0x12c   :  { %v331_v57 = vadd.f32 %v4679_v15, %v330_v50 }
 0x12d   :  { %4224 = vmatmul.msk.bf16.gmra.mxu2 %vm661_vm2, %v608_v54 }
 0x12e   :  { %v491_v55 = vpop.f32.mrf.mxu1 }
 0x12f   :  { %v492_v58 = vadd.f32 %v4750_v29, %v491_v55 }
 0x131   :  { %4199 = vmatmul.msk.bf16.gmra.mxu1 %vm417_vm1, %v389_v56  ;;  %v575_v63 = vmax.f32 %v492_v58, 0.0  ;;  %v329_v56 = vadd.f32 %v4679_v15, %v328_v39 }
 0x133   :  { %v333_v55 = vpop.f32.mrf.mxu3 }
 0x136   :  { %v493_v59 = vpop.f32.mrf.mxu1 }
 0x137   :  { %v494_v62 = vadd.f32 %v4750_v29, %v493_v59 }
 0x139   :  { %v576_v0 = vmax.f32 %v494_v62, 0.0  ;;  %v373_v62 = vmax.f32 %v329_v56, 0.0 }
 0x13b   :  { %v609_v5 = vpack.c.bf16 %v576_v0, %v575_v63  ;;  %v374_v63 = vmax.f32 %v331_v57, 0.0  ;;  %v335_v3 = vpop.f32.mrf.mxu3 }
 0x13c   :  { %v336_v8 = vadd.f32 %v4679_v15, %v335_v3 }
 0x13d   :  { %4225 = vmatmul.msk.bf16.gmra.mxu2 %vm661_vm2, %v609_v5  ;;  %v394_v2 = vpack.c.bf16 %v374_v63, %v373_v62 }
 0x13e   :  { %v496_v6 = vpop.f32.mrf.mxu1 }
 0x13f   :  { %v497_v10 = vadd.f32 %v4750_v29, %v496_v6  ;;  %v4513_v6 = vld [vmem:[%s6143_s7 + $0x8] sm:$0xff] }
 0x140   :  { %1247 = vmatpush.bf16.msrb.mxu0 %v4513_v6 }
 0x141   :  { %4200 = vmatmul.msk.bf16.gmra.mxu1 %vm417_vm1, %v390_v7  ;;  %v577_v16 = vmax.f32 %v497_v10, 0.0  ;;  %v334_v7 = vadd.f32 %v4679_v15, %v333_v55 }
 0x143   :  { %v338_v12 = vpop.f32.mrf.mxu3 }
 0x144   :  { %1248 = vmatpush.bf16.msrb.mxu0 %v4512_v13 }
 0x146   :  { %v498_v11 = vpop.f32.mrf.mxu1 }
 0x147   :  { %v499_v14 = vadd.f32 %v4750_v29, %v498_v11 }
 0x149   :  { %v578_v17 = vmax.f32 %v499_v14, 0.0  ;;  %v375_v14 = vmax.f32 %v334_v7, 0.0 }
 0x14b   :  { %v610_v20 = vpack.c.bf16 %v578_v17, %v577_v16  ;;  %v376_v16 = vmax.f32 %v336_v8, 0.0 }
 0x14d   :  { %4226 = vmatmul.msk.bf16.gmra.mxu2 %vm661_vm2, %v610_v20  ;;  %v395_v19 = vpack.c.bf16 %v376_v16, %v375_v14  ;;  %v340_v20 = vpop.f32.mrf.mxu3 }
 0x14e   :  { %v501_v21 = vpop.f32.mrf.mxu1  ;;  %v341_v24 = vadd.f32 %v4679_v15, %v340_v20 }
 0x14f   :  { %v502_v25 = vadd.f32 %v4750_v29, %v501_v21 }
 0x151   :  { %4201 = vmatmul.msk.bf16.gmra.mxu1 %vm417_vm1, %v391_v23  ;;  %v579_v32 = vmax.f32 %v502_v25, 0.0  ;;  %v339_v23 = vadd.f32 %v4679_v15, %v338_v12  ;;  %v4825_v15 = vld [vmem:[%s6142_s6] ss:$0 sm:$0xff] }
 0x153   :  { %v377_v28 = vmax.f32 %v339_v23, 0.0 }
 0x156   :  { %v503_v26 = vpop.f32.mrf.mxu1 }
 0x157   :  { %v504_v30 = vadd.f32 %v4750_v29, %v503_v26 }
 0x159   :  { %v580_v33 = vmax.f32 %v504_v30, 0.0  ;;  %v378_v30 = vmax.f32 %v341_v24, 0.0 }
 0x15b   :  { %v611_v36 = vpack.c.bf16 %v580_v33, %v579_v32  ;;  %v396_v33 = vpack.c.bf16 %v378_v30, %v377_v28 }
 0x15d   :  { %4227 = vmatmul.msk.bf16.gmra.mxu2 %vm661_vm2, %v611_v36 }
 0x15e   :  { %v506_v37 = vpop.f32.mrf.mxu1 }
 0x15f   :  { %v507_v40 = vadd.f32 %v4750_v29, %v506_v37  ;;  %v4516_v37 = vld [vmem:[%s6143_s7 + $0x20] sm:$0xff] }
 0x160   :  { %1493 = vmatpush.bf16.msra.mxu1 %v4516_v37 }
 0x161   :  { %4202 = vmatmul.msk.bf16.gmra.mxu1 %vm417_vm1, %v392_v38  ;;  %v581_v45 = vmax.f32 %v507_v40, 0.0 }
 0x166   :  { %v508_v41 = vpop.f32.mrf.mxu1 }
 0x167   :  { %v509_v44 = vadd.f32 %v4750_v29, %v508_v41 }
 0x169   :  { %v582_v46 = vmax.f32 %v509_v44, 0.0 }
 0x16b   :  { %v612_v49 = vpack.c.bf16 %v582_v46, %v581_v45 }
 0x16d   :  { %4228 = vmatmul.msk.bf16.gmra.mxu2 %vm661_vm2, %v612_v49 }
 0x16e   :  { %v511_v51 = vpop.f32.mrf.mxu1 }
 0x16f   :  { %v512_v53 = vadd.f32 %v4750_v29, %v511_v51 }
 0x171   :  { %4203 = vmatmul.msk.bf16.gmra.mxu1 %vm417_vm1, %v393_v52  ;;  %v583_v59 = vmax.f32 %v512_v53, 0.0 }
 0x176   :  { %v513_v54 = vpop.f32.mrf.mxu1 }
 0x177   :  { %v514_v58 = vadd.f32 %v4750_v29, %v513_v54 }
 0x179   :  { %v584_v60 = vmax.f32 %v514_v58, 0.0 }
 0x17b   :  { %v613_v0 = vpack.c.bf16 %v584_v60, %v583_v59 }
 0x17d   :  { %4229 = vmatmul.msk.bf16.gmra.mxu2 %vm661_vm2, %v613_v0 }
 0x17e   :  { %v516_v1 = vpop.f32.mrf.mxu1 }
 0x17f   :  { %v517_v4 = vadd.f32 %v4750_v29, %v516_v1 }
 0x181   :  { %4204 = vmatmul.msk.bf16.gmra.mxu1 %vm417_vm1, %v394_v2  ;;  %v585_v10 = vmax.f32 %v517_v4, 0.0 }
 0x186   :  { %v518_v5 = vpop.f32.mrf.mxu1 }
 0x187   :  { %v519_v9 = vadd.f32 %v4750_v29, %v518_v5 }
 0x189   :  { %v586_v11 = vmax.f32 %v519_v9, 0.0 }
 0x18b   :  { %v614_v17 = vpack.c.bf16 %v586_v11, %v585_v10 }
 0x18d   :  { %4230 = vmatmul.msk.bf16.gmra.mxu2 %vm661_vm2, %v614_v17 }
 0x18e   :  { %v521_v18 = vpop.f32.mrf.mxu1 }
 0x18f   :  { %v522_v21 = vadd.f32 %v4750_v29, %v521_v18 }
 0x191   :  { %4205 = vmatmul.msk.bf16.gmra.mxu1 %vm417_vm1, %v395_v19  ;;  %v587_v26 = vmax.f32 %v522_v21, 0.0 }
 0x196   :  { %v523_v22 = vpop.f32.mrf.mxu1 }
 0x197   :  { %v524_v25 = vadd.f32 %v4750_v29, %v523_v22 }
 0x199   :  { %v588_v27 = vmax.f32 %v524_v25, 0.0 }
 0x19b   :  { %v615_v31 = vpack.c.bf16 %v588_v27, %v587_v26 }
 0x19d   :  { %4231 = vmatmul.msk.bf16.gmra.mxu2 %vm661_vm2, %v615_v31 }
 0x19e   :  { %v526_v32 = vpop.f32.mrf.mxu1 }
 0x19f   :  { %v527_v36 = vadd.f32 %v4750_v29, %v526_v32 }
 0x1a0   :  { %v725_v34 = vpop.f32.mrf.mxu2 }
 0x1a1   :  { %4206 = vmatmul.msk.bf16.gmra.mxu1 %vm417_vm1, %v396_v33  ;;  %v726_v39 = vadd.f32 %v4825_v15, %v725_v34  ;;  %v589_v42 = vmax.f32 %v527_v36, 0.0 }
 0x1a3   :  { %v815_v45 = vmax.f32 %v726_v39, 0.0 }
 0x1a6   :  { %v528_v38 = vpop.f32.mrf.mxu1 }
 0x1a7   :  { %v529_v40 = vadd.f32 %v4750_v29, %v528_v38 }
 0x1a8   :  { %v727_v41 = vpop.f32.mrf.mxu2 }
 0x1a9   :  { %v590_v43 = vmax.f32 %v529_v40, 0.0  ;;  %v728_v44 = vadd.f32 %v4825_v15, %v727_v41 }
 0x1ab   :  { %v616_v46 = vpack.c.bf16 %v590_v43, %v589_v42  ;;  %v816_v47 = vmax.f32 %v728_v44, 0.0 }
 0x1ad   :  { %v851_v49 = vpack.c.bf16 %v816_v47, %v815_v45  ;;  %4232 = vmatmul.msk.bf16.gmra.mxu2 %vm661_vm2, %v616_v46 }
 0x1ae   :  { %v531_v50 = vpop.f32.mrf.mxu1 }
 0x1af   :  { %4279 = vmatmul.msk.bf16.vlgmr.msrb.gmra.mxu0 %vm417_vm1, %v851_v49  ;;  %v532_v52 = vadd.f32 %v4750_v29, %v531_v50  ;;  %v883_v57 = vshll.u32 %v851_v49, 16  ;;  %v881_v4 = vshrl.u32 %v851_v49, 16 }
 0x1b0   :  { %v730_v51 = vpop.f32.mrf.mxu2 }
 0x1b1   :  { %v731_v53 = vadd.f32 %v4825_v15, %v730_v51  ;;  %v591_v58 = vmax.f32 %v532_v52, 0.0  ;;  %v885_v0 = vrot.slane %v883_v57, 1 }
 0x1b3   :  { %v817_v61 = vmax.f32 %v731_v53, 0.0  ;;  %v886_v8 = vor.u32 %v885_v0, %v881_v4 }
 0x1b5   :  { %v1340_v2 = vpack.c.bf16 %v817_v61, %v816_v47 }
 0x1b6   :  { %v533_v54 = vpop.f32.mrf.mxu1 }
 0x1b7   :  { %v534_v55 = vadd.f32 %v4750_v29, %v533_v54  ;;  %v1628_v10 = vshrl.u32 %v1340_v2, 16  ;;  %v1631_v11 = vshll.u32 %v1340_v2, 16  ;;  %v1383_v24 = vrot.slane %v1340_v2, 2 }
 0x1b8   :  { %v732_v56 = vpop.f32.mrf.mxu2 }
 0x1b9   :  { %v592_v59 = vmax.f32 %v534_v55, 0.0  ;;  %v733_v60 = vadd.f32 %v4825_v15, %v732_v56  ;;  %v1630_v17 = vrot.slane %v1628_v10, 2  ;;  %v1633_v18 = vrot.slane %v1631_v11, 3 }
 0x1bb   :  { %v617_v62 = vpack.c.bf16 %v592_v59, %v591_v58  ;;  %v818_v63 = vmax.f32 %v733_v60, 0.0  ;;  %v1634_v33 = vor.u32 %v1633_v18, %v1630_v17 }
 0x1bd   :  { %4233 = vmatmul.msk.bf16.gmra.mxu2 %vm661_vm2, %v617_v62  ;;  %v852_v1 = vpack.c.bf16 %v818_v63, %v817_v61 }
 0x1be   :  { %v536_v3 = vpop.f32.mrf.mxu1 }
 0x1bf   :  { %4280 = vmatmul.msk.bf16.gmra.mxu0 %vm417_vm1, %v852_v1  ;;  %v888_v5 = vshll.u32 %v852_v1, 16  ;;  %v537_v14 = vadd.f32 %v4750_v29, %v536_v3  ;;  %v892_v40 = vshrl.u32 %v852_v1, 16 }
 0x1c0   :  { %v735_v6 = vpop.f32.mrf.mxu2 }
 0x1c1   :  { %v736_v7 = vadd.f32 %v4825_v15, %v735_v6  ;;  %v890_v9 = vrot.slane %v888_v5, 1  ;;  %v593_v25 = vmax.f32 %v537_v14, 0.0 }
 0x1c3   :  { %v819_v12 = vmax.f32 %v736_v7, 0.0  ;;  %v891_v13 = vsel %vm879_vm3, %v886_v8, %v890_v9  ;;  %v894_v44 = vor.u32 %v892_v40, %v890_v9 }
 0x1c4   :  { %4253 = vmatmul.msk.bf16.vlgmr.msrb.gmra.mxu3 %vm417_vm1, %v891_v13 }
 0x1c5   :  { %v1341_v16 = vpack.c.bf16 %v819_v12, %v818_v63 }
 0x1c6   :  { %v538_v19 = vpop.f32.mrf.mxu1 }
 0x1c7   :  { %v1384_v20 = vrot.slane %v1341_v16, 2  ;;  %v1636_v21 = vshrl.u32 %v1341_v16, 16  ;;  %v1639_v22 = vshll.u32 %v1341_v16, 16  ;;  %v539_v23 = vadd.f32 %v4750_v29, %v538_v19 }
 0x1c8   :  { %v737_v26 = vpop.f32.mrf.mxu2 }
 0x1c9   :  { %v1638_v27 = vrot.slane %v1636_v21, 2  ;;  %v1641_v28 = vrot.slane %v1639_v22, 3  ;;  %v594_v30 = vmax.f32 %v539_v23, 0.0  ;;  %v738_v31 = vadd.f32 %v4825_v15, %v737_v26 }
 0x1ca   :  { %v1385_v32 = vsel %vm1382_vm4, %v1383_v24, %v1384_v20 }
 0x1cb   :  { %v1642_v34 = vor.u32 %v1641_v28, %v1638_v27  ;;  %v618_v35 = vpack.c.bf16 %v594_v30, %v593_v25  ;;  %v820_v36 = vmax.f32 %v738_v31, 0.0  ;;  %4309 = vmatmul.msk.bf16.vlgmr.msra.gmra.mxu1 %vm417_vm1, %v1385_v32 }
 0x1cd   :  { %4234 = vmatmul.msk.bf16.gmra.mxu2 %vm661_vm2, %v618_v35  ;;  %v853_v37 = vpack.c.bf16 %v820_v36, %v819_v12  ;;  %v4855_v38 = vsel %vm1626_vm5, %v1634_v33, %v1642_v34 }
 0x1ce   :  { %v541_v39 = vpop.f32.mrf.mxu1 }
 0x1cf   :  { %4281 = vmatmul.msk.bf16.gmra.mxu0 %vm417_vm1, %v853_v37  ;;  %v896_v41 = vshll.u32 %v853_v37, 16  ;;  %v542_v48 = vadd.f32 %v4750_v29, %v541_v39  ;;  %v900_v4 = vshrl.u32 %v853_v37, 16 }
 0x1d0   :  { %v740_v42 = vpop.f32.mrf.mxu2 }
 0x1d1   :  { %v741_v43 = vadd.f32 %v4825_v15, %v740_v42  ;;  %v898_v45 = vrot.slane %v896_v41, 1  ;;  %v595_v55 = vmax.f32 %v542_v48, 0.0 }
 0x1d3   :  { %v821_v46 = vmax.f32 %v741_v43, 0.0  ;;  %v899_v47 = vsel %vm879_vm3, %v894_v44, %v898_v45  ;;  %v902_v8 = vor.u32 %v900_v4, %v898_v45 }
 0x1d4   :  { %4254 = vmatmul.msk.bf16.gmra.mxu3 %vm417_vm1, %v899_v47 }
 0x1d5   :  { %v1342_v49 = vpack.c.bf16 %v821_v46, %v820_v36 }
 0x1d6   :  { %v543_v50 = vpop.f32.mrf.mxu1 }
 0x1d7   :  { %v1386_v51 = vrot.slane %v1342_v49, 2  ;;  %v1645_v52 = vshrl.u32 %v1342_v49, 16  ;;  %v1648_v53 = vshll.u32 %v1342_v49, 16  ;;  %v544_v54 = vadd.f32 %v4750_v29, %v543_v50 }
 0x1d8   :  { %v742_v56 = vpop.f32.mrf.mxu2 }
 0x1d9   :  { %v1647_v57 = vrot.slane %v1645_v52, 2  ;;  %v1650_v58 = vrot.slane %v1648_v53, 3  ;;  %v596_v59 = vmax.f32 %v544_v54, 0.0  ;;  %v743_v60 = vadd.f32 %v4825_v15, %v742_v56 }
 0x1da   :  { %v1387_v61 = vsel %vm1382_vm4, %v1384_v20, %v1386_v51 }
 0x1db   :  { %v619_v62 = vpack.c.bf16 %v596_v59, %v595_v55  ;;  %v822_v63 = vmax.f32 %v743_v60, 0.0  ;;  %4310 = vmatmul.msk.bf16.gmra.mxu1 %vm417_vm1, %v1387_v61  ;;  %v1651_v0 = vor.u32 %v1650_v58, %v1647_v57 }
 0x1dd   :  { %4235 = vmatmul.msk.bf16.gmra.mxu2 %vm661_vm2, %v619_v62  ;;  %v854_v1 = vpack.c.bf16 %v822_v63, %v821_v46  ;;  %v4868_v2 = vsel %vm1626_vm5, %v1642_v34, %v1651_v0 }
 0x1de   :  { %v546_v3 = vpop.f32.mrf.mxu1 }
 0x1df   :  { %4282 = vmatmul.msk.bf16.gmra.mxu0 %vm417_vm1, %v854_v1  ;;  %v904_v5 = vshll.u32 %v854_v1, 16  ;;  %v547_v12 = vadd.f32 %v4750_v29, %v546_v3  ;;  %v908_v34 = vshrl.u32 %v854_v1, 16 }
 0x1e0   :  { %v745_v6 = vpop.f32.mrf.mxu2 }
 0x1e1   :  { %v746_v7 = vadd.f32 %v4825_v15, %v745_v6  ;;  %v906_v9 = vrot.slane %v904_v5, 1  ;;  %v597_v20 = vmax.f32 %v547_v12, 0.0 }
 0x1e3   :  { %v823_v10 = vmax.f32 %v746_v7, 0.0  ;;  %v907_v11 = vsel %vm879_vm3, %v902_v8, %v906_v9  ;;  %v910_v39 = vor.u32 %v908_v34, %v906_v9 }
 0x1e4   :  { %4255 = vmatmul.msk.bf16.gmra.mxu3 %vm417_vm1, %v907_v11 }
 0x1e5   :  { %v1343_v13 = vpack.c.bf16 %v823_v10, %v822_v63 }
 0x1e6   :  { %v548_v14 = vpop.f32.mrf.mxu1 }
 0x1e7   :  { %v1388_v16 = vrot.slane %v1343_v13, 2  ;;  %v1654_v17 = vshrl.u32 %v1343_v13, 16  ;;  %v1657_v18 = vshll.u32 %v1343_v13, 16  ;;  %v549_v19 = vadd.f32 %v4750_v29, %v548_v14 }
 0x1e8   :  { %v747_v21 = vpop.f32.mrf.mxu2 }
 0x1e9   :  { %v1656_v22 = vrot.slane %v1654_v17, 2  ;;  %v1659_v23 = vrot.slane %v1657_v18, 3  ;;  %v598_v24 = vmax.f32 %v549_v19, 0.0  ;;  %v748_v25 = vadd.f32 %v4825_v15, %v747_v21 }
 0x1ea   :  { %v1389_v26 = vsel %vm1382_vm4, %v1386_v51, %v1388_v16 }
 0x1eb   :  { %v620_v27 = vpack.c.bf16 %v598_v24, %v597_v20  ;;  %v824_v28 = vmax.f32 %v748_v25, 0.0  ;;  %4311 = vmatmul.msk.bf16.gmra.mxu1 %vm417_vm1, %v1389_v26  ;;  %v1660_v30 = vor.u32 %v1659_v23, %v1656_v22 }
 0x1ed   :  { %4236 = vmatmul.msk.bf16.gmra.mxu2 %vm661_vm2, %v620_v27  ;;  %v855_v31 = vpack.c.bf16 %v824_v28, %v823_v10  ;;  %v4881_v32 = vsel %vm1626_vm5, %v1651_v0, %v1660_v30 }
 0x1ee   :  { %v551_v33 = vpop.f32.mrf.mxu1 }
 0x1ef   :  { %4283 = vmatmul.msk.bf16.gmra.mxu0 %vm417_vm1, %v855_v31  ;;  %v912_v35 = vshll.u32 %v855_v31, 16  ;;  %v552_v43 = vadd.f32 %v4750_v29, %v551_v33  ;;  %v916_v63 = vshrl.u32 %v855_v31, 16 }
 0x1f0   :  { %v750_v36 = vpop.f32.mrf.mxu2 }
 0x1f1   :  { %v751_v37 = vadd.f32 %v4825_v15, %v750_v36  ;;  %v914_v40 = vrot.slane %v912_v35, 1  ;;  %v599_v50 = vmax.f32 %v552_v43, 0.0 }
 0x1f3   :  { %v825_v41 = vmax.f32 %v751_v37, 0.0  ;;  %v915_v42 = vsel %vm879_vm3, %v910_v39, %v914_v40  ;;  %v918_v4 = vor.u32 %v916_v63, %v914_v40 }
 0x1f4   :  { %4256 = vmatmul.msk.bf16.gmra.mxu3 %vm417_vm1, %v915_v42 }
 0x1f5   :  { %v1344_v44 = vpack.c.bf16 %v825_v41, %v824_v28 }
 0x1f6   :  { %v553_v45 = vpop.f32.mrf.mxu1 }
 0x1f7   :  { %v1390_v46 = vrot.slane %v1344_v44, 2  ;;  %v1663_v47 = vshrl.u32 %v1344_v44, 16  ;;  %v1666_v48 = vshll.u32 %v1344_v44, 16  ;;  %v554_v49 = vadd.f32 %v4750_v29, %v553_v45 }
 0x1f8   :  { %v752_v51 = vpop.f32.mrf.mxu2 }
 0x1f9   :  { %v1665_v52 = vrot.slane %v1663_v47, 2  ;;  %v1668_v53 = vrot.slane %v1666_v48, 3  ;;  %v600_v54 = vmax.f32 %v554_v49, 0.0  ;;  %v753_v55 = vadd.f32 %v4825_v15, %v752_v51 }
 0x1fa   :  { %v1391_v56 = vsel %vm1382_vm4, %v1388_v16, %v1390_v46 }
 0x1fb   :  { %v621_v57 = vpack.c.bf16 %v600_v54, %v599_v50  ;;  %v826_v58 = vmax.f32 %v753_v55, 0.0  ;;  %4312 = vmatmul.msk.bf16.gmra.mxu1 %vm417_vm1, %v1391_v56  ;;  %v1669_v59 = vor.u32 %v1668_v53, %v1665_v52 }
 0x1fd   :  { %4237 = vmatmul.msk.bf16.gmra.mxu2 %vm661_vm2, %v621_v57  ;;  %v856_v60 = vpack.c.bf16 %v826_v58, %v825_v41  ;;  %v4894_v61 = vsel %vm1626_vm5, %v1660_v30, %v1669_v59 }
 0x1fe   :  { %v556_v62 = vpop.f32.mrf.mxu1 }
 0x1ff   :  { %4284 = vmatmul.msk.bf16.gmra.mxu0 %vm417_vm1, %v856_v60  ;;  %v920_v0 = vshll.u32 %v856_v60, 16  ;;  %v557_v8 = vadd.f32 %v4750_v29, %v556_v62  ;;  %v924_v30 = vshrl.u32 %v856_v60, 16 }
 0x200   :  { %v755_v1 = vpop.f32.mrf.mxu2 }
 0x201   :  { %v756_v3 = vadd.f32 %v4825_v15, %v755_v1  ;;  %v922_v5 = vrot.slane %v920_v0, 1  ;;  %v601_v16 = vmax.f32 %v557_v8, 0.0 }
 0x203   :  { %v827_v6 = vmax.f32 %v756_v3, 0.0  ;;  %v923_v7 = vsel %vm879_vm3, %v918_v4, %v922_v5  ;;  %v926_v35 = vor.u32 %v924_v30, %v922_v5 }
 0x204   :  { %4257 = vmatmul.msk.bf16.gmra.mxu3 %vm417_vm1, %v923_v7 }
 0x205   :  { %v1345_v9 = vpack.c.bf16 %v827_v6, %v826_v58 }
 0x206   :  { %v558_v10 = vpop.f32.mrf.mxu1 }
 0x207   :  { %v1392_v11 = vrot.slane %v1345_v9, 2  ;;  %v1672_v12 = vshrl.u32 %v1345_v9, 16  ;;  %v1675_v13 = vshll.u32 %v1345_v9, 16  ;;  %v559_v14 = vadd.f32 %v4750_v29, %v558_v10 }
 0x208   :  { %v757_v17 = vpop.f32.mrf.mxu2 }
 0x209   :  { %v1674_v18 = vrot.slane %v1672_v12, 2  ;;  %v1677_v19 = vrot.slane %v1675_v13, 3  ;;  %v602_v20 = vmax.f32 %v559_v14, 0.0  ;;  %v758_v21 = vadd.f32 %v4825_v15, %v757_v17 }
 0x20a   :  { %v1393_v22 = vsel %vm1382_vm4, %v1390_v46, %v1392_v11 }
 0x20b   :  { %v622_v23 = vpack.c.bf16 %v602_v20, %v601_v16  ;;  %v828_v24 = vmax.f32 %v758_v21, 0.0  ;;  %4313 = vmatmul.msk.bf16.gmra.mxu1 %vm417_vm1, %v1393_v22  ;;  %v1678_v25 = vor.u32 %v1677_v19, %v1674_v18 }
 0x20d   :  { %4238 = vmatmul.msk.bf16.gmra.mxu2 %vm661_vm2, %v622_v23  ;;  %v857_v26 = vpack.c.bf16 %v828_v24, %v827_v6  ;;  %v4907_v27 = vsel %vm1626_vm5, %v1669_v59, %v1678_v25 }
 0x20e   :  { %v561_v28 = vpop.f32.mrf.mxu1 }
 0x20f   :  { %4285 = vmatmul.msk.bf16.gmra.mxu0 %vm417_vm1, %v857_v26  ;;  %v928_v31 = vshll.u32 %v857_v26, 16  ;;  %v562_v40 = vadd.f32 %v4750_v29, %v561_v28  ;;  %v932_v60 = vshrl.u32 %v857_v26, 16 }
 0x210   :  { %v760_v33 = vpop.f32.mrf.mxu2 }
 0x211   :  { %v761_v34 = vadd.f32 %v4825_v15, %v760_v33  ;;  %v930_v36 = vrot.slane %v928_v31, 1  ;;  %v603_v47 = vmax.f32 %v562_v40, 0.0 }
 0x213   :  { %v829_v37 = vmax.f32 %v761_v34, 0.0  ;;  %v931_v39 = vsel %vm879_vm3, %v926_v35, %v930_v36  ;;  %v934_v1 = vor.u32 %v932_v60, %v930_v36 }
 0x214   :  { %4258 = vmatmul.msk.bf16.gmra.mxu3 %vm417_vm1, %v931_v39 }
 0x215   :  { %v1346_v41 = vpack.c.bf16 %v829_v37, %v828_v24 }
 0x216   :  { %v563_v42 = vpop.f32.mrf.mxu1 }
 0x217   :  { %v1394_v43 = vrot.slane %v1346_v41, 2  ;;  %v1681_v44 = vshrl.u32 %v1346_v41, 16  ;;  %v1684_v45 = vshll.u32 %v1346_v41, 16  ;;  %v564_v46 = vadd.f32 %v4750_v29, %v563_v42 }
 0x218   :  { %v762_v48 = vpop.f32.mrf.mxu2 }
 0x219   :  { %v1683_v49 = vrot.slane %v1681_v44, 2  ;;  %v1686_v50 = vrot.slane %v1684_v45, 3  ;;  %v604_v51 = vmax.f32 %v564_v46, 0.0  ;;  %v763_v52 = vadd.f32 %v4825_v15, %v762_v48  ;;  %v4518_v48 = vld [vmem:[%s6143_s7 + $0x30] sm:$0xff] }
 0x21a   :  { %v1395_v53 = vsel %vm1382_vm4, %v1392_v11, %v1394_v43  ;;  %1867 = vmatpush.bf16.msra.mxu3 %v4518_v48 }
 0x21b   :  { %v623_v54 = vpack.c.bf16 %v604_v51, %v603_v47  ;;  %v830_v55 = vmax.f32 %v763_v52, 0.0  ;;  %4314 = vmatmul.msk.bf16.gmra.mxu1 %vm417_vm1, %v1395_v53  ;;  %v1687_v56 = vor.u32 %v1686_v50, %v1683_v49 }
 0x21d   :  { %v858_v57 = vpack.c.bf16 %v830_v55, %v829_v37  ;;  %4239 = vmatmul.msk.bf16.gmra.mxu2 %vm661_vm2, %v623_v54  ;;  %v4920_v58 = vsel %vm1626_vm5, %v1678_v25, %v1687_v56 }
 0x21e   :  { %v566_v59 = vpop.f32.mrf.mxu1 }
 0x21f   :  { %4286 = vmatmul.msk.bf16.gmra.mxu0 %vm417_vm1, %v858_v57  ;;  %v936_v62 = vshll.u32 %v858_v57, 16  ;;  %v567_v6 = vadd.f32 %v4750_v29, %v566_v59  ;;  %v940_v26 = vshrl.u32 %v858_v57, 16 }
 0x220   :  { %v765_v63 = vpop.f32.mrf.mxu2 }
 0x221   :  { %v766_v0 = vadd.f32 %v4825_v15, %v765_v63  ;;  %v938_v3 = vrot.slane %v936_v62, 1  ;;  %v605_v13 = vmax.f32 %v567_v6, 0.0 }
 0x223   :  { %v831_v4 = vmax.f32 %v766_v0, 0.0  ;;  %v939_v5 = vsel %vm879_vm3, %v934_v1, %v938_v3  ;;  %v942_v33 = vor.u32 %v940_v26, %v938_v3 }
 0x224   :  { %4259 = vmatmul.msk.bf16.gmra.mxu3 %vm417_vm1, %v939_v5 }
 0x225   :  { %v1347_v7 = vpack.c.bf16 %v831_v4, %v830_v55 }
 0x226   :  { %v568_v8 = vpop.f32.mrf.mxu1 }
 0x227   :  { %v1396_v9 = vrot.slane %v1347_v7, 2  ;;  %v1690_v10 = vshrl.u32 %v1347_v7, 16  ;;  %v1693_v11 = vshll.u32 %v1347_v7, 16  ;;  %v569_v12 = vadd.f32 %v4750_v29, %v568_v8 }
 0x228   :  { %v767_v14 = vpop.f32.mrf.mxu2 }
 0x229   :  { %v1692_v16 = vrot.slane %v1690_v10, 2  ;;  %v1695_v17 = vrot.slane %v1693_v11, 3  ;;  %v606_v18 = vmax.f32 %v569_v12, 0.0  ;;  %v768_v19 = vadd.f32 %v4825_v15, %v767_v14 }
 0x22a   :  { %v1397_v20 = vsel %vm1382_vm4, %v1394_v43, %v1396_v9 }
 0x22b   :  { %v624_v21 = vpack.c.bf16 %v606_v18, %v605_v13  ;;  %v832_v22 = vmax.f32 %v768_v19, 0.0  ;;  %4315 = vmatmul.msk.bf16.gmra.mxu1 %vm417_vm1, %v1397_v20  ;;  %v1696_v23 = vor.u32 %v1695_v17, %v1692_v16 }
 0x22c   :  { %v1250_v24 = vpop.f32.mrf.mxu0 }
 0x22d   :  { %v859_v25 = vpack.c.bf16 %v832_v22, %v831_v4  ;;  %4240 = vmatmul.msk.bf16.gmra.mxu2 %vm661_vm2, %v624_v21  ;;  %v4933_v29 = vsel %vm1626_vm5, %v1687_v56, %v1696_v23 }
 0x22f   :  { %4287 = vmatmul.msk.bf16.gmra.mxu0 %vm417_vm1, %v859_v25  ;;  %v944_v28 = vshll.u32 %v859_v25, 16  ;;  %v948_v54 = vshrl.u32 %v859_v25, 16 }
 0x230   :  { %v770_v30 = vpop.f32.mrf.mxu2 }
 0x231   :  { %v771_v31 = vadd.f32 %v4825_v15, %v770_v30  ;;  %v946_v34 = vrot.slane %v944_v28, 1 }
 0x233   :  { %v833_v35 = vmax.f32 %v771_v31, 0.0  ;;  %v947_v36 = vsel %vm879_vm3, %v942_v33, %v946_v34  ;;  %v950_v59 = vor.u32 %v948_v54, %v946_v34 }
 0x234   :  { %4260 = vmatmul.msk.bf16.gmra.mxu3 %vm417_vm1, %v947_v36  ;;  %v1252_v37 = vpop.f32.mrf.mxu0 }
 0x235   :  { %v1348_v39 = vpack.c.bf16 %v833_v35, %v832_v22 }
 0x237   :  { %v1398_v40 = vrot.slane %v1348_v39, 2  ;;  %v1699_v41 = vshrl.u32 %v1348_v39, 16  ;;  %v1702_v42 = vshll.u32 %v1348_v39, 16 }
 0x238   :  { %v772_v43 = vpop.f32.mrf.mxu2 }
 0x239   :  { %v1701_v44 = vrot.slane %v1699_v41, 2  ;;  %v1704_v45 = vrot.slane %v1702_v42, 3  ;;  %v773_v46 = vadd.f32 %v4825_v15, %v772_v43  ;;  %v1399_v47 = vsel %vm1382_vm4, %v1396_v9, %v1398_v40 }
 0x23b   :  { %v834_v49 = vmax.f32 %v773_v46, 0.0  ;;  %4316 = vmatmul.msk.bf16.gmra.mxu1 %vm417_vm1, %v1399_v47  ;;  %v1705_v50 = vor.u32 %v1704_v45, %v1701_v44 }
 0x23c   :  { %v1255_v51 = vpop.f32.mrf.mxu0 }
 0x23d   :  { %v860_v52 = vpack.c.bf16 %v834_v49, %v833_v35  ;;  %v4946_v53 = vsel %vm1626_vm5, %v1696_v23, %v1705_v50 }
 0x23f   :  { %4288 = vmatmul.msk.bf16.gmra.mxu0 %vm417_vm1, %v860_v52  ;;  %v952_v55 = vshll.u32 %v860_v52, 16  ;;  %v956_v21 = vshrl.u32 %v860_v52, 16 }
 0x240   :  { %v775_v56 = vpop.f32.mrf.mxu2 }
 0x241   :  { %v776_v57 = vadd.f32 %v4825_v15, %v775_v56  ;;  %v954_v60 = vrot.slane %v952_v55, 1 }
 0x243   :  { %v835_v62 = vmax.f32 %v776_v57, 0.0  ;;  %v955_v63 = vsel %vm879_vm3, %v950_v59, %v954_v60  ;;  %v958_v30 = vor.u32 %v956_v21, %v954_v60 }
 0x244   :  { %4261 = vmatmul.msk.bf16.gmra.mxu3 %vm417_vm1, %v955_v63  ;;  %v1257_v0 = vpop.f32.mrf.mxu0 }
 0x245   :  { %v1349_v1 = vpack.c.bf16 %v835_v62, %v834_v49 }
 0x247   :  { %v1400_v3 = vrot.slane %v1349_v1, 2  ;;  %v1708_v4 = vshrl.u32 %v1349_v1, 16  ;;  %v1711_v5 = vshll.u32 %v1349_v1, 16  ;;  %v1103_v6 = vpop.f32.mrf.mxu3 }
 0x248   :  { %v1251_v7 = vadd.f32 %v1250_v24, %v1103_v6  ;;  %v1495_v8 = vpop.f32.mrf.mxu1  ;;  %v777_v9 = vpop.f32.mrf.mxu2 }
 0x249   :  { %v1710_v10 = vrot.slane %v1708_v4, 2  ;;  %v1713_v11 = vrot.slane %v1711_v5, 3  ;;  %v778_v12 = vadd.f32 %v4825_v15, %v777_v9  ;;  %v1401_v13 = vsel %vm1382_vm4, %v1398_v40, %v1400_v3 }
 0x24a   :  { %v4954_v14 = vadd.f32 %v1495_v8, %v1251_v7 }
 0x24b   :  { %v836_v16 = vmax.f32 %v778_v12, 0.0  ;;  %4317 = vmatmul.msk.bf16.gmra.mxu1 %vm417_vm1, %v1401_v13  ;;  %v1714_v17 = vor.u32 %v1713_v11, %v1710_v10 }
 0x24c   :  { %v1260_v18 = vpop.f32.mrf.mxu0 }
 0x24d   :  { %v861_v19 = vpack.c.bf16 %v836_v16, %v835_v62  ;;  %v4958_v20 = vsel %vm1626_vm5, %v1705_v50, %v1714_v17  ;;  %v4521_v62 = vld [vmem:[%s6144_s9 + $0x8] sm:$0xff] }
 0x24e   :  { %2305 = vmatpush.bf16.msra.mxu2 %v4521_v62 }
 0x24f   :  { %v1105_v22 = vpop.f32.mrf.mxu3  ;;  %4289 = vmatmul.msk.bf16.gmra.mxu0 %vm417_vm1, %v861_v19  ;;  %v960_v23 = vshll.u32 %v861_v19, 16 }
 0x250   :  { %v1253_v24 = vadd.f32 %v1252_v37, %v1105_v22  ;;  %v1497_v25 = vpop.f32.mrf.mxu1  ;;  %v780_v26 = vpop.f32.mrf.mxu2 }
 0x251   :  { %v781_v28 = vadd.f32 %v4825_v15, %v780_v26  ;;  %v962_v31 = vrot.slane %v960_v23, 1 }
 0x252   :  { %v4962_v33 = vadd.f32 %v1497_v25, %v1253_v24 }
 0x253   :  { %v837_v34 = vmax.f32 %v781_v28, 0.0  ;;  %v963_v35 = vsel %vm879_vm3, %v958_v30, %v962_v31 }
 0x254   :  { %4262 = vmatmul.msk.bf16.gmra.mxu3 %vm417_vm1, %v963_v35  ;;  %v1262_v36 = vpop.f32.mrf.mxu0 }
 0x255   :  { %v1350_v39 = vpack.c.bf16 %v837_v34, %v836_v16 }
 0x257   :  { %v1402_v40 = vrot.slane %v1350_v39, 2  ;;  %v1717_v41 = vshrl.u32 %v1350_v39, 16  ;;  %v1720_v42 = vshll.u32 %v1350_v39, 16  ;;  %v1108_v43 = vpop.f32.mrf.mxu3 }
 0x258   :  { %v1256_v37 = vadd.f32 %v1255_v51, %v1108_v43  ;;  %v1500_v44 = vpop.f32.mrf.mxu1  ;;  %v782_v45 = vpop.f32.mrf.mxu2  ;;  %v964_v51 = vshrl.u32 %v861_v19, 16 }
 0x259   :  { %v1719_v46 = vrot.slane %v1717_v41, 2  ;;  %v1722_v47 = vrot.slane %v1720_v42, 3  ;;  %v783_v48 = vadd.f32 %v4825_v15, %v782_v45  ;;  %v1403_v49 = vsel %vm1382_vm4, %v1400_v3, %v1402_v40 }
 0x25a   :  { %v4968_v50 = vadd.f32 %v1500_v44, %v1256_v37  ;;  %v966_v5 = vor.u32 %v964_v51, %v962_v31 }
 0x25b   :  { %v838_v52 = vmax.f32 %v783_v48, 0.0  ;;  %4318 = vmatmul.msk.bf16.gmra.mxu1 %vm417_vm1, %v1403_v49  ;;  %v1723_v54 = vor.u32 %v1722_v47, %v1719_v46 }
 0x25c   :  { %v1265_v55 = vpop.f32.mrf.mxu0 }
 0x25d   :  { %v862_v56 = vpack.c.bf16 %v838_v52, %v837_v34  ;;  %v4972_v57 = vsel %vm1626_vm5, %v1714_v17, %v1723_v54 }
 0x25f   :  { %v1110_v59 = vpop.f32.mrf.mxu3  ;;  %4290 = vmatmul.msk.bf16.gmra.mxu0 %vm417_vm1, %v862_v56  ;;  %v968_v60 = vshll.u32 %v862_v56, 16 }
 0x260   :  { %v1258_v63 = vadd.f32 %v1257_v0, %v1110_v59  ;;  %v1502_v1 = vpop.f32.mrf.mxu1  ;;  %v785_v3 = vpop.f32.mrf.mxu2 }
 0x261   :  { %v786_v4 = vadd.f32 %v4825_v15, %v785_v3  ;;  %v970_v6 = vrot.slane %v968_v60, 1 }
 0x262   :  { %v4979_v7 = vadd.f32 %v1502_v1, %v1258_v63 }
 0x263   :  { %v839_v8 = vmax.f32 %v786_v4, 0.0  ;;  %v971_v9 = vsel %vm879_vm3, %v966_v5, %v970_v6 }
 0x264   :  { %4263 = vmatmul.msk.bf16.gmra.mxu3 %vm417_vm1, %v971_v9  ;;  %v1267_v10 = vpop.f32.mrf.mxu0 }
 0x265   :  { %v1351_v11 = vpack.c.bf16 %v839_v8, %v838_v52 }
 0x267   :  { %v1404_v12 = vrot.slane %v1351_v11, 2  ;;  %v1726_v13 = vshrl.u32 %v1351_v11, 16  ;;  %v1729_v16 = vshll.u32 %v1351_v11, 16  ;;  %v1113_v0 = vpop.f32.mrf.mxu3 }
 0x268   :  { %v1261_v17 = vadd.f32 %v1260_v18, %v1113_v0  ;;  %v1505_v19 = vpop.f32.mrf.mxu1  ;;  %v787_v21 = vpop.f32.mrf.mxu2  ;;  %v972_v18 = vshrl.u32 %v862_v56, 16 }
 0x269   :  { %v1728_v22 = vrot.slane %v1726_v13, 2  ;;  %v1731_v23 = vrot.slane %v1729_v16, 3  ;;  %v788_v24 = vadd.f32 %v4825_v15, %v787_v21  ;;  %v1405_v25 = vsel %vm1382_vm4, %v1402_v40, %v1404_v12 }
 0x26a   :  { %v4985_v26 = vadd.f32 %v1505_v19, %v1261_v17  ;;  %v974_v44 = vor.u32 %v972_v18, %v970_v6 }
 0x26b   :  { %v840_v28 = vmax.f32 %v788_v24, 0.0  ;;  %4319 = vmatmul.msk.bf16.gmra.mxu1 %vm417_vm1, %v1405_v25  ;;  %v1732_v30 = vor.u32 %v1731_v23, %v1728_v22 }
 0x26c   :  { %v1270_v31 = vpop.f32.mrf.mxu0 }
 0x26d   :  { %v863_v34 = vpack.c.bf16 %v840_v28, %v839_v8  ;;  %v4989_v35 = vsel %vm1626_vm5, %v1723_v54, %v1732_v30 }
 0x26f   :  { %v1115_v39 = vpop.f32.mrf.mxu3  ;;  %4291 = vmatmul.msk.bf16.gmra.mxu0 %vm417_vm1, %v863_v34  ;;  %v976_v41 = vshll.u32 %v863_v34, 16 }
 0x270   :  { %v1263_v42 = vadd.f32 %v1262_v36, %v1115_v39  ;;  %v1507_v43 = vpop.f32.mrf.mxu1  ;;  %v790_v37 = vpop.f32.mrf.mxu2 }
 0x271   :  { %v791_v40 = vadd.f32 %v4825_v15, %v790_v37  ;;  %v978_v45 = vrot.slane %v976_v41, 1 }
 0x272   :  { %v4993_v46 = vadd.f32 %v1507_v43, %v1263_v42 }
 0x273   :  { %v841_v47 = vmax.f32 %v791_v40, 0.0  ;;  %v979_v48 = vsel %vm879_vm3, %v974_v44, %v978_v45 }
 0x274   :  { %4264 = vmatmul.msk.bf16.gmra.mxu3 %vm417_vm1, %v979_v48  ;;  %v1272_v49 = vpop.f32.mrf.mxu0 }
 0x275   :  { %v1352_v52 = vpack.c.bf16 %v841_v47, %v840_v28 }
 0x277   :  { %v1406_v54 = vrot.slane %v1352_v52, 2  ;;  %v1735_v56 = vshrl.u32 %v1352_v52, 16  ;;  %v1738_v51 = vshll.u32 %v1352_v52, 16  ;;  %v1118_v59 = vpop.f32.mrf.mxu3 }
 0x278   :  { %v1266_v36 = vadd.f32 %v1265_v55, %v1118_v59  ;;  %v1510_v60 = vpop.f32.mrf.mxu1  ;;  %v792_v62 = vpop.f32.mrf.mxu2  ;;  %v980_v55 = vshrl.u32 %v863_v34, 16 }
 0x279   :  { %v1737_v63 = vrot.slane %v1735_v56, 2  ;;  %v1740_v1 = vrot.slane %v1738_v51, 3  ;;  %v793_v3 = vadd.f32 %v4825_v15, %v792_v62  ;;  %v1407_v4 = vsel %vm1382_vm4, %v1404_v12, %v1406_v54 }
 0x27a   :  { %v4999_v5 = vadd.f32 %v1510_v60, %v1266_v36  ;;  %v982_v22 = vor.u32 %v980_v55, %v978_v45 }
 0x27b   :  { %v842_v6 = vmax.f32 %v793_v3, 0.0  ;;  %4320 = vmatmul.msk.bf16.gmra.mxu1 %vm417_vm1, %v1407_v4  ;;  %v1741_v8 = vor.u32 %v1740_v1, %v1737_v63 }
 0x27c   :  { %v1275_v9 = vpop.f32.mrf.mxu0 }
 0x27d   :  { %v864_v11 = vpack.c.bf16 %v842_v6, %v841_v47  ;;  %v5003_v13 = vsel %vm1626_vm5, %v1732_v30, %v1741_v8 }
 0x27f   :  { %v1120_v16 = vpop.f32.mrf.mxu3  ;;  %4292 = vmatmul.msk.bf16.gmra.mxu0 %vm417_vm1, %v864_v11  ;;  %v984_v0 = vshll.u32 %v864_v11, 16 }
 0x280   :  { %v1268_v17 = vadd.f32 %v1267_v10, %v1120_v16  ;;  %v1512_v19 = vpop.f32.mrf.mxu1  ;;  %v795_v21 = vpop.f32.mrf.mxu2 }
 0x281   :  { %v796_v12 = vadd.f32 %v4825_v15, %v795_v21  ;;  %v986_v23 = vrot.slane %v984_v0, 1 }
 0x282   :  { %v5007_v24 = vadd.f32 %v1512_v19, %v1268_v17 }
 0x283   :  { %v843_v25 = vmax.f32 %v796_v12, 0.0  ;;  %v987_v28 = vsel %vm879_vm3, %v982_v22, %v986_v23 }
 0x284   :  { %4265 = vmatmul.msk.bf16.gmra.mxu3 %vm417_vm1, %v987_v28  ;;  %v1277_v30 = vpop.f32.mrf.mxu0 }
 0x285   :  { %v1353_v34 = vpack.c.bf16 %v843_v25, %v842_v6 }
 0x287   :  { %v1408_v18 = vrot.slane %v1353_v34, 2  ;;  %v1744_v39 = vshrl.u32 %v1353_v34, 16  ;;  %v1747_v41 = vshll.u32 %v1353_v34, 16  ;;  %v1123_v42 = vpop.f32.mrf.mxu3 }
 0x288   :  { %v1271_v10 = vadd.f32 %v1270_v31, %v1123_v42  ;;  %v1515_v43 = vpop.f32.mrf.mxu1  ;;  %v797_v37 = vpop.f32.mrf.mxu2  ;;  %v988_v31 = vshrl.u32 %v864_v11, 16 }
 0x289   :  { %v1746_v40 = vrot.slane %v1744_v39, 2  ;;  %v1749_v44 = vrot.slane %v1747_v41, 3  ;;  %v798_v45 = vadd.f32 %v4825_v15, %v797_v37  ;;  %v1409_v47 = vsel %vm1382_vm4, %v1406_v54, %v1408_v18 }
 0x28a   :  { %v5013_v48 = vadd.f32 %v1515_v43, %v1271_v10  ;;  %v990_v4 = vor.u32 %v988_v31, %v986_v23 }
 0x28b   :  { %v844_v52 = vmax.f32 %v798_v45, 0.0  ;;  %4321 = vmatmul.msk.bf16.gmra.mxu1 %vm417_vm1, %v1409_v47  ;;  %v1750_v56 = vor.u32 %v1749_v44, %v1746_v40 }
 0x28c   :  { %v1280_v51 = vpop.f32.mrf.mxu0 }
 0x28d   :  { %v865_v59 = vpack.c.bf16 %v844_v52, %v843_v25  ;;  %v5017_v36 = vsel %vm1626_vm5, %v1741_v8, %v1750_v56 }
 0x28f   :  { %v1125_v60 = vpop.f32.mrf.mxu3  ;;  %4293 = vmatmul.msk.bf16.gmra.mxu0 %vm417_vm1, %v865_v59  ;;  %v992_v62 = vshll.u32 %v865_v59, 16 }
 0x290   :  { %v1273_v63 = vadd.f32 %v1272_v49, %v1125_v60  ;;  %v1517_v1 = vpop.f32.mrf.mxu1  ;;  %v800_v3 = vpop.f32.mrf.mxu2 }
 0x291   :  { %v801_v54 = vadd.f32 %v4825_v15, %v800_v3  ;;  %v994_v6 = vrot.slane %v992_v62, 1 }
 0x292   :  { %v5021_v55 = vadd.f32 %v1517_v1, %v1273_v63 }
 0x293   :  { %v845_v16 = vmax.f32 %v801_v54, 0.0  ;;  %v995_v0 = vsel %vm879_vm3, %v990_v4, %v994_v6 }
 0x294   :  { %4266 = vmatmul.msk.bf16.gmra.mxu3 %vm417_vm1, %v995_v0  ;;  %v5025_v8 = vpop.f32.mrf.mxu0 }
 0x295   :  { %v1354_v11 = vpack.c.bf16 %v845_v16, %v844_v52 }
 0x297   :  { %v1410_v17 = vrot.slane %v1354_v11, 2  ;;  %v1753_v19 = vshrl.u32 %v1354_v11, 16  ;;  %v1756_v21 = vshll.u32 %v1354_v11, 16  ;;  %v1128_v49 = vpop.f32.mrf.mxu3 }
 0x298   :  { %v1276_v12 = vadd.f32 %v1275_v9, %v1128_v49  ;;  %v1520_v22 = vpop.f32.mrf.mxu1  ;;  %v802_v25 = vpop.f32.mrf.mxu2  ;;  %v996_v9 = vshrl.u32 %v865_v59, 16 }
 0x299   :  { %v1755_v28 = vrot.slane %v1753_v19, 2  ;;  %v1758_v23 = vrot.slane %v1756_v21, 3  ;;  %v803_v34 = vadd.f32 %v4825_v15, %v802_v25  ;;  %v1411_v39 = vsel %vm1382_vm4, %v1408_v18, %v1410_v17  ;;  %v4537_v19 = vld [vmem:[%s6142_s6] ss:$0 sm:$0xff] }
 0x29a   :  { %v5029_v41 = vadd.f32 %v1520_v22, %v1276_v12  ;;  %v998_v60 = vor.u32 %v996_v9, %v994_v6 }
 0x29b   :  { %v846_v42 = vmax.f32 %v803_v34, 0.0  ;;  %4322 = vmatmul.msk.bf16.gmra.mxu1 %vm417_vm1, %v1411_v39  ;;  %v1759_v10 = vor.u32 %v1758_v23, %v1755_v28 }
 0x29c   :  { %v1285_v43 = vpop.f32.mrf.mxu0 }
 0x29d   :  { %v866_v37 = vpack.c.bf16 %v846_v42, %v845_v16  ;;  %v5033_v40 = vsel %vm1626_vm5, %v1750_v56, %v1759_v10 }
 0x29f   :  { %v1130_v44 = vpop.f32.mrf.mxu3  ;;  %4294 = vmatmul.msk.bf16.gmra.mxu0 %vm417_vm1, %v866_v37  ;;  %v1000_v45 = vshll.u32 %v866_v37, 16 }
 0x2a0   :  { %v1278_v47 = vadd.f32 %v1277_v30, %v1130_v44  ;;  %v805_v52 = vpop.f32.mrf.mxu2  ;;  %v1522_v31 = vpop.f32.mrf.mxu1 }
 0x2a1   :  { %v806_v18 = vadd.f32 %v4825_v15, %v805_v52  ;;  %v1002_v62 = vrot.slane %v1000_v45, 1 }
 0x2a2   :  { %v5037_v63 = vadd.f32 %v1522_v31, %v1278_v47 }
 0x2a3   :  { %v847_v1 = vmax.f32 %v806_v18, 0.0  ;;  %v1003_v3 = vsel %vm879_vm3, %v998_v60, %v1002_v62 }
 0x2a4   :  { %4267 = vmatmul.msk.bf16.gmra.mxu3 %vm417_vm1, %v1003_v3  ;;  %v5041_v56 = vpop.f32.mrf.mxu0 }
 0x2a5   :  { %v1355_v59 = vpack.c.bf16 %v847_v1, %v846_v42 }
 0x2a7   :  { %v1412_v54 = vrot.slane %v1355_v59, 2  ;;  %v1762_v4 = vshrl.u32 %v1355_v59, 16  ;;  %v1765_v16 = vshll.u32 %v1355_v59, 16  ;;  %v1133_v30 = vpop.f32.mrf.mxu3 }
 0x2a8   :  { %v5043_v0 = vadd.f32 %v1280_v51, %v1133_v30  ;;  %v807_v11 = vpop.f32.mrf.mxu2  ;;  %v1004_v51 = vshrl.u32 %v866_v37, 16 }
 0x2a9   :  { %v1764_v15 = vrot.slane %v1762_v4, 2  ;;  %v1767_v6 = vrot.slane %v1765_v16, 3  ;;  %v808_v21 = vadd.f32 %v4537_v19, %v807_v11  ;;  %v1413_v49 = vsel %vm1382_vm4, %v1410_v17, %v1412_v54 }
 0x2aa   :  { %v1006_v44 = vor.u32 %v1004_v51, %v1002_v62 }
 0x2ab   :  { %v848_v12 = vmax.f32 %v808_v21, 0.0  ;;  %4323 = vmatmul.msk.bf16.gmra.mxu1 %vm417_vm1, %v1413_v49  ;;  %v1768_v22 = vor.u32 %v1767_v6, %v1764_v15 }
 0x2ac   :  { %v1290_v25 = vpop.f32.mrf.mxu0 }
 0x2ad   :  { %v867_v28 = vpack.c.bf16 %v848_v12, %v847_v1  ;;  %v5051_v23 = vsel %vm1626_vm5, %v1759_v10, %v1768_v22 }
 0x2af   :  { %v5053_v34 = vpop.f32.mrf.mxu3  ;;  %4295 = vmatmul.msk.bf16.gmra.mxu0 %vm417_vm1, %v867_v28  ;;  %v1008_v39 = vshll.u32 %v867_v28, 16 }
 0x2b0   :  { %v810_v42 = vpop.f32.mrf.mxu2 }
 0x2b1   :  { %v811_v9 = vadd.f32 %v4537_v19, %v810_v42  ;;  %v1010_v45 = vrot.slane %v1008_v39, 1 }
 0x2b3   :  { %v849_v17 = vmax.f32 %v811_v9, 0.0  ;;  %v1011_v47 = vsel %vm879_vm3, %v1006_v44, %v1010_v45 }
 0x2b4   :  { %4268 = vmatmul.msk.bf16.gmra.mxu3 %vm417_vm1, %v1011_v47  ;;  %v5058_v52 = vpop.f32.mrf.mxu0 }
 0x2b5   :  { %v1356_v31 = vpack.c.bf16 %v849_v17, %v848_v12  ;;  %v1012_v12 = vshrl.u32 %v867_v28, 16  ;;  %v4523_v28 = vld [vmem:[%s6144_s9 + $0x18] sm:$0xff] }
 0x2b6   :  { %3040 = vmatpush.bf16.msrb.mxu3 %v4523_v28 }
 0x2b7   :  { %v1414_v10 = vrot.slane %v1356_v31, 2  ;;  %v1771_v18 = vshrl.u32 %v1356_v31, 16  ;;  %v1774_v37 = vshll.u32 %v1356_v31, 16  ;;  %v1138_v60 = vpop.f32.mrf.mxu3  ;;  %v1014_v9 = vor.u32 %v1012_v12, %v1010_v45 }
 0x2b8   :  { %v5060_v1 = vadd.f32 %v1285_v43, %v1138_v60  ;;  %v812_v3 = vpop.f32.mrf.mxu2  ;;  %v4541_v12 = vmov 0.0|0.0  }
 0x2b9   :  { %v1773_v59 = vrot.slane %v1771_v18, 2  ;;  %v1776_v4 = vrot.slane %v1774_v37, 3  ;;  %v813_v16 = vadd.f32 %v4537_v19, %v812_v3  ;;  %v1415_v62 = vsel %vm1382_vm4, %v1412_v54, %v1414_v10 }
 0x2bb   :  { %v850_v30 = vmax.f32 %v813_v16, 0.0  ;;  %4324 = vmatmul.msk.bf16.gmra.mxu1 %vm417_vm1, %v1415_v62  ;;  %v1777_v11 = vor.u32 %v1776_v4, %v1773_v59  ;;  %v4522_v59 = vld [vmem:[%s6144_s9 + $0x10] sm:$0xff] }
 0x2bc   :  { %v1295_v15 = vpop.f32.mrf.mxu0  ;;  %2680 = vmatpush.bf16.msrb.mxu1 %v4522_v59 }
 0x2bd   :  { %v868_v6 = vpack.c.bf16 %v850_v30, %v849_v17  ;;  %v1357_v21 = vpack.c.bf16 0.0, %v850_v30  ;;  %v5065_v49 = vsel %vm1626_vm5, %v1768_v22, %v1777_v11  ;;  %v4520_v17 = vld [vmem:[%s6144_s9] sm:$0xff] }
 0x2be   :  { %2446 = vmatpush.bf16.msra.mxu0 %v4520_v17 }
 0x2bf   :  { %v1780_v51 = vshrl.u32 %v1357_v21, 16  ;;  %v1783_v43 = vshll.u32 %v1357_v21, 16  ;;  %v5067_v39 = vpop.f32.mrf.mxu3  ;;  %4296 = vmatmul.msk.bf16.gmra.mxu0 %vm417_vm1, %v868_v6  ;;  %v1016_v19 = vshll.u32 %v868_v6, 16  ;;  %v1416_v18 = vrot.slane %v1357_v21, 2 }
 0x2c0   :  { %v1020_v16 = vshrl.u32 %v868_v6, 16 }
 0x2c1   :  { %v1782_v42 = vrot.slane %v1780_v51, 2  ;;  %v1785_v54 = vrot.slane %v1783_v43, 3  ;;  %v1018_v44 = vrot.slane %v1016_v19, 1  ;;  %v1417_v3 = vsel %vm1382_vm4, %v1414_v10, %v1416_v18 }
 0x2c2   :  { %v5103_v51 = vrot.slane %v4541_v12, 2 }
 0x2c3   :  { %v1019_v47 = vsel %vm879_vm3, %v1014_v9, %v1018_v44  ;;  %v5071_v31 = vor.u32 %v1785_v54, %v1782_v42  ;;  %v1022_v30 = vor.u32 %v1020_v16, %v1018_v44 }
 0x2c4   :  { %4269 = vmatmul.msk.bf16.gmra.mxu3 %vm417_vm1, %v1019_v47  ;;  %v5074_v22 = vpop.f32.mrf.mxu0  ;;  %6157 = vst [vmem:[#allocation3_spill] sm:$0xff] %v5103_v51  ;;  %v1419_v6 = vsel %vm1382_vm4, %v1416_v18, %v5103_v51 }
 0x2c5   :  { %v5084_v45 = vsel %vm1626_vm5, %v1777_v11, %v5071_v31  ;;  %v6152_v11 = vmov 0  }
 0x2c6   :  { %v5096_v21 = vrot.slane %v6152_v11, 1 }
 0x2c7   :  { %v1143_v37 = vpop.f32.mrf.mxu3 }
 0x2c8   :  { %v5086_v60 = vadd.f32 %v1290_v25, %v1143_v37  ;;  %6156 = vst [vmem:[#allocation2_spill] sm:$0xff] %v5096_v21  ;;  %v1027_v25 = vsel %vm879_vm3, %v1022_v30, %v5096_v21 }
 0x2cb   :  { %4325 = vmatmul.msk.bf16.gmra.mxu1 %vm417_vm1, %v1417_v3 }
 0x2cc   :  { %v1300_v4 = vpop.f32.mrf.mxu0 }
 0x2cf   :  { %v5093_v62 = vpop.f32.mrf.mxu3 }
 0x2d4   :  { %4270 = vmatmul.msk.bf16.gmra.mxu3 %vm417_vm1, %v1027_v25  ;;  %v5101_v10 = vpop.f32.mrf.mxu0 }
 0x2d7   :  { %v1148_v43 = vpop.f32.mrf.mxu3 }
 0x2d8   :  { %v5105_v19 = vadd.f32 %v1295_v15, %v1148_v43 }
 0x2db   :  { %4326 = vmatmul.msk.bf16.gmra.mxu1 %vm417_vm1, %v1419_v6  ;;  %v5142_v6 = vpop.f32.mrf.mxu1 }
 0x2dc   :  { %v1305_v42 = vpop.f32.mrf.mxu0 }
 0x2df   :  { %v5110_v54 = vpop.f32.mrf.mxu3 }
 0x2e4   :  { %4339 = vmatmul.msk.bf16.vlgmr.msra.gmra.mxu3 %vm417_vm1, %v4855_v38  ;;  %v5116_v47 = vpop.f32.mrf.mxu0 }
 0x2e5   :  { %6158 = vst [vmem:[#allocation4_spill] sm:$0xff] %v5116_v47 }
 0x2e7   :  { %v1153_v9 = vpop.f32.mrf.mxu3 }
 0x2e8   :  { %v5114_v44 = vadd.f32 %v1300_v4, %v1153_v9 }
 0x2ec   :  { %v1310_v15 = vpop.f32.mrf.mxu0 }
 0x2ef   :  { %v5118_v28 = vpop.f32.mrf.mxu3 }
 0x2f4   :  { %4340 = vmatmul.msk.bf16.gmra.mxu3 %vm417_vm1, %v4868_v2  ;;  %v5124_v37 = vpop.f32.mrf.mxu0 }
 0x2f5   :  { %6159 = vst [vmem:[#allocation5_spill] sm:$0xff] %v5124_v37 }
 0x2f7   :  { %v1158_v17 = vpop.f32.mrf.mxu3 }
 0x2f8   :  { %v5122_v18 = vadd.f32 %v1305_v42, %v1158_v17 }
 0x2fc   :  { %v1315_v38 = vpop.f32.mrf.mxu0 }
 0x2ff   :  { %v5126_v3 = vpop.f32.mrf.mxu3 }
 0x300   :  { %6160 = vst [vmem:[#allocation6_spill] sm:$0xff] %v5126_v3 }
 0x304   :  { %4341 = vmatmul.msk.bf16.gmra.mxu3 %vm417_vm1, %v4881_v32  ;;  %v5134_v30 = vpop.f32.mrf.mxu0 }
 0x305   :  { %6163 = vst [vmem:[#allocation9_spill] sm:$0xff] %v5134_v30 }
 0x307   :  { %v1163_v59 = vpop.f32.mrf.mxu3 }
 0x308   :  { %v5130_v4 = vadd.f32 %v1310_v15, %v1163_v59  ;;  %v5150_v15 = vpop.f32.mrf.mxu1 }
 0x30a   :  { %6161 = vst [vmem:[#allocation7_spill] sm:$0xff] %v5130_v4 }
 0x30c   :  { %v1320_v12 = vpop.f32.mrf.mxu0 }
 0x30f   :  { %v5132_v16 = vpop.f32.mrf.mxu3 }
 0x310   :  { %6162 = vst [vmem:[#allocation8_spill] sm:$0xff] %v5132_v16 }
 0x314   :  { %4342 = vmatmul.msk.bf16.gmra.mxu3 %vm417_vm1, %v4894_v61  ;;  %v5146_v32 = vpop.f32.mrf.mxu0 }
 0x315   :  { %6166 = vst [vmem:[#allocation12_spill] sm:$0xff] %v5146_v32 }
 0x317   :  { %v1168_v2 = vpop.f32.mrf.mxu3 }
 0x318   :  { %v5138_v25 = vadd.f32 %v1315_v38, %v1168_v2  ;;  %v5156_v38 = vpop.f32.mrf.mxu1 }
 0x31a   :  { %6164 = vst [vmem:[#allocation10_spill] sm:$0xff] %v5138_v25 }
 0x31c   :  { %v1325_v17 = vpop.f32.mrf.mxu0 }
 0x31f   :  { %v5140_v43 = vpop.f32.mrf.mxu3 }
 0x320   :  { %6165 = vst [vmem:[#allocation11_spill] sm:$0xff] %v5140_v43  ;;  %v5164_v51 = vpop.f32.mrf.mxu1 }
 0x324   :  { %4343 = vmatmul.msk.bf16.gmra.mxu3 %vm417_vm1, %v4907_v27  ;;  %v5160_v11 = vpop.f32.mrf.mxu0 }
 0x325   :  { %6170 = vst [vmem:[#allocation16_spill] sm:$0xff] %v5160_v11 }
 0x327   :  { %v1173_v42 = vpop.f32.mrf.mxu3 }
 0x328   :  { %v5148_v9 = vadd.f32 %v1320_v12, %v1173_v42  ;;  %v5170_v32 = vpop.f32.mrf.mxu1 }
 0x32a   :  { %6167 = vst [vmem:[#allocation13_spill] sm:$0xff] %v5148_v9 }
 0x32c   :  { %v1330_v12 = vpop.f32.mrf.mxu0 }
 0x32f   :  { %v5152_v61 = vpop.f32.mrf.mxu3 }
 0x330   :  { %6168 = vst [vmem:[#allocation14_spill] sm:$0xff] %v5152_v61 }
 0x334   :  { %4344 = vmatmul.msk.bf16.gmra.mxu3 %vm417_vm1, %v4920_v58  ;;  %v5172_v58 = vpop.f32.mrf.mxu0 }
 0x335   :  { %6173 = vst [vmem:[#allocation19_spill] sm:$0xff] %v5172_v58 }
 0x337   :  { %v1178_v59 = vpop.f32.mrf.mxu3 }
 0x338   :  { %v5158_v2 = vadd.f32 %v1325_v17, %v1178_v59  ;;  %v5176_v17 = vpop.f32.mrf.mxu1 }
 0x33a   :  { %6169 = vst [vmem:[#allocation15_spill] sm:$0xff] %v5158_v2 }
 0x33c   :  { %v1335_v59 = vpop.f32.mrf.mxu0 }
 0x33f   :  { %v5162_v27 = vpop.f32.mrf.mxu3 }
 0x340   :  { %6171 = vst [vmem:[#allocation17_spill] sm:$0xff] %v5162_v27  ;;  %v5182_v2 = vpop.f32.mrf.mxu1 }
 0x344   :  { %4345 = vmatmul.msk.bf16.gmra.mxu3 %vm417_vm1, %v4933_v29 }
 0x347   :  { %v1183_v42 = vpop.f32.mrf.mxu3 }
 0x348   :  { %v5168_v21 = vadd.f32 %v1330_v12, %v1183_v42  ;;  %v5188_v42 = vpop.f32.mrf.mxu1 }
 0x34a   :  { %6172 = vst [vmem:[#allocation18_spill] sm:$0xff] %v5168_v21 }
 0x34f   :  { %v5174_v61 = vpop.f32.mrf.mxu3 }
 0x350   :  { %6174 = vst [vmem:[#allocation20_spill] sm:$0xff] %v5174_v61 }
 0x354   :  { %4346 = vmatmul.msk.bf16.gmra.mxu3 %vm417_vm1, %v4946_v53  ;;  %v5194_v53 = vld [vmem:[%s6145_s8] ss:$0 sm:$0xff] }
 0x357   :  { %v1188_v11 = vpop.f32.mrf.mxu3 }
 0x358   :  { %v5180_v27 = vadd.f32 %v1335_v59, %v1188_v11 }
 0x35a   :  { %6175 = vst [vmem:[#allocation21_spill] sm:$0xff] %v5180_v27  ;;  %v5198_v27 = vpop.f32.mrf.mxu1 }
 0x35f   :  { %v5184_v29 = vpop.f32.mrf.mxu3 }
 0x360   :  { %6176 = vst [vmem:[#allocation22_spill] sm:$0xff] %v5184_v29 }
 0x364   :  { %4347 = vmatmul.msk.bf16.gmra.mxu3 %vm417_vm1, %v4958_v20 }
 0x367   :  { %v1869_v12 = vpop.f32.mrf.mxu3 }
 0x368   :  { %v1959_v58 = vadd.f32 %v1869_v12, %v4954_v14 }
 0x36a   :  { %v1999_v11 = vadd.f32 %v5194_v53, %v1959_v58  ;;  %v5206_v58 = vpop.f32.mrf.mxu1 }
 0x36c   :  { %v2035_v20 = vmax.f32 %v1999_v11, 0.0 }
 0x36f   :  { %v1871_v61 = vpop.f32.mrf.mxu3 }
 0x370   :  { %v1960_v59 = vadd.f32 %v1871_v61, %v4962_v33 }
 0x372   :  { %v2000_v29 = vadd.f32 %v5194_v53, %v1960_v59 }
 0x374   :  { %v2036_v21 = vmax.f32 %v2000_v29, 0.0  ;;  %4348 = vmatmul.msk.bf16.gmra.mxu3 %vm417_vm1, %v4972_v57  ;;  %v3633_v29 = vld [vmem:[%s6146_s11] sm:$0xf] }
 0x376   :  { %v2071_v14 = vpack.c.bf16 %v2036_v21, %v2035_v20 }
 0x377   :  { %v1874_v12 = vpop.f32.mrf.mxu3 }
 0x378   :  { %v1961_v9 = vadd.f32 %v1874_v12, %v4968_v50  ;;  %4385 = vmatmul.msk.bf16.vlgmr.msra.gmra.mxu0 %vm189_vm0, %v2071_v14  ;;  %v2097_v57 = vshll.u32 %v2071_v14, 16  ;;  %v3694_v50 = vsel %vm3469_vm6, %v3633_v29, 0 }
 0x379   :  { %3703 = vmatpush.bf16.msrb.mxu2 %v3694_v50 }
 0x37a   :  { %v2001_v30 = vadd.f32 %v5194_v53, %v1961_v9 }
 0x37c   :  { %v2037_v33 = vmax.f32 %v2001_v30, 0.0  ;;  %v5216_v30 = vpop.f32.mrf.mxu1 }
 0x37e   :  { %v2538_v61 = vpack.c.bf16 %v2037_v33, %v2036_v21  ;;  %v2099_v21 = vrot.slane %v2097_v57, 1 }
 0x37f   :  { %v1876_v43 = vpop.f32.mrf.mxu3 }
 0x380   :  { %v1962_v59 = vadd.f32 %v1876_v43, %v4979_v7  ;;  %v2095_v43 = vshrl.u32 %v2071_v14, 16  ;;  %v2812_v50 = vshrl.u32 %v2538_v61, 16 }
 0x382   :  { %v2002_v11 = vadd.f32 %v5194_v53, %v1962_v59  ;;  %v2100_v37 = vor.u32 %v2099_v21, %v2095_v43  ;;  %v2814_v4 = vrot.slane %v2812_v50, 2 }
 0x384   :  { %v2038_v20 = vmax.f32 %v2002_v11, 0.0  ;;  %4349 = vmatmul.msk.bf16.gmra.mxu3 %vm417_vm1, %v4989_v35  ;;  %v2815_v11 = vshll.u32 %v2538_v61, 16  ;;  %v5223_v3 = vpop.f32.mrf.mxu1 }
 0x386   :  { %v2072_v9 = vpack.c.bf16 %v2038_v20, %v2037_v33  ;;  %v2577_v33 = vrot.slane %v2538_v61, 2  ;;  %v2817_v14 = vrot.slane %v2815_v11, 3 }
 0x387   :  { %v1879_v7 = vpop.f32.mrf.mxu3 }
 0x388   :  { %v2102_v12 = vshll.u32 %v2072_v9, 16  ;;  %v1963_v25 = vadd.f32 %v1879_v7, %v4985_v26  ;;  %4386 = vmatmul.msk.bf16.gmra.mxu0 %vm189_vm0, %v2072_v9 }
 0x38a   :  { %v2104_v59 = vrot.slane %v2102_v12, 1  ;;  %v2003_v29 = vadd.f32 %v5194_v53, %v1963_v25 }
 0x38c   :  { %v2039_v16 = vmax.f32 %v2003_v29, 0.0  ;;  %v2105_v35 = vsel %vm879_vm3, %v2100_v37, %v2104_v59 }
 0x38d   :  { %4363 = vmatmul.msk.bf16.vlgmr.msra.gmra.mxu2 %vm189_vm0, %v2105_v35 }
 0x38e   :  { %v2539_v57 = vpack.c.bf16 %v2039_v16, %v2038_v20  ;;  %v2818_v20 = vor.u32 %v2817_v14, %v2814_v4 }
 0x38f   :  { %v1881_v47 = vpop.f32.mrf.mxu3 }
 0x390   :  { %v2578_v26 = vrot.slane %v2539_v57, 2  ;;  %v2820_v7 = vshrl.u32 %v2539_v57, 16  ;;  %v2823_v21 = vshll.u32 %v2539_v57, 16  ;;  %v1964_v43 = vadd.f32 %v1881_v47, %v4993_v46 }
 0x391   :  { %v2106_v47 = vshrl.u32 %v2072_v9, 16 }
 0x392   :  { %v2822_v25 = vrot.slane %v2820_v7, 2  ;;  %v2825_v12 = vrot.slane %v2823_v21, 3  ;;  %v2004_v29 = vadd.f32 %v5194_v53, %v1964_v43  ;;  %v2579_v37 = vsel %vm1382_vm4, %v2577_v33, %v2578_v26  ;;  %v5236_v33 = vpop.f32.mrf.mxu1 }
 0x393   :  { %4409 = vmatmul.msk.bf16.vlgmr.msrb.gmra.mxu1 %vm189_vm0, %v2579_v37  ;;  %v2108_v14 = vor.u32 %v2106_v47, %v2104_v59 }
 0x394   :  { %v2826_v61 = vor.u32 %v2825_v12, %v2822_v25  ;;  %v2040_v50 = vmax.f32 %v2004_v29, 0.0  ;;  %4350 = vmatmul.msk.bf16.gmra.mxu3 %vm417_vm1, %v5003_v13 }
 0x396   :  { %v2073_v11 = vpack.c.bf16 %v2040_v50, %v2039_v16  ;;  %v5232_v35 = vsel %vm1626_vm5, %v2818_v20, %v2826_v61 }
 0x397   :  { %v1884_v57 = vpop.f32.mrf.mxu3 }
 0x398   :  { %v1965_v46 = vadd.f32 %v1884_v57, %v4999_v5  ;;  %4387 = vmatmul.msk.bf16.gmra.mxu0 %vm189_vm0, %v2073_v11  ;;  %v2110_v7 = vshll.u32 %v2073_v11, 16 }
 0x39a   :  { %v2005_v4 = vadd.f32 %v5194_v53, %v1965_v46  ;;  %v2112_v21 = vrot.slane %v2110_v7, 1  ;;  %v5245_v59 = vpop.f32.mrf.mxu1 }
 0x39c   :  { %v2041_v43 = vmax.f32 %v2005_v4, 0.0  ;;  %v2113_v13 = vsel %vm879_vm3, %v2108_v14, %v2112_v21 }
 0x39d   :  { %4364 = vmatmul.msk.bf16.gmra.mxu2 %vm189_vm0, %v2113_v13 }
 0x39e   :  { %v2540_v16 = vpack.c.bf16 %v2041_v43, %v2040_v50 }
 0x39f   :  { %v1886_v25 = vpop.f32.mrf.mxu3 }
 0x3a0   :  { %v2829_v12 = vshrl.u32 %v2540_v16, 16  ;;  %v2832_v29 = vshll.u32 %v2540_v16, 16  ;;  %v1966_v5 = vadd.f32 %v1886_v25, %v5007_v24  ;;  %v2580_v37 = vrot.slane %v2540_v16, 2 }
 0x3a2   :  { %v2006_v9 = vadd.f32 %v5194_v53, %v1966_v5  ;;  %v2581_v20 = vsel %vm1382_vm4, %v2578_v26, %v2580_v37  ;;  %v2831_v57 = vrot.slane %v2829_v12, 2  ;;  %v2834_v46 = vrot.slane %v2832_v29, 3 }
 0x3a3   :  { %4410 = vmatmul.msk.bf16.gmra.mxu1 %vm189_vm0, %v2581_v20  ;;  %v2114_v26 = vshrl.u32 %v2073_v11, 16 }
 0x3a4   :  { %v2042_v47 = vmax.f32 %v2006_v9, 0.0  ;;  %4351 = vmatmul.msk.bf16.gmra.mxu3 %vm417_vm1, %v5017_v36  ;;  %v2835_v50 = vor.u32 %v2834_v46, %v2831_v57  ;;  %v5257_v36 = vpop.f32.mrf.mxu1 }
 0x3a5   :  { %v2116_v25 = vor.u32 %v2114_v26, %v2112_v21 }
 0x3a6   :  { %v2074_v7 = vpack.c.bf16 %v2042_v47, %v2041_v43  ;;  %v5250_v4 = vsel %vm1626_vm5, %v2826_v61, %v2835_v50 }
 0x3a7   :  { %v1889_v24 = vpop.f32.mrf.mxu3 }
 0x3a8   :  { %v1967_v14 = vadd.f32 %v1889_v24, %v5013_v48  ;;  %4388 = vmatmul.msk.bf16.gmra.mxu0 %vm189_vm0, %v2074_v7  ;;  %v2118_v13 = vshll.u32 %v2074_v7, 16 }
 0x3aa   :  { %v2007_v16 = vadd.f32 %v5194_v53, %v1967_v14  ;;  %v2120_v12 = vrot.slane %v2118_v13, 1 }
 0x3ac   :  { %v2043_v29 = vmax.f32 %v2007_v16, 0.0  ;;  %v2121_v5 = vsel %vm879_vm3, %v2116_v25, %v2120_v12 }
 0x3ad   :  { %4365 = vmatmul.msk.bf16.gmra.mxu2 %vm189_vm0, %v2121_v5 }
 0x3ae   :  { %v2541_v61 = vpack.c.bf16 %v2043_v29, %v2042_v47 }
 0x3af   :  { %v1891_v43 = vpop.f32.mrf.mxu3 }
 0x3b0   :  { %v2838_v9 = vshrl.u32 %v2541_v61, 16  ;;  %v2841_v20 = vshll.u32 %v2541_v61, 16  ;;  %v1968_v48 = vadd.f32 %v1891_v43, %v5021_v55  ;;  %v2582_v57 = vrot.slane %v2541_v61, 2  ;;  %v5268_v55 = vpop.f32.mrf.mxu1 }
 0x3b2   :  { %v2008_v11 = vadd.f32 %v5194_v53, %v1968_v48  ;;  %v2583_v46 = vsel %vm1382_vm4, %v2580_v37, %v2582_v57  ;;  %v2840_v21 = vrot.slane %v2838_v9, 2  ;;  %v2843_v24 = vrot.slane %v2841_v20, 3 }
 0x3b3   :  { %4411 = vmatmul.msk.bf16.gmra.mxu1 %vm189_vm0, %v2583_v46  ;;  %v2122_v37 = vshrl.u32 %v2074_v7, 16 }
 0x3b4   :  { %v2044_v14 = vmax.f32 %v2008_v11, 0.0  ;;  %4352 = vmatmul.msk.bf16.gmra.mxu3 %vm417_vm1, %v5033_v40  ;;  %v2844_v26 = vor.u32 %v2843_v24, %v2840_v21 }
 0x3b5   :  { %v2124_v43 = vor.u32 %v2122_v37, %v2120_v12  ;;  %v1597_v37 = vadd.f32 %v5142_v6, %v5043_v0 }
 0x3b6   :  { %v2075_v47 = vpack.c.bf16 %v2044_v14, %v2043_v29  ;;  %v5266_v13 = vsel %vm1626_vm5, %v2835_v50, %v2844_v26 }
 0x3b7   :  { %v1894_v16 = vpop.f32.mrf.mxu3 }
 0x3b8   :  { %v1969_v25 = vadd.f32 %v1894_v16, %v5029_v41  ;;  %4389 = vmatmul.msk.bf16.gmra.mxu0 %vm189_vm0, %v2075_v47  ;;  %v2126_v5 = vshll.u32 %v2075_v47, 16  ;;  %v5276_v21 = vpop.f32.mrf.mxu1 }
 0x3ba   :  { %v2009_v61 = vadd.f32 %v5194_v53, %v1969_v25  ;;  %v2128_v9 = vrot.slane %v2126_v5, 1 }
 0x3bc   :  { %v2045_v20 = vmax.f32 %v2009_v61, 0.0  ;;  %v2129_v40 = vsel %vm879_vm3, %v2124_v43, %v2128_v9 }
 0x3bd   :  { %4366 = vmatmul.msk.bf16.gmra.mxu2 %vm189_vm0, %v2129_v40 }
 0x3be   :  { %v2542_v50 = vpack.c.bf16 %v2045_v20, %v2044_v14 }
 0x3bf   :  { %v1896_v29 = vpop.f32.mrf.mxu3 }
 0x3c0   :  { %v2847_v48 = vshrl.u32 %v2542_v50, 16  ;;  %v2850_v11 = vshll.u32 %v2542_v50, 16  ;;  %v1970_v46 = vadd.f32 %v1896_v29, %v5037_v63  ;;  %v2584_v41 = vrot.slane %v2542_v50, 2 }
 0x3c1   :  { %v1283_v50 = vadd.f32 %v5025_v8, %v5053_v34 }
 0x3c2   :  { %v2010_v7 = vadd.f32 %v5194_v53, %v1970_v46  ;;  %v2585_v24 = vsel %vm1382_vm4, %v2582_v57, %v2584_v41  ;;  %v2849_v12 = vrot.slane %v2847_v48, 2  ;;  %v2852_v16 = vrot.slane %v2850_v11, 3  ;;  %v5292_v11 = vpop.f32.mrf.mxu1 }
 0x3c3   :  { %4412 = vmatmul.msk.bf16.gmra.mxu1 %vm189_vm0, %v2585_v24  ;;  %v2130_v57 = vshrl.u32 %v2075_v47, 16 }
 0x3c4   :  { %v2046_v25 = vmax.f32 %v2010_v7, 0.0  ;;  %4353 = vmatmul.msk.bf16.gmra.mxu3 %vm417_vm1, %v5051_v23  ;;  %v2853_v14 = vor.u32 %v2852_v16, %v2849_v12 }
 0x3c5   :  { %v2132_v23 = vor.u32 %v2130_v57, %v2128_v9 }
 0x3c6   :  { %v2076_v63 = vpack.c.bf16 %v2046_v25, %v2045_v20  ;;  %v5286_v5 = vsel %vm1626_vm5, %v2844_v26, %v2853_v14  ;;  %v1598_v26 = vadd.f32 %v5150_v15, %v1283_v50  ;;  %v1599_v15 = vadd.f32 %v5156_v38, %v5060_v1 }
 0x3c7   :  { %v1899_v61 = vpop.f32.mrf.mxu3 }
 0x3c8   :  { %v1971_v43 = vadd.f32 %v1899_v61, %v1597_v37  ;;  %4390 = vmatmul.msk.bf16.gmra.mxu0 %vm189_vm0, %v2076_v63  ;;  %v2134_v40 = vshll.u32 %v2076_v63, 16  ;;  %v2138_v50 = vshrl.u32 %v2076_v63, 16 }
 0x3ca   :  { %v2011_v29 = vadd.f32 %v5194_v53, %v1971_v43  ;;  %v2136_v48 = vrot.slane %v2134_v40, 1 }
 0x3cc   :  { %v2047_v0 = vmax.f32 %v2011_v29, 0.0  ;;  %v2137_v6 = vsel %vm879_vm3, %v2132_v23, %v2136_v48  ;;  %v1288_v23 = vadd.f32 %v5041_v56, %v5067_v39 }
 0x3cd   :  { %4367 = vmatmul.msk.bf16.gmra.mxu2 %vm189_vm0, %v2137_v6  ;;  %v2140_v6 = vor.u32 %v2138_v50, %v2136_v48  ;;  %v1293_v50 = vadd.f32 %v5058_v52, %v5093_v62 }
 0x3ce   :  { %v2543_v20 = vpack.c.bf16 %v2047_v0, %v2046_v25  ;;  %v5304_v25 = vpop.f32.mrf.mxu1 }
 0x3cf   :  { %v1901_v46 = vpop.f32.mrf.mxu3 }
 0x3d0   :  { %v2856_v47 = vshrl.u32 %v2543_v20, 16  ;;  %v2859_v7 = vshll.u32 %v2543_v20, 16  ;;  %v1972_v24 = vadd.f32 %v1901_v46, %v1598_v26  ;;  %v2586_v12 = vrot.slane %v2543_v20, 2 }
 0x3d2   :  { %v2012_v8 = vadd.f32 %v5194_v53, %v1972_v24  ;;  %v2587_v34 = vsel %vm1382_vm4, %v2584_v41, %v2586_v12  ;;  %v2858_v9 = vrot.slane %v2856_v47, 2  ;;  %v2861_v16 = vrot.slane %v2859_v7, 3 }
 0x3d3   :  { %4413 = vmatmul.msk.bf16.gmra.mxu1 %vm189_vm0, %v2587_v34 }
 0x3d4   :  { %v2048_v37 = vmax.f32 %v2012_v8, 0.0  ;;  %4354 = vmatmul.msk.bf16.gmra.mxu3 %vm417_vm1, %v5065_v49  ;;  %v2862_v61 = vor.u32 %v2861_v16, %v2858_v9  ;;  %v1601_v9 = vadd.f32 %v5170_v32, %v5086_v60  ;;  %v6177_v60 = vmov 0  }
 0x3d5   :  { %v1790_v32 = vrot.slane %v6177_v60, 2 }
 0x3d6   :  { %v2077_v43 = vpack.c.bf16 %v2048_v37, %v2047_v0  ;;  %v5307_v57 = vsel %vm1626_vm5, %v2853_v14, %v2862_v61  ;;  %v1600_v14 = vadd.f32 %v5164_v51, %v1288_v23  ;;  %v5316_v46 = vpop.f32.mrf.mxu1 }
 0x3d7   :  { %v1904_v40 = vpop.f32.mrf.mxu3 }
 0x3d8   :  { %v1973_v41 = vadd.f32 %v1904_v40, %v1599_v15  ;;  %4391 = vmatmul.msk.bf16.gmra.mxu0 %vm189_vm0, %v2077_v43  ;;  %v2142_v29 = vshll.u32 %v2077_v43, 16 }
 0x3da   :  { %v2013_v49 = vadd.f32 %v5194_v53, %v1973_v41  ;;  %v2144_v26 = vrot.slane %v2142_v29, 1 }
 0x3dc   :  { %v2049_v1 = vmax.f32 %v2013_v49, 0.0  ;;  %v2145_v38 = vsel %vm879_vm3, %v2140_v6, %v2144_v26 }
 0x3dd   :  { %4368 = vmatmul.msk.bf16.gmra.mxu2 %vm189_vm0, %v2145_v38 }
 0x3de   :  { %v2544_v0 = vpack.c.bf16 %v2049_v1, %v2048_v37  ;;  %v5331_v29 = vpop.f32.mrf.mxu1 }
 0x3df   :  { %v1906_v20 = vpop.f32.mrf.mxu3 }
 0x3e0   :  { %v2865_v63 = vshrl.u32 %v2544_v0, 16  ;;  %v2868_v47 = vshll.u32 %v2544_v0, 16  ;;  %v1974_v7 = vadd.f32 %v1906_v20, %v1600_v14  ;;  %v2588_v24 = vrot.slane %v2544_v0, 2 }
 0x3e2   :  { %v2014_v56 = vadd.f32 %v5194_v53, %v1974_v7  ;;  %v2589_v39 = vsel %vm1382_vm4, %v2586_v12, %v2588_v24  ;;  %v2867_v48 = vrot.slane %v2865_v63, 2  ;;  %v2870_v8 = vrot.slane %v2868_v47, 3  ;;  %v5341_v63 = vpop.f32.mrf.mxu0 }
 0x3e3   :  { %4414 = vmatmul.msk.bf16.gmra.mxu1 %vm189_vm0, %v2589_v39  ;;  %v2146_v12 = vshrl.u32 %v2077_v43, 16  ;;  %v1602_v43 = vadd.f32 %v5176_v17, %v1293_v50 }
 0x3e4   :  { %v2050_v34 = vmax.f32 %v2014_v56, 0.0  ;;  %4355 = vmatmul.msk.bf16.gmra.mxu3 %vm417_vm1, %v5084_v45  ;;  %v2871_v51 = vor.u32 %v2870_v8, %v2867_v48 }
 0x3e5   :  { %v2148_v23 = vor.u32 %v2146_v12, %v2144_v26 }
 0x3e6   :  { %v2078_v16 = vpack.c.bf16 %v2050_v34, %v2049_v1  ;;  %v5326_v37 = vsel %vm1626_vm5, %v2862_v61, %v2871_v51  ;;  %v1791_v61 = vrot.slane %v6177_v60, 3  ;;  %v5349_v48 = vpop.f32.mrf.mxu1 }
 0x3e7   :  { %v1909_v15 = vpop.f32.mrf.mxu3 }
 0x3e8   :  { %v1975_v40 = vadd.f32 %v1909_v15, %v1601_v9  ;;  %4392 = vmatmul.msk.bf16.gmra.mxu0 %vm189_vm0, %v2078_v16  ;;  %v2150_v41 = vshll.u32 %v2078_v16, 16  ;;  %v5339_v52 = vor.u32 %v1791_v61, %v1790_v32  ;;  %v1603_v9 = vadd.f32 %v5182_v2, %v5105_v19 }
 0x3ea   :  { %v2015_v45 = vadd.f32 %v5194_v53, %v1975_v40  ;;  %v2152_v49 = vrot.slane %v2150_v41, 1  ;;  %v1793_v17 = vsel %vm1626_vm5, %v5071_v31, %v5339_v52  ;;  %v2154_v41 = vshrl.u32 %v2078_v16, 16 }
 0x3ec   :  { %v2051_v6 = vmax.f32 %v2015_v45, 0.0  ;;  %v2153_v1 = vsel %vm879_vm3, %v2148_v23, %v2152_v49  ;;  %v1298_v45 = vadd.f32 %v5074_v22, %v5110_v54  ;;  %v2156_v60 = vor.u32 %v2154_v41, %v2152_v49 }
 0x3ed   :  { %4369 = vmatmul.msk.bf16.gmra.mxu2 %vm189_vm0, %v2153_v1 }
 0x3ee   :  { %v2545_v38 = vpack.c.bf16 %v2051_v6, %v2050_v34  ;;  %v1604_v2 = vadd.f32 %v5188_v42, %v1298_v45 }
 0x3ef   :  { %v1911_v14 = vpop.f32.mrf.mxu3 }
 0x3f0   :  { %v2874_v62 = vshrl.u32 %v2545_v38, 16  ;;  %v2877_v0 = vshll.u32 %v2545_v38, 16  ;;  %v1976_v20 = vadd.f32 %v1911_v14, %v1602_v43  ;;  %v2590_v26 = vrot.slane %v2545_v38, 2 }
 0x3f2   :  { %v2016_v47 = vadd.f32 %v5194_v53, %v1976_v20  ;;  %v2591_v7 = vsel %vm1382_vm4, %v2588_v24, %v2590_v26  ;;  %v2876_v56 = vrot.slane %v2874_v62, 2  ;;  %v2879_v39 = vrot.slane %v2877_v0, 3 }
 0x3f3   :  { %4415 = vmatmul.msk.bf16.gmra.mxu1 %vm189_vm0, %v2591_v7 }
 0x3f4   :  { %v2052_v8 = vmax.f32 %v2016_v47, 0.0  ;;  %4356 = vmatmul.msk.bf16.gmra.mxu3 %vm417_vm1, %v1793_v17  ;;  %v2880_v34 = vor.u32 %v2879_v39, %v2876_v56  ;;  %v1605_v47 = vadd.f32 %v5198_v27, %v5114_v44 }
 0x3f5   :  { %v2448_v31 = vpop.f32.mrf.mxu0 }
 0x3f6   :  { %v2079_v15 = vpack.c.bf16 %v2052_v8, %v2051_v6  ;;  %v5355_v24 = vsel %vm1626_vm5, %v2871_v51, %v2880_v34  ;;  %v5364_v51 = vpop.f32.mrf.mxu1 }
 0x3f7   :  { %v1914_v40 = vpop.f32.mrf.mxu3 }
 0x3f8   :  { %v1977_v12 = vadd.f32 %v1914_v40, %v1603_v9  ;;  %4393 = vmatmul.msk.bf16.gmra.mxu0 %vm189_vm0, %v2079_v15  ;;  %v2158_v50 = vshll.u32 %v2079_v15, 16  ;;  %v1303_v40 = vadd.f32 %v5101_v10, %v5118_v28  ;;  %v3849_v28 = vld [vmem:[%s6148_s13] sm:$0xf] }
 0x3fa   :  { %v2017_v23 = vadd.f32 %v5194_v53, %v1977_v12  ;;  %v2160_v32 = vrot.slane %v2158_v50, 1  ;;  %v1606_v50 = vadd.f32 %v5206_v58, %v1303_v40 }
 0x3fc   :  { %v2053_v61 = vmax.f32 %v2017_v23, 0.0  ;;  %v2161_v19 = vsel %vm879_vm3, %v2156_v60, %v2160_v32 }
 0x3fd   :  { %4370 = vmatmul.msk.bf16.gmra.mxu2 %vm189_vm0, %v2161_v19  ;;  %v2450_v0 = vpop.f32.mrf.mxu0 }
 0x3fe   :  { %v2546_v6 = vpack.c.bf16 %v2053_v61, %v2052_v8  ;;  %v5376_v17 = vpop.f32.mrf.mxu1  ;;  %v2162_v8 = vshrl.u32 %v2079_v15, 16 }
 0x3ff   :  { %v1916_v16 = vpop.f32.mrf.mxu3 }
 0x400   :  { %v2883_v1 = vshrl.u32 %v2546_v6, 16  ;;  %v2886_v43 = vshll.u32 %v2546_v6, 16  ;;  %v1978_v38 = vadd.f32 %v1916_v16, %v1604_v2  ;;  %v2592_v14 = vrot.slane %v2546_v6, 2 }
 0x401   :  { %v2164_v12 = vor.u32 %v2162_v8, %v2160_v32  ;;  %v3909_v6 = vsel %vm3469_vm6, %v3849_v28, 0 }
 0x402   :  { %v2018_v22 = vadd.f32 %v5194_v53, %v1978_v38  ;;  %v2593_v54 = vsel %vm1382_vm4, %v2590_v26, %v2592_v14  ;;  %v2885_v49 = vrot.slane %v2883_v1, 2  ;;  %v2888_v62 = vrot.slane %v2886_v43, 3  ;;  %3918 = vmatpush.bf16.msrb.mxu0 %v3909_v6 }
 0x403   :  { %4416 = vmatmul.msk.bf16.gmra.mxu1 %vm189_vm0, %v2593_v54 }
 0x404   :  { %v2054_v20 = vmax.f32 %v2018_v22, 0.0  ;;  %4433 = vmatmul.msk.bf16.vlgmr.msrb.gmra.mxu3 %vm189_vm0, %v5232_v35  ;;  %v2889_v42 = vor.u32 %v2888_v62, %v2885_v49 }
 0x406   :  { %v2080_v7 = vpack.c.bf16 %v2054_v20, %v2053_v61  ;;  %v5374_v56 = vsel %vm1626_vm5, %v2880_v34, %v2889_v42  ;;  %v2453_v34 = vpop.f32.mrf.mxu0 }
 0x407   :  { %v1919_v39 = vpop.f32.mrf.mxu3 }
 0x408   :  { %v1979_v26 = vadd.f32 %v1919_v39, %v1605_v47  ;;  %4394 = vmatmul.msk.bf16.gmra.mxu0 %vm189_vm0, %v2080_v7  ;;  %v2166_v9 = vshll.u32 %v2080_v7, 16  ;;  %v2170_v8 = vshrl.u32 %v2080_v7, 16 }
 0x40a   :  { %v2019_v35 = vadd.f32 %v5194_v53, %v1979_v26  ;;  %v2168_v41 = vrot.slane %v2166_v9, 1 }
 0x40c   :  { %v2055_v44 = vmax.f32 %v2019_v35, 0.0  ;;  %v2169_v27 = vsel %vm879_vm3, %v2164_v12, %v2168_v41  ;;  %v6178_v35 = vld [vmem:[#allocation6_spill] sm:$0xff] }
 0x40d   :  { %4371 = vmatmul.msk.bf16.gmra.mxu2 %vm189_vm0, %v2169_v27 }
 0x40e   :  { %v2547_v45 = vpack.c.bf16 %v2055_v44, %v2054_v20 }
 0x40f   :  { %v1921_v23 = vpop.f32.mrf.mxu3 }
 0x410   :  { %v2892_v60 = vshrl.u32 %v2547_v45, 16  ;;  %v2895_v15 = vshll.u32 %v2547_v45, 16  ;;  %v1980_v61 = vadd.f32 %v1921_v23, %v1606_v50  ;;  %v2307_v19 = vpop.f32.mrf.mxu2  ;;  %v2682_v2 = vpop.f32.mrf.mxu1  ;;  %v2594_v10 = vrot.slane %v2547_v45, 2 }
 0x411   :  { %v2449_v32 = vadd.f32 %v2448_v31, %v2307_v19  ;;  %v1607_v31 = vadd.f32 %v5216_v30, %v5122_v18  ;;  %v2172_v18 = vor.u32 %v2170_v8, %v2168_v41 }
 0x412   :  { %v2020_v16 = vadd.f32 %v5194_v53, %v1980_v61  ;;  %v2595_v1 = vsel %vm1382_vm4, %v2592_v14, %v2594_v10  ;;  %v2894_v58 = vrot.slane %v2892_v60, 2  ;;  %v2897_v43 = vrot.slane %v2895_v15, 3  ;;  %v2455_v14 = vpop.f32.mrf.mxu0 }
 0x413   :  { %v5391_v38 = vadd.f32 %v2682_v2, %v2449_v32  ;;  %4417 = vmatmul.msk.bf16.gmra.mxu1 %vm189_vm0, %v2595_v1 }
 0x414   :  { %v2056_v22 = vmax.f32 %v2020_v16, 0.0  ;;  %4434 = vmatmul.msk.bf16.gmra.mxu3 %vm189_vm0, %v5250_v4  ;;  %v2898_v54 = vor.u32 %v2897_v43, %v2894_v58  ;;  %v6179_v4 = vld [vmem:[#allocation4_spill] sm:$0xff] }
 0x415   :  { %v1308_v12 = vadd.f32 %v6179_v4, %v6178_v35  ;;  %v6181_v35 = vld [vmem:[#allocation8_spill] sm:$0xff]  ;;  %v6182_v4 = vld [vmem:[#allocation5_spill] sm:$0xff] }
 0x416   :  { %v2081_v49 = vpack.c.bf16 %v2056_v22, %v2055_v44  ;;  %v5399_v62 = vsel %vm1626_vm5, %v2889_v42, %v2898_v54 }
 0x417   :  { %v1924_v20 = vpop.f32.mrf.mxu3  ;;  %v1608_v45 = vadd.f32 %v5223_v3, %v1308_v12 }
 0x418   :  { %v1981_v47 = vadd.f32 %v1924_v20, %v1607_v31  ;;  %v2309_v39 = vpop.f32.mrf.mxu2  ;;  %4395 = vmatmul.msk.bf16.gmra.mxu0 %vm189_vm0, %v2081_v49  ;;  %v2684_v26 = vpop.f32.mrf.mxu1  ;;  %v2174_v9 = vshll.u32 %v2081_v49, 16  ;;  %v2178_v8 = vshrl.u32 %v2081_v49, 16 }
 0x419   :  { %v2451_v40 = vadd.f32 %v2450_v0, %v2309_v39 }
 0x41a   :  { %v2021_v27 = vadd.f32 %v5194_v53, %v1981_v47  ;;  %v2176_v30 = vrot.slane %v2174_v9, 1  ;;  %v2458_v28 = vpop.f32.mrf.mxu0 }
 0x41b   :  { %v5405_v44 = vadd.f32 %v2684_v26, %v2451_v40 }
 0x41c   :  { %v2057_v42 = vmax.f32 %v2021_v27, 0.0  ;;  %v2177_v50 = vsel %vm879_vm3, %v2172_v18, %v2176_v30  ;;  %v2180_v27 = vor.u32 %v2178_v8, %v2176_v30 }
 0x41d   :  { %4372 = vmatmul.msk.bf16.gmra.mxu2 %vm189_vm0, %v2177_v50 }
 0x41e   :  { %v2548_v23 = vpack.c.bf16 %v2057_v42, %v2056_v22  ;;  %v6180_v22 = vld [vmem:[#allocation7_spill] sm:$0xff] }
 0x41f   :  { %v1926_v7 = vpop.f32.mrf.mxu3  ;;  %v1609_v31 = vadd.f32 %v5236_v33, %v6180_v22 }
 0x420   :  { %v2901_v60 = vshrl.u32 %v2548_v23, 16  ;;  %v2904_v0 = vshll.u32 %v2548_v23, 16  ;;  %v1982_v15 = vadd.f32 %v1926_v7, %v1608_v45  ;;  %v2312_v61 = vpop.f32.mrf.mxu2  ;;  %v2687_v19 = vpop.f32.mrf.mxu1  ;;  %v2596_v2 = vrot.slane %v2548_v23, 2 }
 0x421   :  { %v2454_v41 = vadd.f32 %v2453_v34, %v2312_v61 }
 0x422   :  { %v2022_v32 = vadd.f32 %v5194_v53, %v1982_v15  ;;  %v2597_v6 = vsel %vm1382_vm4, %v2594_v10, %v2596_v2  ;;  %v2903_v16 = vrot.slane %v2901_v60, 2  ;;  %v2906_v1 = vrot.slane %v2904_v0, 3  ;;  %v2460_v18 = vpop.f32.mrf.mxu0 }
 0x423   :  { %v5412_v58 = vadd.f32 %v2687_v19, %v2454_v41  ;;  %4418 = vmatmul.msk.bf16.gmra.mxu1 %vm189_vm0, %v2597_v6 }
 0x424   :  { %v2058_v3 = vmax.f32 %v2022_v32, 0.0  ;;  %4435 = vmatmul.msk.bf16.gmra.mxu3 %vm189_vm0, %v5266_v13  ;;  %v2907_v43 = vor.u32 %v2906_v1, %v2903_v16  ;;  %v1313_v13 = vadd.f32 %v6182_v4, %v6181_v35 }
 0x426   :  { %v2082_v20 = vpack.c.bf16 %v2058_v3, %v2057_v42  ;;  %v5420_v34 = vsel %vm1626_vm5, %v2898_v54, %v2907_v43  ;;  %v1610_v45 = vadd.f32 %v5245_v59, %v1313_v13 }
 0x427   :  { %v1929_v47 = vpop.f32.mrf.mxu3 }
 0x428   :  { %v1983_v10 = vadd.f32 %v1929_v47, %v1609_v31  ;;  %v2314_v39 = vpop.f32.mrf.mxu2  ;;  %4396 = vmatmul.msk.bf16.gmra.mxu0 %vm189_vm0, %v2082_v20  ;;  %v2689_v26 = vpop.f32.mrf.mxu1  ;;  %v2182_v9 = vshll.u32 %v2082_v20, 16 }
 0x429   :  { %v2456_v40 = vadd.f32 %v2455_v14, %v2314_v39 }
 0x42a   :  { %v2023_v12 = vadd.f32 %v5194_v53, %v1983_v10  ;;  %v2184_v33 = vrot.slane %v2182_v9, 1  ;;  %v2463_v1 = vpop.f32.mrf.mxu0 }
 0x42b   :  { %v5426_v42 = vadd.f32 %v2689_v26, %v2456_v40  ;;  %v2186_v26 = vshrl.u32 %v2082_v20, 16  ;;  %v6184_v40 = vld [vmem:[#allocation11_spill] sm:$0xff] }
 0x42c   :  { %v2059_v54 = vmax.f32 %v2023_v12, 0.0  ;;  %v2185_v50 = vsel %vm879_vm3, %v2180_v27, %v2184_v33 }
 0x42d   :  { %4373 = vmatmul.msk.bf16.gmra.mxu2 %vm189_vm0, %v2185_v50  ;;  %v2188_v13 = vor.u32 %v2186_v26, %v2184_v33 }
 0x42e   :  { %v2549_v49 = vpack.c.bf16 %v2059_v54, %v2058_v3  ;;  %v6183_v3 = vld [vmem:[#allocation10_spill] sm:$0xff] }
 0x42f   :  { %v1931_v23 = vpop.f32.mrf.mxu3  ;;  %v1611_v22 = vadd.f32 %v5257_v36, %v6183_v3 }
 0x430   :  { %v2910_v14 = vshrl.u32 %v2549_v49, 16  ;;  %v2913_v7 = vshll.u32 %v2549_v49, 16  ;;  %v1984_v60 = vadd.f32 %v1931_v23, %v1610_v45  ;;  %v2317_v0 = vpop.f32.mrf.mxu2  ;;  %v5431_v15 = vpop.f32.mrf.mxu1  ;;  %v2598_v30 = vrot.slane %v2549_v49, 2 }
 0x431   :  { %v5433_v61 = vadd.f32 %v2458_v28, %v2317_v0 }
 0x432   :  { %v2024_v19 = vadd.f32 %v5194_v53, %v1984_v60  ;;  %v2599_v41 = vsel %vm1382_vm4, %v2596_v2, %v2598_v30  ;;  %v2912_v32 = vrot.slane %v2910_v14, 2  ;;  %v2915_v6 = vrot.slane %v2913_v7, 3  ;;  %v2465_v20 = vpop.f32.mrf.mxu0 }
 0x433   :  { %4419 = vmatmul.msk.bf16.gmra.mxu1 %vm189_vm0, %v2599_v41 }
 0x434   :  { %v2060_v59 = vmax.f32 %v2024_v19, 0.0  ;;  %4436 = vmatmul.msk.bf16.gmra.mxu3 %vm189_vm0, %v5286_v5  ;;  %v2916_v16 = vor.u32 %v2915_v6, %v2912_v32  ;;  %v6185_v5 = vld [vmem:[#allocation9_spill] sm:$0xff] }
 0x435   :  { %v1318_v35 = vadd.f32 %v6185_v5, %v6184_v40  ;;  %v6188_v40 = vld [vmem:[#allocation12_spill] sm:$0xff] }
 0x436   :  { %v2083_v31 = vpack.c.bf16 %v2060_v59, %v2059_v54  ;;  %v5443_v28 = vsel %vm1626_vm5, %v2907_v43, %v2916_v16 }
 0x437   :  { %v1934_v47 = vpop.f32.mrf.mxu3  ;;  %v1612_v54 = vadd.f32 %v5268_v55, %v1318_v35 }
 0x438   :  { %v1985_v10 = vadd.f32 %v1934_v47, %v1611_v22  ;;  %v2319_v2 = vpop.f32.mrf.mxu2  ;;  %4397 = vmatmul.msk.bf16.gmra.mxu0 %vm189_vm0, %v2083_v31  ;;  %v2694_v39 = vpop.f32.mrf.mxu1  ;;  %v2190_v8 = vshll.u32 %v2083_v31, 16 }
 0x439   :  { %v2461_v9 = vadd.f32 %v2460_v18, %v2319_v2 }
 0x43a   :  { %v2025_v4 = vadd.f32 %v5194_v53, %v1985_v10  ;;  %v2192_v36 = vrot.slane %v2190_v8, 1  ;;  %v2468_v5 = vpop.f32.mrf.mxu0 }
 0x43b   :  { %v5449_v12 = vadd.f32 %v2694_v39, %v2461_v9  ;;  %v2194_v39 = vshrl.u32 %v2083_v31, 16  ;;  %v6187_v9 = vld [vmem:[#allocation14_spill] sm:$0xff] }
 0x43c   :  { %v2061_v43 = vmax.f32 %v2025_v4, 0.0  ;;  %v2193_v27 = vsel %vm879_vm3, %v2188_v13, %v2192_v36 }
 0x43d   :  { %4374 = vmatmul.msk.bf16.gmra.mxu2 %vm189_vm0, %v2193_v27 }
 0x43e   :  { %v2550_v50 = vpack.c.bf16 %v2061_v43, %v2060_v59  ;;  %v6186_v59 = vld [vmem:[#allocation13_spill] sm:$0xff] }
 0x43f   :  { %v1936_v45 = vpop.f32.mrf.mxu3  ;;  %v1613_v3 = vadd.f32 %v5276_v21, %v6186_v59  ;;  %v2196_v21 = vor.u32 %v2194_v39, %v2192_v36  ;;  %v6189_v59 = vld [vmem:[#allocation15_spill] sm:$0xff] }
 0x440   :  { %v2919_v18 = vshrl.u32 %v2550_v50, 16  ;;  %v2922_v49 = vshll.u32 %v2550_v50, 16  ;;  %v1986_v23 = vadd.f32 %v1936_v45, %v1612_v54  ;;  %v2322_v14 = vpop.f32.mrf.mxu2  ;;  %v5454_v7 = vpop.f32.mrf.mxu1  ;;  %v2600_v33 = vrot.slane %v2550_v50, 2 }
 0x441   :  { %v5456_v60 = vadd.f32 %v2463_v1, %v2322_v14 }
 0x442   :  { %v2026_v0 = vadd.f32 %v5194_v53, %v1986_v23  ;;  %v2601_v19 = vsel %vm1382_vm4, %v2598_v30, %v2600_v33  ;;  %v2921_v41 = vrot.slane %v2919_v18, 2  ;;  %v2924_v32 = vrot.slane %v2922_v49, 3 }
 0x443   :  { %4420 = vmatmul.msk.bf16.gmra.mxu1 %vm189_vm0, %v2601_v19 }
 0x444   :  { %v2062_v55 = vmax.f32 %v2026_v0, 0.0  ;;  %4437 = vmatmul.msk.bf16.gmra.mxu3 %vm189_vm0, %v5307_v57  ;;  %v2925_v6 = vor.u32 %v2924_v32, %v2921_v41  ;;  %v1323_v57 = vadd.f32 %v6188_v40, %v6187_v9  ;;  %v6190_v40 = vld [vmem:[#allocation17_spill] sm:$0xff] }
 0x446   :  { %v2084_v22 = vpack.c.bf16 %v2062_v55, %v2061_v43  ;;  %v5466_v1 = vsel %vm1626_vm5, %v2916_v16, %v2925_v6  ;;  %v1614_v27 = vadd.f32 %v5292_v11, %v1323_v57  ;;  %v2470_v11 = vpop.f32.mrf.mxu0  ;;  %v6191_v57 = vld [vmem:[#allocation16_spill] sm:$0xff] }
 0x447   :  { %v1939_v47 = vpop.f32.mrf.mxu3 }
 0x448   :  { %v1987_v10 = vadd.f32 %v1939_v47, %v1613_v3  ;;  %v2324_v2 = vpop.f32.mrf.mxu2  ;;  %4398 = vmatmul.msk.bf16.gmra.mxu0 %vm189_vm0, %v2084_v22  ;;  %v2699_v30 = vpop.f32.mrf.mxu1  ;;  %v2198_v26 = vshll.u32 %v2084_v22, 16  ;;  %v1615_v3 = vadd.f32 %v5304_v25, %v6189_v59  ;;  %v6192_v59 = vld [vmem:[#allocation18_spill] sm:$0xff] }
 0x449   :  { %v2466_v8 = vadd.f32 %v2465_v20, %v2324_v2 }
 0x44a   :  { %v2027_v35 = vadd.f32 %v5194_v53, %v1987_v10  ;;  %v2200_v4 = vrot.slane %v2198_v26, 1  ;;  %v2202_v26 = vshrl.u32 %v2084_v22, 16 }
 0x44b   :  { %v5472_v13 = vadd.f32 %v2699_v30, %v2466_v8 }
 0x44c   :  { %v2063_v16 = vmax.f32 %v2027_v35, 0.0  ;;  %v2201_v43 = vsel %vm879_vm3, %v2196_v21, %v2200_v4  ;;  %v2204_v35 = vor.u32 %v2202_v26, %v2200_v4 }
 0x44d   :  { %4375 = vmatmul.msk.bf16.gmra.mxu2 %vm189_vm0, %v2201_v43 }
 0x44e   :  { %v2551_v31 = vpack.c.bf16 %v2063_v16, %v2062_v55 }
 0x44f   :  { %v1941_v54 = vpop.f32.mrf.mxu3 }
 0x450   :  { %v2928_v50 = vshrl.u32 %v2551_v31, 16  ;;  %v2931_v20 = vshll.u32 %v2551_v31, 16  ;;  %v1988_v45 = vadd.f32 %v1941_v54, %v1614_v27  ;;  %v2327_v18 = vpop.f32.mrf.mxu2  ;;  %v5477_v49 = vpop.f32.mrf.mxu1  ;;  %v2602_v23 = vrot.slane %v2551_v31, 2 }
 0x451   :  { %v5479_v36 = vadd.f32 %v2468_v5, %v2327_v18  ;;  %v2473_v27 = vpop.f32.mrf.mxu0 }
 0x452   :  { %v2028_v14 = vadd.f32 %v5194_v53, %v1988_v45  ;;  %v2603_v0 = vsel %vm1382_vm4, %v2600_v33, %v2602_v23  ;;  %v2930_v19 = vrot.slane %v2928_v50, 2  ;;  %v2933_v41 = vrot.slane %v2931_v20, 3 }
 0x453   :  { %4421 = vmatmul.msk.bf16.gmra.mxu1 %vm189_vm0, %v2603_v0 }
 0x454   :  { %v2064_v32 = vmax.f32 %v2028_v14, 0.0  ;;  %4438 = vmatmul.msk.bf16.gmra.mxu3 %vm189_vm0, %v5326_v37  ;;  %v2934_v55 = vor.u32 %v2933_v41, %v2930_v19  ;;  %v1328_v37 = vadd.f32 %v6191_v57, %v6190_v40  ;;  %v6193_v40 = vld [vmem:[#allocation20_spill] sm:$0xff]  ;;  %v6194_v57 = vld [vmem:[#allocation19_spill] sm:$0xff] }
 0x456   :  { %v2085_v47 = vpack.c.bf16 %v2064_v32, %v2063_v16  ;;  %v5489_v10 = vsel %vm1626_vm5, %v2925_v6, %v2934_v55  ;;  %v1616_v43 = vadd.f32 %v5316_v46, %v1328_v37 }
 0x457   :  { %v1944_v2 = vpop.f32.mrf.mxu3 }
 0x458   :  { %v1989_v30 = vadd.f32 %v1944_v2, %v1615_v3  ;;  %v2329_v33 = vpop.f32.mrf.mxu2  ;;  %4399 = vmatmul.msk.bf16.gmra.mxu0 %vm189_vm0, %v2085_v47  ;;  %v2704_v39 = vpop.f32.mrf.mxu1  ;;  %v2206_v8 = vshll.u32 %v2085_v47, 16  ;;  %v1617_v3 = vadd.f32 %v5331_v29, %v6192_v59  ;;  %v2210_v26 = vshrl.u32 %v2085_v47, 16  ;;  %v4538_v29 = vld [vmem:[%s6145_s8] ss:$0 sm:$0xff] }
 0x459   :  { %v2471_v9 = vadd.f32 %v2470_v11, %v2329_v33 }
 0x45a   :  { %v2029_v5 = vadd.f32 %v5194_v53, %v1989_v30  ;;  %v2208_v25 = vrot.slane %v2206_v8, 1 }
 0x45b   :  { %v5495_v21 = vadd.f32 %v2704_v39, %v2471_v9 }
 0x45c   :  { %v2065_v6 = vmax.f32 %v2029_v5, 0.0  ;;  %v2209_v16 = vsel %vm879_vm3, %v2204_v35, %v2208_v25 }
 0x45d   :  { %4376 = vmatmul.msk.bf16.gmra.mxu2 %vm189_vm0, %v2209_v16 }
 0x45e   :  { %v2552_v22 = vpack.c.bf16 %v2065_v6, %v2064_v32 }
 0x45f   :  { %v1946_v31 = vpop.f32.mrf.mxu3 }
 0x460   :  { %v2937_v54 = vshrl.u32 %v2552_v22, 16  ;;  %v2940_v50 = vshll.u32 %v2552_v22, 16  ;;  %v1990_v20 = vadd.f32 %v1946_v31, %v1616_v43  ;;  %v2332_v45 = vpop.f32.mrf.mxu2  ;;  %v5500_v18 = vpop.f32.mrf.mxu1  ;;  %v2604_v4 = vrot.slane %v2552_v22, 2 }
 0x461   :  { %v5502_v14 = vadd.f32 %v2473_v27, %v2332_v45 }
 0x462   :  { %v2030_v0 = vadd.f32 %v5194_v53, %v1990_v20  ;;  %v2605_v19 = vsel %vm1382_vm4, %v2602_v23, %v2604_v4  ;;  %v2939_v41 = vrot.slane %v2937_v54, 2  ;;  %v2942_v11 = vrot.slane %v2940_v50, 3  ;;  %v2475_v53 = vpop.f32.mrf.mxu0 }
 0x463   :  { %4422 = vmatmul.msk.bf16.gmra.mxu1 %vm189_vm0, %v2605_v19 }
 0x464   :  { %v2066_v46 = vmax.f32 %v2030_v0, 0.0  ;;  %4439 = vmatmul.msk.bf16.gmra.mxu3 %vm189_vm0, %v5355_v24  ;;  %v2943_v32 = vor.u32 %v2942_v11, %v2939_v41  ;;  %v1333_v24 = vadd.f32 %v6194_v57, %v6193_v40 }
 0x466   :  { %v2086_v2 = vpack.c.bf16 %v2066_v46, %v2065_v6  ;;  %v5512_v30 = vsel %vm1626_vm5, %v2934_v55, %v2943_v32  ;;  %v2212_v55 = vor.u32 %v2210_v26, %v2208_v25  ;;  %v1618_v47 = vadd.f32 %v5349_v48, %v1333_v24 }
 0x467   :  { %v1949_v33 = vpop.f32.mrf.mxu3 }
 0x468   :  { %v1991_v39 = vadd.f32 %v1949_v33, %v1617_v3  ;;  %v2334_v23 = vpop.f32.mrf.mxu2  ;;  %4400 = vmatmul.msk.bf16.gmra.mxu0 %vm189_vm0, %v2086_v2  ;;  %v2214_v8 = vshll.u32 %v2086_v2, 16  ;;  %v2709_v5 = vpop.f32.mrf.mxu1 }
 0x469   :  { %v2476_v9 = vadd.f32 %v2475_v53, %v2334_v23 }
 0x46a   :  { %v2031_v37 = vadd.f32 %v4538_v29, %v1991_v39  ;;  %v2216_v35 = vrot.slane %v2214_v8, 1  ;;  %v6196_v8 = vld [vmem:[#allocation22_spill] sm:$0xff] }
 0x46b   :  { %v5520_v6 = vadd.f32 %v2709_v5, %v2476_v9  ;;  %v1338_v9 = vadd.f32 %v5341_v63, %v6196_v8 }
 0x46c   :  { %v2067_v16 = vmax.f32 %v2031_v37, 0.0  ;;  %v2217_v43 = vsel %vm879_vm3, %v2212_v55, %v2216_v35 }
 0x46d   :  { %4377 = vmatmul.msk.bf16.gmra.mxu2 %vm189_vm0, %v2217_v43 }
 0x46e   :  { %v2553_v27 = vpack.c.bf16 %v2067_v16, %v2066_v46  ;;  %v6195_v46 = vld [vmem:[#allocation21_spill] sm:$0xff] }
 0x46f   :  { %v1951_v22 = vpop.f32.mrf.mxu3  ;;  %v1619_v59 = vadd.f32 %v5364_v51, %v6195_v46 }
 0x470   :  { %v2946_v31 = vshrl.u32 %v2553_v27, 16  ;;  %v2949_v54 = vshll.u32 %v2553_v27, 16  ;;  %v1992_v50 = vadd.f32 %v1951_v22, %v1618_v47  ;;  %v5525_v20 = vpop.f32.mrf.mxu2  ;;  %v2606_v45 = vrot.slane %v2553_v27, 2 }
 0x472   :  { %v2032_v0 = vadd.f32 %v4538_v29, %v1992_v50  ;;  %v2607_v25 = vsel %vm1382_vm4, %v2604_v4, %v2606_v45  ;;  %v2948_v19 = vrot.slane %v2946_v31, 2  ;;  %v2951_v41 = vrot.slane %v2949_v54, 3 }
 0x473   :  { %4423 = vmatmul.msk.bf16.gmra.mxu1 %vm189_vm0, %v2607_v25  ;;  %v2218_v4 = vshrl.u32 %v2086_v2, 16 }
 0x474   :  { %v2068_v11 = vmax.f32 %v2032_v0, 0.0  ;;  %4440 = vmatmul.msk.bf16.gmra.mxu3 %vm189_vm0, %v5374_v56  ;;  %v2952_v48 = vor.u32 %v2951_v41, %v2948_v19 }
 0x475   :  { %v2220_v40 = vor.u32 %v2218_v4, %v2216_v35 }
 0x476   :  { %v2087_v3 = vpack.c.bf16 %v2068_v11, %v2067_v16  ;;  %v5534_v33 = vsel %vm1626_vm5, %v2943_v32, %v2952_v48  ;;  %v1620_v32 = vadd.f32 %v5376_v17, %v1338_v9 }
 0x477   :  { %v1954_v53 = vpop.f32.mrf.mxu3 }
 0x478   :  { %v1993_v39 = vadd.f32 %v1954_v53, %v1619_v59  ;;  %v5536_v23 = vpop.f32.mrf.mxu2  ;;  %4401 = vmatmul.msk.bf16.gmra.mxu0 %vm189_vm0, %v2087_v3  ;;  %v2222_v26 = vshll.u32 %v2087_v3, 16 }
 0x47a   :  { %v2033_v56 = vadd.f32 %v4538_v29, %v1993_v39  ;;  %v2224_v57 = vrot.slane %v2222_v26, 1 }
 0x47c   :  { %v2069_v24 = vmax.f32 %v2033_v56, 0.0  ;;  %v2225_v51 = vsel %vm879_vm3, %v2220_v40, %v2224_v57 }
 0x47d   :  { %4378 = vmatmul.msk.bf16.gmra.mxu2 %vm189_vm0, %v2225_v51 }
 0x47e   :  { %v2554_v37 = vpack.c.bf16 %v2069_v24, %v2068_v11 }
 0x47f   :  { %v1956_v5 = vpop.f32.mrf.mxu3 }
 0x480   :  { %v2955_v55 = vshrl.u32 %v2554_v37, 16  ;;  %v2958_v16 = vshll.u32 %v2554_v37, 16  ;;  %v1994_v43 = vadd.f32 %v1956_v5, %v1620_v32  ;;  %v5544_v2 = vpop.f32.mrf.mxu2  ;;  %v2608_v47 = vrot.slane %v2554_v37, 2 }
 0x482   :  { %v2034_v27 = vadd.f32 %v4538_v29, %v1994_v43  ;;  %v2609_v63 = vsel %vm1382_vm4, %v2606_v45, %v2608_v47  ;;  %v2957_v35 = vrot.slane %v2955_v55, 2  ;;  %v2960_v22 = vrot.slane %v2958_v16, 3 }
 0x483   :  { %4424 = vmatmul.msk.bf16.gmra.mxu1 %vm189_vm0, %v2609_v63  ;;  %v2226_v29 = vshrl.u32 %v2087_v3, 16 }
 0x484   :  { %v2070_v31 = vmax.f32 %v2034_v27, 0.0  ;;  %4441 = vmatmul.msk.bf16.gmra.mxu3 %vm189_vm0, %v5399_v62  ;;  %v2961_v17 = vor.u32 %v2960_v22, %v2957_v35  ;;  %v5560_v62 = vld [vmem:[%s6147_s10] ss:$0 sm:$0xff] }
 0x485   :  { %v2228_v53 = vor.u32 %v2226_v29, %v2224_v57 }
 0x486   :  { %v2088_v54 = vpack.c.bf16 %v2070_v31, %v2069_v24  ;;  %v2555_v50 = vpack.c.bf16 0.0, %v2070_v31  ;;  %v5551_v0 = vsel %vm1626_vm5, %v2952_v48, %v2961_v17  ;;  %v6197_v31 = vld [vmem:[#allocation2_spill] sm:$0xff] }
 0x487   :  { %v3042_v25 = vpop.f32.mrf.mxu3 }
 0x488   :  { %v5553_v19 = vpop.f32.mrf.mxu2  ;;  %4402 = vmatmul.msk.bf16.gmra.mxu0 %vm189_vm0, %v2088_v54  ;;  %v2230_v45 = vshll.u32 %v2088_v54, 16  ;;  %v2610_v41 = vrot.slane %v2555_v50, 2  ;;  %v2964_v11 = vshrl.u32 %v2555_v50, 16  ;;  %v2967_v46 = vshll.u32 %v2555_v50, 16 }
 0x489   :  { %v3132_v59 = vadd.f32 %v3042_v25, %v5391_v38  ;;  %v2234_v55 = vshrl.u32 %v2088_v54, 16 }
 0x48a   :  { %v2232_v48 = vrot.slane %v2230_v45, 1  ;;  %v2611_v39 = vsel %vm1382_vm4, %v2608_v47, %v2610_v41  ;;  %v2966_v4 = vrot.slane %v2964_v11, 2  ;;  %v2969_v26 = vrot.slane %v2967_v46, 3  ;;  %v6198_v11 = vld [vmem:[#allocation3_spill] sm:$0xff] }
 0x48b   :  { %v3172_v9 = vadd.f32 %v5560_v62, %v3132_v59  ;;  %v2612_v46 = vsel %vm1382_vm4, %v2610_v41, %v6198_v11 }
 0x48c   :  { %v2233_v8 = vsel %vm879_vm3, %v2228_v53, %v2232_v48  ;;  %v5565_v3 = vor.u32 %v2969_v26, %v2966_v4  ;;  %v2236_v27 = vor.u32 %v2234_v55, %v2232_v48  ;;  %v2776_v53 = vadd.f32 %v5431_v15, %v5433_v61  ;;  %v5608_v55 = vpop.f32.mrf.mxu0 }
 0x48d   :  { %4379 = vmatmul.msk.bf16.gmra.mxu2 %vm189_vm0, %v2233_v8  ;;  %v3208_v24 = vmax.f32 %v3172_v9, 0.0 }
 0x48e   :  { %v5570_v56 = vsel %vm1626_vm5, %v2961_v17, %v5565_v3  ;;  %v2237_v17 = vsel %vm879_vm3, %v2236_v27, %v6197_v31 }
 0x48f   :  { %v3044_v38 = vpop.f32.mrf.mxu3  ;;  %v3282_v37 = vrot.slane %v3208_v24, 1 }
 0x490   :  { %v3133_v40 = vadd.f32 %v3044_v38, %v5405_v44  ;;  %v5573_v57 = vpop.f32.mrf.mxu2 }
 0x492   :  { %v3173_v51 = vadd.f32 %v5560_v62, %v3133_v40 }
 0x493   :  { %4425 = vmatmul.msk.bf16.gmra.mxu1 %vm189_vm0, %v2611_v39 }
 0x494   :  { %v3209_v32 = vmax.f32 %v3173_v51, 0.0  ;;  %4442 = vmatmul.msk.bf16.gmra.mxu3 %vm189_vm0, %v5420_v34  ;;  %v5623_v11 = vpop.f32.mrf.mxu0 }
 0x496   :  { %v3283_v5 = vrot.slane %v3209_v32, 1 }
 0x497   :  { %v3047_v16 = vpop.f32.mrf.mxu3 }
 0x498   :  { %v3284_v43 = vsel %vm3281_vm7, %v3282_v37, %v3283_v5  ;;  %v3134_v44 = vadd.f32 %v3047_v16, %v5412_v58  ;;  %v5581_v47 = vpop.f32.mrf.mxu2 }
 0x499   :  { %v3391_v63 = vmax.f32 %v3208_v24, %v3284_v43 }
 0x49a   :  { %v3174_v35 = vadd.f32 %v5560_v62, %v3134_v44 }
 0x49c   :  { %v3210_v22 = vmax.f32 %v3174_v35, 0.0 }
 0x49d   :  { %4380 = vmatmul.msk.bf16.gmra.mxu2 %vm189_vm0, %v2237_v17 }
 0x49e   :  { %v3285_v34 = vrot.slane %v3210_v22, 1 }
 0x49f   :  { %v3049_v50 = vpop.f32.mrf.mxu3 }
 0x4a0   :  { %v3286_v54 = vsel %vm3281_vm7, %v3283_v5, %v3285_v34  ;;  %v3135_v25 = vadd.f32 %v3049_v50, %v5426_v42  ;;  %v5589_v29 = vpop.f32.mrf.mxu2 }
 0x4a1   :  { %v3392_v58 = vmax.f32 %v3209_v32, %v3286_v54 }
 0x4a2   :  { %v3175_v45 = vadd.f32 %v5560_v62, %v3135_v25 }
 0x4a3   :  { %4426 = vmatmul.msk.bf16.gmra.mxu1 %vm189_vm0, %v2612_v46  ;;  %v3470_v41 = vrot.slane %v3392_v58, 4 }
 0x4a4   :  { %v3211_v59 = vmax.f32 %v3175_v45, 0.0  ;;  %4443 = vmatmul.msk.bf16.gmra.mxu3 %vm189_vm0, %v5443_v28 }
 0x4a6   :  { %v3287_v48 = vrot.slane %v3211_v59, 1 }
 0x4a7   :  { %v3052_v39 = vpop.f32.mrf.mxu3 }
 0x4a8   :  { %v3288_v42 = vsel %vm3281_vm7, %v3285_v34, %v3287_v48  ;;  %v3136_v4 = vadd.f32 %v3052_v39, %v2776_v53  ;;  %v5600_v26 = vpop.f32.mrf.mxu2 }
 0x4a9   :  { %v3393_v8 = vmax.f32 %v3210_v22, %v3288_v42 }
 0x4aa   :  { %v3176_v9 = vadd.f32 %v5560_v62, %v3136_v4 }
 0x4ab   :  { %v3471_v38 = vrot.slane %v3393_v8, 4 }
 0x4ac   :  { %v3212_v40 = vmax.f32 %v3176_v9, 0.0 }
 0x4ad   :  { %v3472_v24 = vsel %vm3469_vm6, %v3470_v41, %v3471_v38 }
 0x4ae   :  { %v3579_v51 = vmax.f32 %v3391_v63, %v3472_v24  ;;  %v3289_v28 = vrot.slane %v3212_v40, 1  ;;  %v2778_v63 = vadd.f32 %v5454_v7, %v5456_v60  ;;  %v5638_v24 = vpop.f32.mrf.mxu0 }
 0x4af   :  { %v3054_v32 = vpop.f32.mrf.mxu3 }
 0x4b0   :  { %v3290_v15 = vsel %vm3281_vm7, %v3287_v48, %v3289_v28  ;;  %v3137_v61 = vadd.f32 %v3054_v32, %v5449_v12  ;;  %v5606_v37 = vpop.f32.mrf.mxu2  ;;  %v5616_v12 = vpop.f32.mrf.mxu1 }
 0x4b1   :  { %v3394_v5 = vmax.f32 %v3211_v59, %v3290_v15 }
 0x4b2   :  { %v3177_v16 = vadd.f32 %v5560_v62, %v3137_v61 }
 0x4b3   :  { %v3473_v43 = vrot.slane %v3394_v5, 4 }
 0x4b4   :  { %v3213_v44 = vmax.f32 %v3177_v16, 0.0  ;;  %4444 = vmatmul.msk.bf16.gmra.mxu3 %vm189_vm0, %v5466_v1 }
 0x4b5   :  { %v3474_v27 = vsel %vm3469_vm6, %v3471_v38, %v3473_v43 }
 0x4b6   :  { %v3580_v35 = vmax.f32 %v3392_v58, %v3474_v27  ;;  %v3291_v22 = vrot.slane %v3213_v44, 1 }
 0x4b7   :  { %v3057_v31 = vpop.f32.mrf.mxu3 }
 0x4b8   :  { %v3292_v17 = vsel %vm3281_vm7, %v3289_v28, %v3291_v22  ;;  %v3138_v34 = vadd.f32 %v3057_v31, %v2778_v63  ;;  %v5619_v50 = vpop.f32.mrf.mxu2  ;;  %v3615_v54 = vpack.c.bf16 %v3580_v35, %v3579_v51  ;;  %v5630_v42 = vpop.f32.mrf.mxu1 }
 0x4b9   :  { %v3395_v25 = vmax.f32 %v3212_v40, %v3292_v17 }
 0x4ba   :  { %v3178_v1 = vadd.f32 %v5560_v62, %v3138_v34  ;;  %4451 = vmatmul.msk.bf16.vlgmr.msrb.gmra.mxu2 %vm3638_vm8, %v3615_v54 }
 0x4bb   :  { %v3475_v45 = vrot.slane %v3395_v25, 4 }
 0x4bc   :  { %v3214_v7 = vmax.f32 %v3178_v1, 0.0 }
 0x4bd   :  { %v3476_v60 = vsel %vm3469_vm6, %v3473_v43, %v3475_v45 }
 0x4be   :  { %v3293_v58 = vrot.slane %v3214_v7, 1  ;;  %v3581_v46 = vmax.f32 %v3393_v8, %v3476_v60  ;;  %v2780_v8 = vadd.f32 %v5477_v49, %v5479_v36 }
 0x4bf   :  { %v3059_v59 = vpop.f32.mrf.mxu3 }
 0x4c0   :  { %v3294_v53 = vsel %vm3281_vm7, %v3291_v22, %v3293_v58  ;;  %v3139_v48 = vadd.f32 %v3059_v59, %v5472_v13  ;;  %v5628_v39 = vpop.f32.mrf.mxu2  ;;  %v5648_v22 = vpop.f32.mrf.mxu0 }
 0x4c1   :  { %v3396_v4 = vmax.f32 %v3213_v44, %v3294_v53 }
 0x4c2   :  { %v3179_v9 = vadd.f32 %v5560_v62, %v3139_v48 }
 0x4c3   :  { %v3477_v41 = vrot.slane %v3396_v4, 4 }
 0x4c4   :  { %v3215_v38 = vmax.f32 %v3179_v9, 0.0  ;;  %4445 = vmatmul.msk.bf16.gmra.mxu3 %vm189_vm0, %v5489_v10  ;;  %v5645_v10 = vpop.f32.mrf.mxu1 }
 0x4c5   :  { %v3478_v40 = vsel %vm3469_vm6, %v3475_v45, %v3477_v41 }
 0x4c6   :  { %v3295_v13 = vrot.slane %v3215_v38, 1  ;;  %v3582_v51 = vmax.f32 %v3394_v5, %v3478_v40 }
 0x4c7   :  { %v3062_v28 = vpop.f32.mrf.mxu3 }
 0x4c8   :  { %v3296_v32 = vsel %vm3281_vm7, %v3293_v58, %v3295_v13  ;;  %v3140_v15 = vadd.f32 %v3062_v28, %v2780_v8  ;;  %v5641_v61 = vpop.f32.mrf.mxu2  ;;  %v3616_v16 = vpack.c.bf16 %v3582_v51, %v3581_v46  ;;  %v2782_v58 = vadd.f32 %v5500_v18, %v5502_v14  ;;  %v5665_v40 = vpop.f32.mrf.mxu0 }
 0x4c9   :  { %v3397_v43 = vmax.f32 %v3214_v7, %v3296_v32 }
 0x4ca   :  { %v3180_v44 = vadd.f32 %v5560_v62, %v3140_v15  ;;  %4452 = vmatmul.msk.bf16.gmra.mxu2 %vm3638_vm8, %v3616_v16 }
 0x4cb   :  { %v3479_v27 = vrot.slane %v3397_v43, 4 }
 0x4cc   :  { %v3216_v49 = vmax.f32 %v3180_v44, 0.0  ;;  %v5657_v60 = vpop.f32.mrf.mxu1 }
 0x4cd   :  { %v3480_v36 = vsel %vm3469_vm6, %v3477_v41, %v3479_v27 }
 0x4ce   :  { %v3297_v63 = vrot.slane %v3216_v49, 1  ;;  %v3583_v5 = vmax.f32 %v3395_v25, %v3480_v36 }
 0x4cf   :  { %v3064_v35 = vpop.f32.mrf.mxu3 }
 0x4d0   :  { %v3298_v31 = vsel %vm3281_vm7, %v3295_v13, %v3297_v63  ;;  %v3141_v17 = vadd.f32 %v3064_v35, %v5495_v21  ;;  %v5652_v34 = vpop.f32.mrf.mxu2 }
 0x4d1   :  { %v3398_v54 = vmax.f32 %v3215_v38, %v3298_v31 }
 0x4d2   :  { %v3181_v1 = vadd.f32 %v5560_v62, %v3141_v17 }
 0x4d3   :  { %v3481_v45 = vrot.slane %v3398_v54, 4 }
 0x4d4   :  { %v3217_v7 = vmax.f32 %v3181_v1, 0.0  ;;  %4446 = vmatmul.msk.bf16.gmra.mxu3 %vm189_vm0, %v5512_v30  ;;  %v5670_v51 = vpop.f32.mrf.mxu1 }
 0x4d5   :  { %v3482_v25 = vsel %vm3469_vm6, %v3479_v27, %v3481_v45  ;;  %v2479_v27 = vadd.f32 %v5608_v55, %v5525_v20 }
 0x4d6   :  { %v3299_v46 = vrot.slane %v3217_v7, 1  ;;  %v3584_v59 = vmax.f32 %v3396_v4, %v3482_v25 }
 0x4d7   :  { %v3067_v21 = vpop.f32.mrf.mxu3  ;;  %v2784_v35 = vadd.f32 %v5616_v12, %v2479_v27 }
 0x4d8   :  { %v3300_v53 = vsel %vm3281_vm7, %v3297_v63, %v3299_v46  ;;  %v3142_v48 = vadd.f32 %v3067_v21, %v2782_v58  ;;  %v5663_v9 = vpop.f32.mrf.mxu2  ;;  %v3617_v41 = vpack.c.bf16 %v3584_v59, %v3583_v5  ;;  %v5679_v63 = vpop.f32.mrf.mxu0 }
 0x4d9   :  { %v3399_v38 = vmax.f32 %v3216_v49, %v3300_v53 }
 0x4da   :  { %v3182_v30 = vadd.f32 %v5560_v62, %v3142_v48  ;;  %4453 = vmatmul.msk.bf16.gmra.mxu2 %vm3638_vm8, %v3617_v41 }
 0x4db   :  { %v3483_v8 = vrot.slane %v3399_v38, 4 }
 0x4dc   :  { %v3218_v13 = vmax.f32 %v3182_v30, 0.0 }
 0x4dd   :  { %v3484_v18 = vsel %vm3469_vm6, %v3481_v45, %v3483_v8 }
 0x4de   :  { %v3301_v14 = vrot.slane %v3218_v13, 1  ;;  %v3585_v4 = vmax.f32 %v3397_v43, %v3484_v18 }
 0x4df   :  { %v3069_v28 = vpop.f32.mrf.mxu3 }
 0x4e0   :  { %v3302_v32 = vsel %vm3281_vm7, %v3299_v46, %v3301_v14  ;;  %v3143_v15 = vadd.f32 %v3069_v28, %v5520_v6  ;;  %v5674_v16 = vpop.f32.mrf.mxu2  ;;  %v5699_v21 = vpop.f32.mrf.mxu0 }
 0x4e1   :  { %v3400_v44 = vmax.f32 %v3217_v7, %v3302_v32  ;;  %v5688_v7 = vpop.f32.mrf.mxu1 }
 0x4e2   :  { %v3183_v49 = vadd.f32 %v5560_v62, %v3143_v15 }
 0x4e3   :  { %v3485_v36 = vrot.slane %v3400_v44, 4 }
 0x4e4   :  { %v3219_v5 = vmax.f32 %v3183_v49, 0.0  ;;  %4447 = vmatmul.msk.bf16.gmra.mxu3 %vm189_vm0, %v5534_v33  ;;  %v2481_v33 = vadd.f32 %v5623_v11, %v5536_v23 }
 0x4e5   :  { %v3486_v43 = vsel %vm3469_vm6, %v3483_v8, %v3485_v36 }
 0x4e6   :  { %v3303_v6 = vrot.slane %v3219_v5, 1  ;;  %v3586_v31 = vmax.f32 %v3398_v54, %v3486_v43  ;;  %v2785_v59 = vadd.f32 %v5630_v42, %v2481_v33 }
 0x4e7   :  { %v3072_v17 = vpop.f32.mrf.mxu3 }
 0x4e8   :  { %v3304_v1 = vsel %vm3281_vm7, %v3301_v14, %v3303_v6  ;;  %v3144_v45 = vadd.f32 %v3072_v17, %v2784_v35  ;;  %v5686_v20 = vpop.f32.mrf.mxu2  ;;  %v3618_v55 = vpack.c.bf16 %v3586_v31, %v3585_v4  ;;  %v5713_v49 = vpop.f32.mrf.mxu0 }
 0x4e9   :  { %v5690_v25 = vmax.f32 %v3218_v13, %v3304_v1  ;;  %v2484_v13 = vadd.f32 %v5638_v24, %v5544_v2  ;;  %v5707_v14 = vpop.f32.mrf.mxu1 }
 0x4ea   :  { %v3184_v58 = vadd.f32 %v5560_v62, %v3144_v45  ;;  %4454 = vmatmul.msk.bf16.gmra.mxu2 %vm3638_vm8, %v3618_v55 }
 0x4eb   :  { %v3487_v12 = vrot.slane %v5690_v25, 4  ;;  %v2786_v28 = vadd.f32 %v5645_v10, %v2484_v13 }
 0x4ec   :  { %v3220_v54 = vmax.f32 %v3184_v58, 0.0  ;;  %v2489_v58 = vadd.f32 %v5665_v40, %v5573_v57 }
 0x4ed   :  { %v3488_v46 = vsel %vm3469_vm6, %v3485_v36, %v3487_v12 }
 0x4ee   :  { %v3305_v53 = vrot.slane %v3220_v54, 1  ;;  %v3587_v48 = vmax.f32 %v3399_v38, %v3488_v46 }
 0x4ef   :  { %v3074_v41 = vpop.f32.mrf.mxu3 }
 0x4f0   :  { %v3306_v30 = vsel %vm3281_vm7, %v3303_v6, %v3305_v53  ;;  %v3145_v8 = vadd.f32 %v3074_v41, %v2785_v59  ;;  %v5702_v23 = vpop.f32.mrf.mxu2 }
 0x4f1   :  { %v3402_v11 = vmax.f32 %v3219_v5, %v3306_v30  ;;  %v5725_v6 = vpop.f32.mrf.mxu1 }
 0x4f2   :  { %v3185_v18 = vadd.f32 %v5560_v62, %v3145_v8 }
 0x4f3   :  { %v3489_v4 = vrot.slane %v3402_v11, 4 }
 0x4f4   :  { %v3221_v42 = vmax.f32 %v3185_v18, 0.0  ;;  %4448 = vmatmul.msk.bf16.gmra.mxu3 %vm189_vm0, %v5551_v0  ;;  %v2486_v0 = vadd.f32 %v5648_v22, %v5553_v19 }
 0x4f5   :  { %v3490_v38 = vsel %vm3469_vm6, %v3487_v12, %v3489_v4  ;;  %v5733_v12 = vpop.f32.mrf.mxu0 }
 0x4f6   :  { %v3307_v32 = vrot.slane %v3221_v42, 1  ;;  %v3588_v15 = vmax.f32 %v3400_v44, %v3490_v38  ;;  %v2787_v17 = vadd.f32 %v5657_v60, %v2486_v0  ;;  %v2494_v0 = vadd.f32 %v5699_v21, %v5589_v29 }
 0x4f7   :  { %v3077_v27 = vpop.f32.mrf.mxu3 }
 0x4f8   :  { %v3308_v2 = vsel %vm3281_vm7, %v3305_v53, %v3307_v32  ;;  %v3146_v24 = vadd.f32 %v3077_v27, %v2786_v28  ;;  %v3619_v36 = vpack.c.bf16 %v3588_v15, %v3587_v48  ;;  %v5718_v43 = vpop.f32.mrf.mxu2 }
 0x4f9   :  { %v5716_v5 = vmax.f32 %v3220_v54, %v3308_v2  ;;  %v2732_v30 = vpop.f32.mrf.mxu1 }
 0x4fa   :  { %v3186_v35 = vadd.f32 %v5560_v62, %v3146_v24  ;;  %4455 = vmatmul.msk.bf16.gmra.mxu2 %vm3638_vm8, %v3619_v36 }
 0x4fb   :  { %v3491_v10 = vrot.slane %v5716_v5, 4 }
 0x4fc   :  { %v3222_v44 = vmax.f32 %v3186_v35, 0.0 }
 0x4fd   :  { %v3492_v31 = vsel %vm3469_vm6, %v3489_v4, %v3491_v10  ;;  %v2491_v4 = vadd.f32 %v5679_v63, %v5581_v47 }
 0x4fe   :  { %v3309_v1 = vrot.slane %v3222_v44, 1  ;;  %v3589_v45 = vmax.f32 %v5690_v25, %v3492_v31  ;;  %v2788_v25 = vadd.f32 %v5670_v51, %v2489_v58  ;;  %v2500_v51 = vpop.f32.mrf.mxu0  ;;  %v2790_v31 = vadd.f32 %v5707_v14, %v2494_v0 }
 0x4ff   :  { %v3079_v55 = vpop.f32.mrf.mxu3 }
 0x500   :  { %v3310_v33 = vsel %vm3281_vm7, %v3307_v32, %v3309_v1  ;;  %v3147_v19 = vadd.f32 %v3079_v55, %v2787_v17  ;;  %v5736_v59 = vpop.f32.mrf.mxu2  ;;  %v2789_v32 = vadd.f32 %v5688_v7, %v2491_v4 }
 0x501   :  { %v3404_v22 = vmax.f32 %v3221_v42, %v3310_v33  ;;  %v2734_v24 = vpop.f32.mrf.mxu1 }
 0x502   :  { %v3187_v54 = vadd.f32 %v5560_v62, %v3147_v19 }
 0x503   :  { %v3493_v46 = vrot.slane %v3404_v22, 4 }
 0x504   :  { %v3223_v53 = vmax.f32 %v3187_v54, 0.0  ;;  %4449 = vmatmul.msk.bf16.gmra.mxu3 %vm189_vm0, %v5570_v56 }
 0x505   :  { %v3494_v60 = vsel %vm3469_vm6, %v3491_v10, %v3493_v46 }
 0x506   :  { %v3311_v48 = vrot.slane %v3223_v53, 1  ;;  %v3590_v41 = vmax.f32 %v3402_v11, %v3494_v60  ;;  %v2503_v17 = vpop.f32.mrf.mxu0 }
 0x507   :  { %v3082_v8 = vpop.f32.mrf.mxu3 }
 0x508   :  { %v3312_v57 = vsel %vm3281_vm7, %v3309_v1, %v3311_v48  ;;  %v3148_v40 = vadd.f32 %v3082_v8, %v2788_v25  ;;  %v3620_v13 = vpack.c.bf16 %v3590_v41, %v3589_v45  ;;  %v5750_v11 = vpop.f32.mrf.mxu2 }
 0x509   :  { %v5743_v18 = vmax.f32 %v3222_v44, %v3312_v57  ;;  %v2972_v44 = vsel %vm1626_vm5, %v5565_v3, %v5339_v52  ;;  %v2496_v52 = vadd.f32 %v5713_v49, %v5600_v26  ;;  %v2737_v54 = vpop.f32.mrf.mxu1 }
 0x50a   :  { %v3188_v42 = vadd.f32 %v5560_v62, %v3148_v40  ;;  %4456 = vmatmul.msk.bf16.gmra.mxu2 %vm3638_vm8, %v3620_v13  ;;  %v2499_v40 = vadd.f32 %v5733_v12, %v5606_v37 }
 0x50b   :  { %v3495_v56 = vrot.slane %v5743_v18, 4 }
 0x50c   :  { %v3224_v38 = vmax.f32 %v3188_v42, 0.0 }
 0x50d   :  { %v3496_v28 = vsel %vm3469_vm6, %v3493_v46, %v3495_v56 }
 0x50e   :  { %v3313_v15 = vrot.slane %v3224_v38, 1  ;;  %v3591_v27 = vmax.f32 %v5716_v5, %v3496_v28  ;;  %v2505_v57 = vpop.f32.mrf.mxu0 }
 0x50f   :  { %v3084_v2 = vpop.f32.mrf.mxu3 }
 0x510   :  { %v3314_v47 = vsel %vm3281_vm7, %v3311_v48, %v3313_v15  ;;  %v3149_v63 = vadd.f32 %v3084_v2, %v2789_v32  ;;  %v5765_v55 = vpop.f32.mrf.mxu2 }
 0x511   :  { %v3406_v36 = vmax.f32 %v3223_v53, %v3314_v47  ;;  %v2791_v53 = vadd.f32 %v5725_v6, %v2496_v52 }
 0x512   :  { %v3189_v35 = vadd.f32 %v5560_v62, %v3149_v63  ;;  %v2501_v63 = vadd.f32 %v2500_v51, %v5619_v50 }
 0x513   :  { %v3497_v10 = vrot.slane %v3406_v36, 4 }
 0x514   :  { %v3225_v7 = vmax.f32 %v3189_v35, 0.0  ;;  %4450 = vmatmul.msk.bf16.gmra.mxu3 %vm189_vm0, %v2972_v44 }
 0x515   :  { %v3498_v5 = vsel %vm3469_vm6, %v3495_v56, %v3497_v10  ;;  %v2739_v56 = vpop.f32.mrf.mxu1 }
 0x516   :  { %v3315_v1 = vrot.slane %v3225_v7, 1  ;;  %v3592_v45 = vmax.f32 %v3404_v22, %v3498_v5  ;;  %v2508_v12 = vpop.f32.mrf.mxu0 }
 0x517   :  { %v3087_v29 = vpop.f32.mrf.mxu3 }
 0x518   :  { %v3316_v21 = vsel %vm3281_vm7, %v3313_v15, %v3315_v1  ;;  %v3150_v33 = vadd.f32 %v3087_v29, %v2790_v31  ;;  %v3621_v19 = vpack.c.bf16 %v3592_v45, %v3591_v27  ;;  %v5776_v49 = vpop.f32.mrf.mxu2  ;;  %v2504_v45 = vadd.f32 %v2503_v17, %v5628_v39 }
 0x519   :  { %v3407_v58 = vmax.f32 %v3224_v38, %v3316_v21  ;;  %v2792_v38 = vadd.f32 %v2732_v30, %v2499_v40  ;;  %v2506_v39 = vadd.f32 %v2505_v57, %v5641_v61 }
 0x51a   :  { %v3190_v3 = vadd.f32 %v5560_v62, %v3150_v33  ;;  %4457 = vmatmul.msk.bf16.gmra.mxu2 %vm3638_vm8, %v3621_v19 }
 0x51b   :  { %v3499_v14 = vrot.slane %v3407_v58, 4  ;;  %v2795_v40 = vadd.f32 %v2739_v56, %v2506_v39 }
 0x51c   :  { %v3226_v46 = vmax.f32 %v3190_v3, 0.0 }
 0x51d   :  { %v3500_v22 = vsel %vm3469_vm6, %v3497_v10, %v3499_v14  ;;  %v2793_v10 = vadd.f32 %v2734_v24, %v2501_v63  ;;  %v2742_v5 = vpop.f32.mrf.mxu1  ;;  %v2794_v24 = vadd.f32 %v2737_v54, %v2504_v45 }
 0x51e   :  { %v3317_v60 = vrot.slane %v3226_v46, 1  ;;  %v3593_v25 = vmax.f32 %v5743_v18, %v3500_v22  ;;  %v2510_v19 = vpop.f32.mrf.mxu0 }
 0x51f   :  { %v3089_v48 = vpop.f32.mrf.mxu3  ;;  %v2511_v45 = vadd.f32 %v2510_v19, %v5663_v9 }
 0x520   :  { %v3318_v41 = vsel %vm3281_vm7, %v3315_v1, %v3317_v60  ;;  %v3151_v8 = vadd.f32 %v3089_v48, %v2791_v53  ;;  %v5789_v35 = vpop.f32.mrf.mxu2 }
 0x521   :  { %v3408_v26 = vmax.f32 %v3225_v7, %v3318_v41 }
 0x522   :  { %v3191_v13 = vadd.f32 %v5560_v62, %v3151_v8 }
 0x523   :  { %v3501_v4 = vrot.slane %v3408_v26, 4 }
 0x524   :  { %v3227_v42 = vmax.f32 %v3191_v13, 0.0 }
 0x525   :  { %v3502_v6 = vsel %vm3469_vm6, %v3499_v14, %v3501_v4 }
 0x526   :  { %v3319_v18 = vrot.slane %v3227_v42, 1  ;;  %v3594_v28 = vmax.f32 %v3406_v36, %v3502_v6  ;;  %v5810_v6 = vld [vmem:[%s6149_s12] ss:$0 sm:$0xff] }
 0x527   :  { %v3092_v32 = vpop.f32.mrf.mxu3 }
 0x528   :  { %v3320_v15 = vsel %vm3281_vm7, %v3317_v60, %v3319_v18  ;;  %v3152_v27 = vadd.f32 %v3092_v32, %v2792_v38  ;;  %v3622_v2 = vpack.c.bf16 %v3594_v28, %v3593_v25  ;;  %v5795_v52 = vpop.f32.mrf.mxu2  ;;  %v2744_v25 = vpop.f32.mrf.mxu1  ;;  %v2509_v28 = vadd.f32 %v2508_v12, %v5652_v34 }
 0x529   :  { %v5783_v47 = vmax.f32 %v3226_v46, %v3320_v15 }
 0x52a   :  { %v3192_v37 = vadd.f32 %v5560_v62, %v3152_v27  ;;  %4458 = vmatmul.msk.bf16.gmra.mxu2 %vm3638_vm8, %v3622_v2 }
 0x52b   :  { %v3503_v0 = vrot.slane %v5783_v47, 4 }
 0x52c   :  { %v3228_v30 = vmax.f32 %v3192_v37, 0.0  ;;  %v2796_v37 = vadd.f32 %v2742_v5, %v2509_v28 }
 0x52d   :  { %v3504_v36 = vsel %vm3469_vm6, %v3501_v4, %v3503_v0 }
 0x52e   :  { %v3321_v44 = vrot.slane %v3228_v30, 1  ;;  %v3595_v7 = vmax.f32 %v3407_v58, %v3504_v36 }
 0x52f   :  { %v3094_v31 = vpop.f32.mrf.mxu3 }
 0x530   :  { %v3322_v1 = vsel %vm3281_vm7, %v3319_v18, %v3321_v44  ;;  %v3153_v50 = vadd.f32 %v3094_v31, %v2793_v10  ;;  %v2747_v15 = vpop.f32.mrf.mxu1 }
 0x531   :  { %v3410_v51 = vmax.f32 %v3227_v42, %v3322_v1  ;;  %v2513_v42 = vpop.f32.mrf.mxu0 }
 0x532   :  { %v3193_v29 = vadd.f32 %v5560_v62, %v3153_v50 }
 0x533   :  { %v3505_v21 = vrot.slane %v3410_v51, 4 }
 0x534   :  { %v3229_v33 = vmax.f32 %v3193_v29, 0.0 }
 0x535   :  { %v3506_v3 = vsel %vm3469_vm6, %v3503_v0, %v3505_v21 }
 0x536   :  { %v3323_v14 = vrot.slane %v3229_v33, 1  ;;  %v3596_v58 = vmax.f32 %v3408_v26, %v3506_v3 }
 0x537   :  { %v3097_v46 = vpop.f32.mrf.mxu3 }
 0x538   :  { %v3324_v22 = vsel %vm3281_vm7, %v3321_v44, %v3323_v14  ;;  %v3154_v53 = vadd.f32 %v3097_v46, %v2794_v24  ;;  %v3623_v60 = vpack.c.bf16 %v3596_v58, %v3595_v7 }
 0x539   :  { %v5799_v48 = vmax.f32 %v3228_v30, %v3324_v22  ;;  %v2515_v1 = vpop.f32.mrf.mxu0 }
 0x53a   :  { %v3194_v17 = vadd.f32 %v5560_v62, %v3154_v53  ;;  %4459 = vmatmul.msk.bf16.gmra.mxu2 %vm3638_vm8, %v3623_v60  ;;  %v2514_v60 = vadd.f32 %v2513_v42, %v5674_v16 }
 0x53b   :  { %v3507_v41 = vrot.slane %v5799_v48, 4 }
 0x53c   :  { %v3230_v8 = vmax.f32 %v3194_v17, 0.0 }
 0x53d   :  { %v3705_v54 = vpop.f32.mrf.mxu2  ;;  %v3508_v26 = vsel %vm3469_vm6, %v3505_v21, %v3507_v41 }
 0x53e   :  { %v3325_v13 = vrot.slane %v3230_v8, 1  ;;  %v3597_v4 = vmax.f32 %v5783_v47, %v3508_v26  ;;  %v3706_v27 = vadd.f32 %v5810_v6, %v3705_v54 }
 0x53f   :  { %v3099_v61 = vpop.f32.mrf.mxu3 }
 0x540   :  { %v3326_v57 = vsel %vm3281_vm7, %v3323_v14, %v3325_v13  ;;  %v3155_v38 = vadd.f32 %v3099_v61, %v2795_v40  ;;  %v3795_v10 = vmax.f32 %v3706_v27, 0.0  ;;  %v2797_v14 = vadd.f32 %v2744_v25, %v2511_v45 }
 0x541   :  { %v3412_v18 = vmax.f32 %v3229_v33, %v3326_v57  ;;  %v2749_v33 = vpop.f32.mrf.mxu1  ;;  %v2518_v17 = vpop.f32.mrf.mxu0  ;;  %v2798_v40 = vadd.f32 %v2747_v15, %v2514_v60  ;;  %v2516_v27 = vadd.f32 %v2515_v1, %v5686_v20 }
 0x542   :  { %v3195_v32 = vadd.f32 %v5560_v62, %v3155_v38 }
 0x543   :  { %v3509_v56 = vrot.slane %v3412_v18, 4 }
 0x544   :  { %v3231_v2 = vmax.f32 %v3195_v32, 0.0 }
 0x545   :  { %v3707_v47 = vpop.f32.mrf.mxu2  ;;  %v3510_v63 = vsel %vm3469_vm6, %v3507_v41, %v3509_v56 }
 0x546   :  { %v3327_v0 = vrot.slane %v3231_v2, 1  ;;  %v3708_v30 = vadd.f32 %v5810_v6, %v3707_v47  ;;  %v3598_v36 = vmax.f32 %v3410_v51, %v3510_v63 }
 0x547   :  { %v3102_v44 = vpop.f32.mrf.mxu3 }
 0x548   :  { %v3328_v7 = vsel %vm3281_vm7, %v3325_v13, %v3327_v0  ;;  %v3796_v34 = vmax.f32 %v3708_v30, 0.0  ;;  %v3156_v12 = vadd.f32 %v3102_v44, %v2796_v37  ;;  %v3624_v31 = vpack.c.bf16 %v3598_v36, %v3597_v4 }
 0x549   :  { %v5819_v50 = vmax.f32 %v3230_v8, %v3328_v7  ;;  %v2752_v61 = vpop.f32.mrf.mxu1  ;;  %v2520_v63 = vpop.f32.mrf.mxu0  ;;  %v2799_v30 = vadd.f32 %v2749_v33, %v2516_v27 }
 0x54a   :  { %v3831_v29 = vpack.c.bf16 %v3796_v34, %v3795_v10  ;;  %v3196_v21 = vadd.f32 %v5560_v62, %v3156_v12  ;;  %4460 = vmatmul.msk.bf16.gmra.mxu2 %vm3638_vm8, %v3624_v31  ;;  %v2519_v31 = vadd.f32 %v2518_v17, %v5702_v23 }
 0x54b   :  { %v3511_v5 = vrot.slane %v5819_v50, 4 }
 0x54c   :  { %v3232_v51 = vmax.f32 %v3196_v21, 0.0  ;;  %4469 = vmatmul.msk.bf16.vlgmr.msrb.gmra.mxu0 %vm3638_vm8, %v3831_v29  ;;  %v2800_v33 = vadd.f32 %v2752_v61, %v2519_v31 }
 0x54d   :  { %v3710_v3 = vpop.f32.mrf.mxu2  ;;  %v3512_v24 = vsel %vm3469_vm6, %v3509_v56, %v3511_v5 }
 0x54e   :  { %v3329_v58 = vrot.slane %v3232_v51, 1  ;;  %v3599_v46 = vmax.f32 %v5799_v48, %v3512_v24  ;;  %v3711_v8 = vadd.f32 %v5810_v6, %v3710_v3 }
 0x54f   :  { %v3104_v22 = vpop.f32.mrf.mxu3 }
 0x550   :  { %v3330_v9 = vsel %vm3281_vm7, %v3327_v0, %v3329_v58  ;;  %v3157_v19 = vadd.f32 %v3104_v22, %v2797_v14  ;;  %v3797_v57 = vmax.f32 %v3711_v8, 0.0 }
 0x551   :  { %v3414_v53 = vmax.f32 %v3231_v2, %v3330_v9  ;;  %v2754_v34 = vpop.f32.mrf.mxu1  ;;  %v2523_v14 = vpop.f32.mrf.mxu0 }
 0x552   :  { %v3197_v39 = vadd.f32 %v5560_v62, %v3157_v19 }
 0x553   :  { %v3513_v41 = vrot.slane %v3414_v53, 4 }
 0x554   :  { %v3233_v54 = vmax.f32 %v3197_v39, 0.0  ;;  %v2521_v39 = vadd.f32 %v2520_v63, %v5718_v43 }
 0x555   :  { %v3712_v26 = vpop.f32.mrf.mxu2  ;;  %v3514_v25 = vsel %vm3469_vm6, %v3511_v5, %v3513_v41 }
 0x556   :  { %v3331_v13 = vrot.slane %v3233_v54, 1  ;;  %v3713_v48 = vadd.f32 %v5810_v6, %v3712_v26  ;;  %v3600_v4 = vmax.f32 %v3412_v18, %v3514_v25 }
 0x557   :  { %v3107_v38 = vpop.f32.mrf.mxu3 }
 0x558   :  { %v3332_v16 = vsel %vm3281_vm7, %v3329_v58, %v3331_v13  ;;  %v3798_v42 = vmax.f32 %v3713_v48, 0.0  ;;  %v3158_v28 = vadd.f32 %v3107_v38, %v2798_v40  ;;  %v3625_v32 = vpack.c.bf16 %v3600_v4, %v3599_v46 }
 0x559   :  { %v5835_v56 = vmax.f32 %v3232_v51, %v3332_v16  ;;  %v2757_v8 = vpop.f32.mrf.mxu1  ;;  %v2801_v40 = vadd.f32 %v2754_v34, %v2521_v39  ;;  %v2524_v16 = vadd.f32 %v2523_v14, %v5736_v59 }
 0x55a   :  { %v3832_v2 = vpack.c.bf16 %v3798_v42, %v3797_v57  ;;  %v3198_v47 = vadd.f32 %v5560_v62, %v3158_v28  ;;  %4461 = vmatmul.msk.bf16.gmra.mxu2 %vm3638_vm8, %v3625_v32  ;;  %v2525_v57 = vpop.f32.mrf.mxu0 }
 0x55b   :  { %v3515_v15 = vrot.slane %v5835_v56, 4 }
 0x55c   :  { %v3234_v18 = vmax.f32 %v3198_v47, 0.0  ;;  %4470 = vmatmul.msk.bf16.gmra.mxu0 %vm3638_vm8, %v3832_v2 }
 0x55d   :  { %v3715_v37 = vpop.f32.mrf.mxu2  ;;  %v3516_v0 = vsel %vm3469_vm6, %v3513_v41, %v3515_v15 }
 0x55e   :  { %v3333_v36 = vrot.slane %v3234_v18, 1  ;;  %v3601_v10 = vmax.f32 %v5819_v50, %v3516_v0  ;;  %v3716_v29 = vadd.f32 %v5810_v6, %v3715_v37 }
 0x55f   :  { %v3109_v44 = vpop.f32.mrf.mxu3 }
 0x560   :  { %v3334_v20 = vsel %vm3281_vm7, %v3331_v13, %v3333_v36  ;;  %v3159_v7 = vadd.f32 %v3109_v44, %v2799_v30  ;;  %v3799_v58 = vmax.f32 %v3716_v29, 0.0 }
 0x561   :  { %v3416_v12 = vmax.f32 %v3233_v54, %v3334_v20  ;;  %v2759_v2 = vpop.f32.mrf.mxu1 }
 0x562   :  { %v3199_v1 = vadd.f32 %v5560_v62, %v3159_v7  ;;  %v2526_v7 = vadd.f32 %v2525_v57, %v5750_v11 }
 0x563   :  { %v3517_v45 = vrot.slane %v3416_v12, 4 }
 0x564   :  { %v3235_v21 = vmax.f32 %v3199_v1, 0.0  ;;  %v2528_v1 = vpop.f32.mrf.mxu0 }
 0x565   :  { %v3717_v5 = vpop.f32.mrf.mxu2  ;;  %v3518_v51 = vsel %vm3469_vm6, %v3515_v15, %v3517_v45 }
 0x566   :  { %v3335_v3 = vrot.slane %v3235_v21, 1  ;;  %v3718_v50 = vadd.f32 %v5810_v6, %v3717_v5  ;;  %v3602_v24 = vmax.f32 %v3414_v53, %v3518_v51  ;;  %v2803_v5 = vadd.f32 %v2759_v2, %v2526_v7 }
 0x567   :  { %v3112_v46 = vpop.f32.mrf.mxu3 }
 0x568   :  { %v3336_v22 = vsel %vm3281_vm7, %v3333_v36, %v3335_v3  ;;  %v3800_v23 = vmax.f32 %v3718_v50, 0.0  ;;  %v3160_v9 = vadd.f32 %v3112_v46, %v2800_v33  ;;  %v3626_v19 = vpack.c.bf16 %v3602_v24, %v3601_v10 }
 0x569   :  { %v5851_v60 = vmax.f32 %v3234_v18, %v3336_v22  ;;  %v2802_v18 = vadd.f32 %v2757_v8, %v2524_v16 }
 0x56a   :  { %v3833_v17 = vpack.c.bf16 %v3800_v23, %v3799_v58  ;;  %v3200_v41 = vadd.f32 %v5560_v62, %v3160_v9  ;;  %4462 = vmatmul.msk.bf16.gmra.mxu2 %vm3638_vm8, %v3626_v19  ;;  %v2529_v58 = vadd.f32 %v2528_v1, %v5765_v55 }
 0x56b   :  { %v3519_v53 = vrot.slane %v5851_v60, 4 }
 0x56c   :  { %v3236_v54 = vmax.f32 %v3200_v41, 0.0  ;;  %4471 = vmatmul.msk.bf16.gmra.mxu0 %vm3638_vm8, %v3833_v17  ;;  %v2530_v19 = vpop.f32.mrf.mxu0 }
 0x56d   :  { %v3720_v26 = vpop.f32.mrf.mxu2  ;;  %v3520_v25 = vsel %vm3469_vm6, %v3517_v45, %v3519_v53 }
 0x56e   :  { %v3337_v13 = vrot.slane %v3236_v54, 1  ;;  %v3603_v48 = vmax.f32 %v5835_v56, %v3520_v25  ;;  %v3721_v32 = vadd.f32 %v5810_v6, %v3720_v26 }
 0x56f   :  { %v3114_v4 = vpop.f32.mrf.mxu3 }
 0x570   :  { %v3338_v43 = vsel %vm3281_vm7, %v3335_v3, %v3337_v13  ;;  %v3161_v61 = vadd.f32 %v3114_v4, %v2801_v40  ;;  %v3801_v0 = vmax.f32 %v3721_v32, 0.0  ;;  %v2762_v3 = vpop.f32.mrf.mxu1  ;;  %v2531_v4 = vadd.f32 %v2530_v19, %v5776_v49 }
 0x571   :  { %v3418_v38 = vmax.f32 %v3235_v21, %v3338_v43  ;;  %v2804_v41 = vadd.f32 %v2762_v3, %v2529_v58 }
 0x572   :  { %v3201_v42 = vadd.f32 %v5560_v62, %v3161_v61  ;;  %v4539_v61 = vld [vmem:[%s6147_s10] ss:$0 sm:$0xff] }
 0x573   :  { %v3521_v28 = vrot.slane %v3418_v38, 4 }
 0x574   :  { %v3237_v27 = vmax.f32 %v3201_v42, 0.0  ;;  %v2533_v2 = vpop.f32.mrf.mxu0 }
 0x575   :  { %v3722_v47 = vpop.f32.mrf.mxu2  ;;  %v3522_v15 = vsel %vm3469_vm6, %v3519_v53, %v3521_v28 }
 0x576   :  { %v3339_v56 = vrot.slane %v3237_v27, 1  ;;  %v3723_v63 = vadd.f32 %v5810_v6, %v3722_v47  ;;  %v3604_v37 = vmax.f32 %v3416_v12, %v3522_v15 }
 0x577   :  { %v3117_v30 = vpop.f32.mrf.mxu3 }
 0x578   :  { %v3340_v36 = vsel %vm3281_vm7, %v3337_v13, %v3339_v56  ;;  %v3802_v59 = vmax.f32 %v3723_v63, 0.0  ;;  %v3162_v10 = vadd.f32 %v3117_v30, %v2802_v18  ;;  %v3627_v44 = vpack.c.bf16 %v3604_v37, %v3603_v48  ;;  %v2764_v13 = vpop.f32.mrf.mxu1 }
 0x579   :  { %v5867_v20 = vmax.f32 %v3236_v54, %v3340_v36  ;;  %v2805_v32 = vadd.f32 %v2764_v13, %v2531_v4  ;;  %v2534_v63 = vadd.f32 %v2533_v2, %v5789_v35 }
 0x57a   :  { %v3834_v34 = vpack.c.bf16 %v3802_v59, %v3801_v0  ;;  %v3202_v31 = vadd.f32 %v5560_v62, %v3162_v10  ;;  %4463 = vmatmul.msk.bf16.gmra.mxu2 %vm3638_vm8, %v3627_v44 }
 0x57b   :  { %v3523_v45 = vrot.slane %v5867_v20, 4 }
 0x57c   :  { %v3238_v12 = vmax.f32 %v3202_v31, 0.0  ;;  %4472 = vmatmul.msk.bf16.gmra.mxu0 %vm3638_vm8, %v3834_v34 }
 0x57d   :  { %v3725_v29 = vpop.f32.mrf.mxu2  ;;  %v3524_v21 = vsel %vm3469_vm6, %v3521_v28, %v3523_v45 }
 0x57e   :  { %v3341_v51 = vrot.slane %v3238_v12, 1  ;;  %v3605_v33 = vmax.f32 %v5851_v60, %v3524_v21  ;;  %v3726_v23 = vadd.f32 %v5810_v6, %v3725_v29 }
 0x57f   :  { %v3119_v11 = vpop.f32.mrf.mxu3 }
 0x580   :  { %v3342_v50 = vsel %vm3281_vm7, %v3339_v56, %v3341_v51  ;;  %v3163_v24 = vadd.f32 %v3119_v11, %v2803_v5  ;;  %v3803_v54 = vmax.f32 %v3726_v23, 0.0  ;;  %v2767_v0 = vpop.f32.mrf.mxu1  ;;  %v2535_v5 = vpop.f32.mrf.mxu0 }
 0x581   :  { %v3420_v14 = vmax.f32 %v3237_v27, %v3342_v50  ;;  %v2806_v7 = vadd.f32 %v2767_v0, %v2534_v63 }
 0x582   :  { %v3203_v46 = vadd.f32 %v5560_v62, %v3163_v24 }
 0x583   :  { %v3525_v22 = vrot.slane %v3420_v14, 4 }
 0x584   :  { %v3239_v9 = vmax.f32 %v3203_v46, 0.0 }
 0x585   :  { %v3727_v39 = vpop.f32.mrf.mxu2  ;;  %v3526_v17 = vsel %vm3469_vm6, %v3523_v45, %v3525_v22 }
 0x586   :  { %v3343_v60 = vrot.slane %v3239_v9, 1  ;;  %v3728_v8 = vadd.f32 %v5810_v6, %v3727_v39  ;;  %v3606_v53 = vmax.f32 %v3418_v38, %v3526_v17 }
 0x587   :  { %v3122_v26 = vpop.f32.mrf.mxu3 }
 0x588   :  { %v3344_v25 = vsel %vm3281_vm7, %v3341_v51, %v3343_v60  ;;  %v3804_v55 = vmax.f32 %v3728_v8, 0.0  ;;  %v3164_v40 = vadd.f32 %v3122_v26, %v2804_v41  ;;  %v3628_v62 = vpack.c.bf16 %v3606_v53, %v3605_v33 }
 0x589   :  { %v5883_v48 = vmax.f32 %v3238_v12, %v3344_v25  ;;  %v2536_v33 = vadd.f32 %v2535_v5, %v5795_v52 }
 0x58a   :  { %v3835_v43 = vpack.c.bf16 %v3804_v55, %v3803_v54  ;;  %v3204_v57 = vadd.f32 %v4539_v61, %v3164_v40  ;;  %4464 = vmatmul.msk.bf16.gmra.mxu2 %vm3638_vm8, %v3628_v62  ;;  %v4542_v54 = vmov 0.0  }
 0x58b   :  { %v3527_v38 = vrot.slane %v5883_v48, 4  ;;  %v3353_v26 = vrot.slane %v4542_v54, 1 }
 0x58c   :  { %v3240_v16 = vmax.f32 %v3204_v57, 0.0  ;;  %4473 = vmatmul.msk.bf16.gmra.mxu0 %vm3638_vm8, %v3835_v43 }
 0x58d   :  { %v3730_v42 = vpop.f32.mrf.mxu2  ;;  %v3528_v28 = vsel %vm3469_vm6, %v3525_v22, %v3527_v38 }
 0x58e   :  { %v3345_v27 = vrot.slane %v3240_v16, 1  ;;  %v3607_v49 = vmax.f32 %v5867_v20, %v3528_v28  ;;  %v3731_v36 = vadd.f32 %v5810_v6, %v3730_v42 }
 0x58f   :  { %v3124_v47 = vpop.f32.mrf.mxu3 }
 0x590   :  { %v3346_v15 = vsel %vm3281_vm7, %v3343_v60, %v3345_v27  ;;  %v3165_v18 = vadd.f32 %v3124_v47, %v2805_v32  ;;  %v3805_v1 = vmax.f32 %v3731_v36, 0.0 }
 0x591   :  { %v3422_v56 = vmax.f32 %v3239_v9, %v3346_v15 }
 0x592   :  { %v3205_v37 = vadd.f32 %v4539_v61, %v3165_v18 }
 0x593   :  { %v3529_v30 = vrot.slane %v3422_v56, 4 }
 0x594   :  { %v3241_v59 = vmax.f32 %v3205_v37, 0.0 }
 0x595   :  { %v3732_v10 = vpop.f32.mrf.mxu2  ;;  %v3530_v44 = vsel %vm3469_vm6, %v3527_v38, %v3529_v30 }
 0x596   :  { %v3347_v34 = vrot.slane %v3241_v59, 1  ;;  %v3733_v20 = vadd.f32 %v5810_v6, %v3732_v10  ;;  %v3608_v31 = vmax.f32 %v3420_v14, %v3530_v44  ;;  %v2769_v14 = vpop.f32.mrf.mxu1 }
 0x597   :  { %v3127_v45 = vpop.f32.mrf.mxu3  ;;  %v2807_v22 = vadd.f32 %v2769_v14, %v2536_v33 }
 0x598   :  { %v3348_v12 = vsel %vm3281_vm7, %v3345_v27, %v3347_v34  ;;  %v3806_v29 = vmax.f32 %v3733_v20, 0.0  ;;  %v3166_v35 = vadd.f32 %v3127_v45, %v2806_v7  ;;  %v3629_v21 = vpack.c.bf16 %v3608_v31, %v3607_v49 }
 0x599   :  { %v3423_v51 = vmax.f32 %v3240_v16, %v3348_v12  ;;  %v5925_v12 = vld [vmem:[%s6150_s14] ss:$0 sm:$0xff] }
 0x59a   :  { %v3836_v3 = vpack.c.bf16 %v3806_v29, %v3805_v1  ;;  %v3206_v11 = vadd.f32 %v4539_v61, %v3166_v35  ;;  %4465 = vmatmul.msk.bf16.gmra.mxu2 %vm3638_vm8, %v3629_v21 }
 0x59b   :  { %v3531_v50 = vrot.slane %v3423_v51, 4 }
 0x59c   :  { %v3242_v24 = vmax.f32 %v3206_v11, 0.0  ;;  %4474 = vmatmul.msk.bf16.gmra.mxu0 %vm3638_vm8, %v3836_v3 }
 0x59d   :  { %v3735_v58 = vpop.f32.mrf.mxu2  ;;  %v3532_v46 = vsel %vm3469_vm6, %v3529_v30, %v3531_v50 }
 0x59e   :  { %v3349_v23 = vrot.slane %v3242_v24, 1  ;;  %v3609_v9 = vmax.f32 %v5883_v48, %v3532_v46  ;;  %v3736_v8 = vadd.f32 %v5810_v6, %v3735_v58 }
 0x59f   :  { %v3129_v19 = vpop.f32.mrf.mxu3 }
 0x5a0   :  { %v3350_v39 = vsel %vm3281_vm7, %v3347_v34, %v3349_v23  ;;  %v3167_v52 = vadd.f32 %v3129_v19, %v2807_v22  ;;  %v3807_v48 = vmax.f32 %v3736_v8, 0.0 }
 0x5a1   :  { %v3424_v17 = vmax.f32 %v3241_v59, %v3350_v39  ;;  %v3430_v59 = vmax.f32 %v3353_v26, 0.0 }
 0x5a2   :  { %v3207_v41 = vadd.f32 %v4539_v61, %v3167_v52 }
 0x5a3   :  { %v3533_v60 = vrot.slane %v3424_v17, 4  ;;  %v3539_v44 = vrot.slane %v3430_v59, 4 }
 0x5a4   :  { %v3243_v53 = vmax.f32 %v3207_v41, 0.0 }
 0x5a5   :  { %v3737_v25 = vpop.f32.mrf.mxu2  ;;  %v3534_v55 = vsel %vm3469_vm6, %v3531_v50, %v3533_v60 }
 0x5a6   :  { %v3351_v40 = vrot.slane %v3243_v53, 1  ;;  %v3738_v62 = vadd.f32 %v5810_v6, %v3737_v25  ;;  %v3610_v13 = vmax.f32 %v3422_v56, %v3534_v55 }
 0x5a8   :  { %v3352_v4 = vsel %vm3281_vm7, %v3349_v23, %v3351_v40  ;;  %v3354_v43 = vsel %vm3281_vm7, %v3351_v40, %v3353_v26  ;;  %v3808_v57 = vmax.f32 %v3738_v62, 0.0  ;;  %v3630_v61 = vpack.c.bf16 %v3610_v13, %v3609_v9 }
 0x5a9   :  { %v3425_v38 = vmax.f32 %v3242_v24, %v3352_v4  ;;  %v3426_v16 = vmax.f32 %v3243_v53, %v3354_v43 }
 0x5aa   :  { %v3837_v42 = vpack.c.bf16 %v3808_v57, %v3807_v48  ;;  %4466 = vmatmul.msk.bf16.gmra.mxu2 %vm3638_vm8, %v3630_v61 }
 0x5ab   :  { %v3535_v28 = vrot.slane %v3425_v38, 4  ;;  %v3537_v32 = vrot.slane %v3426_v16, 4  ;;  %v3614_v1 = vmax.f32 %v3426_v16, %v3539_v44 }
 0x5ac   :  { %4475 = vmatmul.msk.bf16.gmra.mxu0 %vm3638_vm8, %v3837_v42 }
 0x5ad   :  { %v3740_v27 = vpop.f32.mrf.mxu2  ;;  %v3536_v49 = vsel %vm3469_vm6, %v3533_v60, %v3535_v28  ;;  %v3538_v2 = vsel %vm3469_vm6, %v3535_v28, %v3537_v32  ;;  %v3540_v7 = vsel %vm3469_vm6, %v3537_v32, %v3539_v44 }
 0x5ae   :  { %v3611_v47 = vmax.f32 %v3423_v51, %v3536_v49  ;;  %v3612_v15 = vmax.f32 %v3424_v17, %v3538_v2  ;;  %v3741_v56 = vadd.f32 %v5810_v6, %v3740_v27  ;;  %v3613_v20 = vmax.f32 %v3425_v38, %v3540_v7 }
 0x5b0   :  { %v3631_v18 = vpack.c.bf16 %v3612_v15, %v3611_v47  ;;  %v3809_v0 = vmax.f32 %v3741_v56, 0.0  ;;  %v3632_v21 = vpack.c.bf16 %v3614_v1, %v3613_v20 }
 0x5b5   :  { %v3742_v63 = vpop.f32.mrf.mxu2 }
 0x5b6   :  { %v3743_v37 = vadd.f32 %v5810_v6, %v3742_v63 }
 0x5b8   :  { %v3810_v30 = vmax.f32 %v3743_v37, 0.0 }
 0x5ba   :  { %v3838_v36 = vpack.c.bf16 %v3810_v30, %v3809_v0  ;;  %4467 = vmatmul.msk.bf16.gmra.mxu2 %vm3638_vm8, %v3631_v18 }
 0x5bc   :  { %4476 = vmatmul.msk.bf16.gmra.mxu0 %vm3638_vm8, %v3838_v36 }
 0x5bd   :  { %v3745_v10 = vpop.f32.mrf.mxu2 }
 0x5be   :  { %v3746_v34 = vadd.f32 %v5810_v6, %v3745_v10 }
 0x5c0   :  { %v3811_v29 = vmax.f32 %v3746_v34, 0.0 }
 0x5c5   :  { %v3747_v31 = vpop.f32.mrf.mxu2 }
 0x5c6   :  { %v3748_v45 = vadd.f32 %v5810_v6, %v3747_v31 }
 0x5c8   :  { %v3812_v35 = vmax.f32 %v3748_v45, 0.0 }
 0x5c9   :  { %v3920_v5 = vpop.f32.mrf.mxu0 }
 0x5ca   :  { %v3839_v51 = vpack.c.bf16 %v3812_v35, %v3811_v29  ;;  %v3921_v33 = vadd.f32 %v5925_v12, %v3920_v5  ;;  %4468 = vmatmul.msk.bf16.gmra.mxu2 %vm3638_vm8, %v3632_v21 }
 0x5cc   :  { %v4010_v3 = vmax.f32 %v3921_v33, 0.0  ;;  %4477 = vmatmul.msk.bf16.gmra.mxu0 %vm3638_vm8, %v3839_v51 }
 0x5cd   :  { %v3750_v11 = vpop.f32.mrf.mxu2 }
 0x5ce   :  { %4047 = vst.msk [vmem:[%s6151_s15] sm:$0xff] %vm4046_vm9, %v4010_v3  ;;  %v3751_v14 = vadd.f32 %v5810_v6, %v3750_v11 }
 0x5d0   :  { %v3813_v23 = vmax.f32 %v3751_v14, 0.0 }
 0x5d1   :  { %v3922_v50 = vpop.f32.mrf.mxu0 }
 0x5d2   :  { %v3923_v24 = vadd.f32 %v5925_v12, %v3922_v50 }
 0x5d4   :  { %v4011_v58 = vmax.f32 %v3923_v24, 0.0 }
 0x5d5   :  { %v3752_v46 = vpop.f32.mrf.mxu2 }
 0x5d6   :  { %4048 = vst.msk [vmem:[%s6151_s15 + $0x8] sm:$0xff] %vm4046_vm9, %v4011_v58  ;;  %v3753_v22 = vadd.f32 %v5810_v6, %v3752_v46 }
 0x5d8   :  { %v3814_v9 = vmax.f32 %v3753_v22, 0.0 }
 0x5d9   :  { %v3925_v19 = vpop.f32.mrf.mxu0 }
 0x5da   :  { %v3840_v39 = vpack.c.bf16 %v3814_v9, %v3813_v23  ;;  %v3926_v52 = vadd.f32 %v5925_v12, %v3925_v19 }
 0x5dc   :  { %v4012_v17 = vmax.f32 %v3926_v52, 0.0  ;;  %4478 = vmatmul.msk.bf16.gmra.mxu0 %vm3638_vm8, %v3840_v39 }
 0x5dd   :  { %v3755_v41 = vpop.f32.mrf.mxu2 }
 0x5de   :  { %4049 = vst.msk [vmem:[%s6151_s15 + $0x10] sm:$0xff] %vm4046_vm9, %v4012_v17  ;;  %v3756_v53 = vadd.f32 %v5810_v6, %v3755_v41 }
 0x5e0   :  { %v3815_v55 = vmax.f32 %v3756_v53, 0.0 }
 0x5e1   :  { %v3927_v60 = vpop.f32.mrf.mxu0 }
 0x5e2   :  { %v3928_v8 = vadd.f32 %v5925_v12, %v3927_v60 }
 0x5e4   :  { %v4013_v54 = vmax.f32 %v3928_v8, 0.0 }
 0x5e5   :  { %v3757_v26 = vpop.f32.mrf.mxu2 }
 0x5e6   :  { %4050 = vst.msk [vmem:[%s6151_s15 + $0x18] sm:$0xff] %vm4046_vm9, %v4013_v54  ;;  %v3758_v25 = vadd.f32 %v5810_v6, %v3757_v26 }
 0x5e8   :  { %v3816_v40 = vmax.f32 %v3758_v25, 0.0 }
 0x5e9   :  { %v3930_v62 = vpop.f32.mrf.mxu0 }
 0x5ea   :  { %v3841_v13 = vpack.c.bf16 %v3816_v40, %v3815_v55  ;;  %v3931_v48 = vadd.f32 %v5925_v12, %v3930_v62 }
 0x5ec   :  { %v4014_v4 = vmax.f32 %v3931_v48, 0.0  ;;  %4479 = vmatmul.msk.bf16.gmra.mxu0 %vm3638_vm8, %v3841_v13 }
 0x5ed   :  { %v3760_v43 = vpop.f32.mrf.mxu2 }
 0x5ee   :  { %4051 = vst.msk [vmem:[%s6151_s15 + $0x20] sm:$0xff] %vm4046_vm9, %v4014_v4  ;;  %v3761_v38 = vadd.f32 %v5810_v6, %v3760_v43 }
 0x5f0   :  { %v3817_v32 = vmax.f32 %v3761_v38, 0.0 }
 0x5f1   :  { %v3932_v57 = vpop.f32.mrf.mxu0 }
 0x5f2   :  { %v3933_v61 = vadd.f32 %v5925_v12, %v3932_v57 }
 0x5f4   :  { %v4015_v16 = vmax.f32 %v3933_v61, 0.0 }
 0x5f5   :  { %v3762_v42 = vpop.f32.mrf.mxu2 }
 0x5f6   :  { %4052 = vst.msk [vmem:[%s6151_s15 + $0x28] sm:$0xff] %vm4046_vm9, %v4015_v16  ;;  %v3763_v28 = vadd.f32 %v5810_v6, %v3762_v42 }
 0x5f8   :  { %v3818_v27 = vmax.f32 %v3763_v28, 0.0 }
 0x5f9   :  { %v3935_v49 = vpop.f32.mrf.mxu0 }
 0x5fa   :  { %v3842_v2 = vpack.c.bf16 %v3818_v27, %v3817_v32  ;;  %v3936_v47 = vadd.f32 %v5925_v12, %v3935_v49 }
 0x5fc   :  { %v4016_v15 = vmax.f32 %v3936_v47, 0.0  ;;  %4480 = vmatmul.msk.bf16.gmra.mxu0 %vm3638_vm8, %v3842_v2 }
 0x5fd   :  { %v3765_v18 = vpop.f32.mrf.mxu2 }
 0x5fe   :  { %4053 = vst.msk [vmem:[%s6151_s15 + $0x30] sm:$0xff] %vm4046_vm9, %v4016_v15  ;;  %v3766_v37 = vadd.f32 %v5810_v6, %v3765_v18 }
 0x600   :  { %v3819_v59 = vmax.f32 %v3766_v37, 0.0 }
 0x601   :  { %v3937_v56 = vpop.f32.mrf.mxu0 }
 0x602   :  { %v3938_v63 = vadd.f32 %v5925_v12, %v3937_v56 }
 0x604   :  { %v4017_v0 = vmax.f32 %v3938_v63, 0.0 }
 0x605   :  { %v3767_v30 = vpop.f32.mrf.mxu2 }
 0x606   :  { %4054 = vst.msk [vmem:[%s6151_s15 + $0x38] sm:$0xff] %vm4046_vm9, %v4017_v0  ;;  %v3768_v36 = vadd.f32 %v5810_v6, %v3767_v30 }
 0x608   :  { %v3820_v10 = vmax.f32 %v3768_v36, 0.0 }
 0x609   :  { %v3940_v44 = vpop.f32.mrf.mxu0 }
 0x60a   :  { %v3843_v7 = vpack.c.bf16 %v3820_v10, %v3819_v59  ;;  %v3941_v34 = vadd.f32 %v5925_v12, %v3940_v44 }
 0x60c   :  { %v4018_v20 = vmax.f32 %v3941_v34, 0.0  ;;  %4481 = vmatmul.msk.bf16.gmra.mxu0 %vm3638_vm8, %v3843_v7 }
 0x60d   :  { %v3770_v31 = vpop.f32.mrf.mxu2 }
 0x60e   :  { %4055 = vst.msk [vmem:[%s6151_s15 + $0x40] sm:$0xff] %vm4046_vm9, %v4018_v20  ;;  %v3771_v29 = vadd.f32 %v5810_v6, %v3770_v31 }
 0x610   :  { %v3821_v51 = vmax.f32 %v3771_v29, 0.0 }
 0x611   :  { %v3942_v1 = vpop.f32.mrf.mxu0 }
 0x612   :  { %v3943_v45 = vadd.f32 %v5925_v12, %v3942_v1 }
 0x614   :  { %v4019_v35 = vmax.f32 %v3943_v45, 0.0 }
 0x615   :  { %v3772_v21 = vpop.f32.mrf.mxu2 }
 0x616   :  { %4056 = vst.msk [vmem:[%s6151_s15 + $0x48] sm:$0xff] %vm4046_vm9, %v4019_v35  ;;  %v3773_v5 = vadd.f32 %v5810_v6, %v3772_v21 }
 0x618   :  { %v3822_v33 = vmax.f32 %v3773_v5, 0.0 }
 0x619   :  { %v3945_v3 = vpop.f32.mrf.mxu0 }
 0x61a   :  { %v3844_v11 = vpack.c.bf16 %v3822_v33, %v3821_v51  ;;  %v3946_v50 = vadd.f32 %v5925_v12, %v3945_v3 }
 0x61c   :  { %v4020_v24 = vmax.f32 %v3946_v50, 0.0  ;;  %4482 = vmatmul.msk.bf16.gmra.mxu0 %vm3638_vm8, %v3844_v11 }
 0x61d   :  { %v3775_v14 = vpop.f32.mrf.mxu2 }
 0x61e   :  { %4057 = vst.msk [vmem:[%s6151_s15 + $0x50] sm:$0xff] %vm4046_vm9, %v4020_v24  ;;  %v3776_v22 = vadd.f32 %v5810_v6, %v3775_v14 }
 0x620   :  { %v3823_v39 = vmax.f32 %v3776_v22, 0.0 }
 0x621   :  { %v3947_v58 = vpop.f32.mrf.mxu0 }
 0x622   :  { %v3948_v46 = vadd.f32 %v5925_v12, %v3947_v58 }
 0x624   :  { %v4021_v23 = vmax.f32 %v3948_v46, 0.0 }
 0x625   :  { %v3777_v9 = vpop.f32.mrf.mxu2 }
 0x626   :  { %4058 = vst.msk [vmem:[%s6151_s15 + $0x58] sm:$0xff] %vm4046_vm9, %v4021_v23  ;;  %v3778_v19 = vadd.f32 %v5810_v6, %v3777_v9 }
 0x628   :  { %v3824_v52 = vmax.f32 %v3778_v19, 0.0 }
 0x629   :  { %v3950_v17 = vpop.f32.mrf.mxu0 }
 0x62a   :  { %v3845_v41 = vpack.c.bf16 %v3824_v52, %v3823_v39  ;;  %v3951_v60 = vadd.f32 %v5925_v12, %v3950_v17 }
 0x62c   :  { %v4022_v8 = vmax.f32 %v3951_v60, 0.0  ;;  %4483 = vmatmul.msk.bf16.gmra.mxu0 %vm3638_vm8, %v3845_v41 }
 0x62d   :  { %v3780_v53 = vpop.f32.mrf.mxu2 }
 0x62e   :  { %4059 = vst.msk [vmem:[%s6151_s15 + $0x60] sm:$0xff] %vm4046_vm9, %v4022_v8  ;;  %v3781_v25 = vadd.f32 %v5810_v6, %v3780_v53 }
 0x630   :  { %v3825_v13 = vmax.f32 %v3781_v25, 0.0 }
 0x631   :  { %v3952_v54 = vpop.f32.mrf.mxu0 }
 0x632   :  { %v3953_v26 = vadd.f32 %v5925_v12, %v3952_v54 }
 0x634   :  { %v4023_v55 = vmax.f32 %v3953_v26, 0.0 }
 0x635   :  { %v3782_v40 = vpop.f32.mrf.mxu2 }
 0x636   :  { %4060 = vst.msk [vmem:[%s6151_s15 + $0x68] sm:$0xff] %vm4046_vm9, %v4023_v55  ;;  %v3783_v62 = vadd.f32 %v5810_v6, %v3782_v40 }
 0x638   :  { %v3826_v48 = vmax.f32 %v3783_v62, 0.0 }
 0x639   :  { %v3955_v4 = vpop.f32.mrf.mxu0 }
 0x63a   :  { %v3846_v43 = vpack.c.bf16 %v3826_v48, %v3825_v13  ;;  %v3956_v57 = vadd.f32 %v5925_v12, %v3955_v4 }
 0x63c   :  { %v4024_v61 = vmax.f32 %v3956_v57, 0.0  ;;  %4484 = vmatmul.msk.bf16.gmra.mxu0 %vm3638_vm8, %v3846_v43 }
 0x63d   :  { %v3785_v38 = vpop.f32.mrf.mxu2 }
 0x63e   :  { %4061 = vst.msk [vmem:[%s6151_s15 + $0x70] sm:$0xff] %vm4046_vm9, %v4024_v61  ;;  %v3786_v28 = vadd.f32 %v5810_v6, %v3785_v38 }
 0x640   :  { %v3827_v2 = vmax.f32 %v3786_v28, 0.0 }
 0x641   :  { %v3957_v16 = vpop.f32.mrf.mxu0 }
 0x642   :  { %v3958_v42 = vadd.f32 %v5925_v12, %v3957_v16 }
 0x644   :  { %v4025_v32 = vmax.f32 %v3958_v42, 0.0 }
 0x645   :  { %v3787_v27 = vpop.f32.mrf.mxu2 }
 0x646   :  { %4062 = vst.msk [vmem:[%s6151_s15 + $0x78] sm:$0xff] %vm4046_vm9, %v4025_v32  ;;  %v3788_v49 = vadd.f32 %v5810_v6, %v3787_v27 }
 0x648   :  { %v3828_v47 = vmax.f32 %v3788_v49, 0.0 }
 0x649   :  { %v3960_v15 = vpop.f32.mrf.mxu0 }
 0x64a   :  { %v3847_v18 = vpack.c.bf16 %v3828_v47, %v3827_v2  ;;  %v3961_v56 = vadd.f32 %v5925_v12, %v3960_v15 }
 0x64c   :  { %v4026_v63 = vmax.f32 %v3961_v56, 0.0  ;;  %4485 = vmatmul.msk.bf16.gmra.mxu0 %vm3638_vm8, %v3847_v18 }
 0x64d   :  { %v3790_v37 = vpop.f32.mrf.mxu2 }
 0x64e   :  { %4063 = vst.msk [vmem:[%s6151_s15 + $0x80] sm:$0xff] %vm4046_vm9, %v4026_v63  ;;  %v3791_v36 = vadd.f32 %v5810_v6, %v3790_v37 }
 0x650   :  { %v3829_v7 = vmax.f32 %v3791_v36, 0.0 }
 0x651   :  { %v3962_v0 = vpop.f32.mrf.mxu0 }
 0x652   :  { %v3963_v30 = vadd.f32 %v5925_v12, %v3962_v0 }
 0x654   :  { %v4027_v59 = vmax.f32 %v3963_v30, 0.0 }
 0x655   :  { %v3792_v10 = vpop.f32.mrf.mxu2 }
 0x656   :  { %4064 = vst.msk [vmem:[%s6151_s15 + $0x88] sm:$0xff] %vm4046_vm9, %v4027_v59  ;;  %v3793_v44 = vadd.f32 %v5810_v6, %v3792_v10 }
 0x658   :  { %v3830_v34 = vmax.f32 %v3793_v44, 0.0 }
 0x659   :  { %v3965_v20 = vpop.f32.mrf.mxu0 }
 0x65a   :  { %v3848_v31 = vpack.c.bf16 %v3830_v34, %v3829_v7  ;;  %v3966_v1 = vadd.f32 %v5925_v12, %v3965_v20 }
 0x65c   :  { %v4028_v45 = vmax.f32 %v3966_v1, 0.0  ;;  %4486 = vmatmul.msk.bf16.gmra.mxu0 %vm3638_vm8, %v3848_v31 }
 0x65e   :  { %4065 = vst.msk [vmem:[%s6151_s15 + $0x90] sm:$0xff] %vm4046_vm9, %v4028_v45 }
 0x661   :  { %v3967_v29 = vpop.f32.mrf.mxu0 }
 0x662   :  { %v3968_v35 = vadd.f32 %v5925_v12, %v3967_v29 }
 0x664   :  { %v4029_v21 = vmax.f32 %v3968_v35, 0.0 }
 0x666   :  { %4066 = vst.msk [vmem:[%s6151_s15 + $0x98] sm:$0xff] %vm4046_vm9, %v4029_v21 }
 0x669   :  { %v3970_v6 = vpop.f32.mrf.mxu0 }
 0x66a   :  { %v3971_v5 = vadd.f32 %v5925_v12, %v3970_v6 }
 0x66c   :  { %v4030_v51 = vmax.f32 %v3971_v5, 0.0 }
 0x66e   :  { %4067 = vst.msk [vmem:[%s6151_s15 + $0xa0] sm:$0xff] %vm4046_vm9, %v4030_v51 }
 0x671   :  { %v3972_v33 = vpop.f32.mrf.mxu0 }
 0x672   :  { %v3973_v3 = vadd.f32 %v5925_v12, %v3972_v33 }
 0x674   :  { %v4031_v11 = vmax.f32 %v3973_v3, 0.0 }
 0x676   :  { %4068 = vst.msk [vmem:[%s6151_s15 + $0xa8] sm:$0xff] %vm4046_vm9, %v4031_v11 }
 0x679   :  { %v3975_v50 = vpop.f32.mrf.mxu0 }
 0x67a   :  { %v3976_v24 = vadd.f32 %v5925_v12, %v3975_v50 }
 0x67c   :  { %v4032_v14 = vmax.f32 %v3976_v24, 0.0 }
 0x67e   :  { %4069 = vst.msk [vmem:[%s6151_s15 + $0xb0] sm:$0xff] %vm4046_vm9, %v4032_v14 }
 0x681   :  { %v3977_v58 = vpop.f32.mrf.mxu0 }
 0x682   :  { %v3978_v46 = vadd.f32 %v5925_v12, %v3977_v58 }
 0x684   :  { %v4033_v22 = vmax.f32 %v3978_v46, 0.0 }
 0x686   :  { %4070 = vst.msk [vmem:[%s6151_s15 + $0xb8] sm:$0xff] %vm4046_vm9, %v4033_v22 }
 0x689   :  { %v3980_v23 = vpop.f32.mrf.mxu0 }
 0x68a   :  { %v3981_v9 = vadd.f32 %v5925_v12, %v3980_v23 }
 0x68c   :  { %v4034_v19 = vmax.f32 %v3981_v9, 0.0 }
 0x68e   :  { %4071 = vst.msk [vmem:[%s6151_s15 + $0xc0] sm:$0xff] %vm4046_vm9, %v4034_v19 }
 0x691   :  { %v3982_v39 = vpop.f32.mrf.mxu0 }
 0x692   :  { %v3983_v52 = vadd.f32 %v5925_v12, %v3982_v39 }
 0x694   :  { %v4035_v17 = vmax.f32 %v3983_v52, 0.0 }
 0x696   :  { %4072 = vst.msk [vmem:[%s6151_s15 + $0xc8] sm:$0xff] %vm4046_vm9, %v4035_v17 }
 0x699   :  { %v3985_v41 = vpop.f32.mrf.mxu0 }
 0x69a   :  { %v3986_v60 = vadd.f32 %v5925_v12, %v3985_v41 }
 0x69c   :  { %v4036_v8 = vmax.f32 %v3986_v60, 0.0 }
 0x69e   :  { %4073 = vst.msk [vmem:[%s6151_s15 + $0xd0] sm:$0xff] %vm4046_vm9, %v4036_v8 }
 0x6a1   :  { %v3987_v53 = vpop.f32.mrf.mxu0 }
 0x6a2   :  { %v3988_v54 = vadd.f32 %v5925_v12, %v3987_v53 }
 0x6a4   :  { %v4037_v26 = vmax.f32 %v3988_v54, 0.0 }
 0x6a6   :  { %4074 = vst.msk [vmem:[%s6151_s15 + $0xd8] sm:$0xff] %vm4046_vm9, %v4037_v26 }
 0x6a9   :  { %v3990_v25 = vpop.f32.mrf.mxu0 }
 0x6aa   :  { %v3991_v55 = vadd.f32 %v5925_v12, %v3990_v25 }
 0x6ac   :  { %v4038_v40 = vmax.f32 %v3991_v55, 0.0 }
 0x6ae   :  { %4075 = vst.msk [vmem:[%s6151_s15 + $0xe0] sm:$0xff] %vm4046_vm9, %v4038_v40 }
 0x6b1   :  { %v3992_v62 = vpop.f32.mrf.mxu0 }
 0x6b2   :  { %v3993_v13 = vadd.f32 %v5925_v12, %v3992_v62 }
 0x6b4   :  { %v4039_v48 = vmax.f32 %v3993_v13, 0.0 }
 0x6b6   :  { %4076 = vst.msk [vmem:[%s6151_s15 + $0xe8] sm:$0xff] %vm4046_vm9, %v4039_v48 }
 0x6b9   :  { %v3995_v4 = vpop.f32.mrf.mxu0 }
 0x6ba   :  { %v3996_v43 = vadd.f32 %v5925_v12, %v3995_v4 }
 0x6bc   :  { %v4040_v57 = vmax.f32 %v3996_v43, 0.0 }
 0x6be   :  { %4077 = vst.msk [vmem:[%s6151_s15 + $0xf0] sm:$0xff] %vm4046_vm9, %v4040_v57 }
 0x6c1   :  { %v3997_v61 = vpop.f32.mrf.mxu0 }
 0x6c2   :  { %v3998_v38 = vadd.f32 %v5925_v12, %v3997_v61 }
 0x6c4   :  { %v4041_v16 = vmax.f32 %v3998_v38, 0.0 }
 0x6c6   :  { %4078 = vst.msk [vmem:[%s6151_s15 + $0xf8] sm:$0xff] %vm4046_vm9, %v4041_v16 }
 0x6c9   :  { %v4000_v42 = vpop.f32.mrf.mxu0 }
 0x6ca   :  { %v4001_v28 = vadd.f32 %v5925_v12, %v4000_v42 }
 0x6cc   :  { %v4042_v32 = vmax.f32 %v4001_v28, 0.0 }
 0x6ce   :  { %4079 = vst.msk [vmem:[%s6151_s15 + $0x100] sm:$0xff] %vm4046_vm9, %v4042_v32 }
 0x6d1   :  { %v4002_v27 = vpop.f32.mrf.mxu0 }
 0x6d2   :  { %v4003_v49 = vadd.f32 %v5925_v12, %v4002_v27 }
 0x6d4   :  { %v4043_v2 = vmax.f32 %v4003_v49, 0.0 }
 0x6d6   :  { %4080 = vst.msk [vmem:[%s6151_s15 + $0x108] sm:$0xff] %vm4046_vm9, %v4043_v2 }
 0x6d9   :  { %v4005_v47 = vpop.f32.mrf.mxu0 }
 0x6da   :  { %v4006_v15 = vadd.f32 %v5925_v12, %v4005_v47 }
 0x6dc   :  { %v4044_v18 = vmax.f32 %v4006_v15, 0.0 }
 0x6de   :  { %4081 = vst.msk [vmem:[%s6151_s15 + $0x110] sm:$0xff] %vm4046_vm9, %v4044_v18 }
 0x6e1   :  { %v4007_v56 = vpop.f32.mrf.mxu0 }
 0x6e2   :  { %v4008_v63 = vadd.f32 %v5925_v12, %v4007_v56 }
 0x6e4   :  { %v4045_v37 = vmax.f32 %v4008_v63, 0.0 }
 0x6e6   :  { %4082 = vst.msk [vmem:[%s6151_s15 + $0x118] sm:$0xff] %vm4046_vm9, %v4045_v37 }

</bundles_post_ra>
